<compile_context>
chip_gen: v7x
topology: tpu7x:2x2x1
jax: 0.10.0
libtpu: 0.0.40
codegen_flags: <defaults>
</compile_context>

<pallas_src>
import functools
import math

import jax
import jax.numpy as jnp
from jax import lax
from jax.experimental import pallas as pl
from jax.experimental.pallas import tpu as pltpu


# Row layout of the packed bias / gamma / beta slab (one DMA instead of 13).
_ROW_B_QKV1, _ROW_B_O1, _ROW_G1, _ROW_B1 = 0, 1, 2, 3
_ROW_B_Q2, _ROW_B_KV2, _ROW_B_O2, _ROW_G2, _ROW_B2 = 4, 5, 6, 7, 8
_ROW_B_FF1, _ROW_G3, _ROW_B3, _ROW_B_OUT = 9, 10, 11, 12
_N_SLAB_ROWS = 16  # padded to a sublane multiple


# ---------------------------------------------------------------------------
# The fused decoder-block kernel (one batch tile per grid step).
# ---------------------------------------------------------------------------
def _decoder_block_kernel(
        x_ref, enc_ref, sbias_ref, xbias_ref,
        w_qkv1_ref, w_o1_ref, w_q2_ref, w_kv2_ref, w_o2_ref,
        w_ff1_ref, w_ff2_ref, w_out_ref, vec_ref,
        out_ref,
        attn_sc,
        *, num_heads):
    D = w_o1_ref.shape[0]
    FF = w_ff1_ref.shape[1]
    V = w_out_ref.shape[1]
    dh = D // num_heads
    scale = 1.0 / math.sqrt(dh)
    bf, f32 = jnp.bfloat16, jnp.float32

    def vrow(r, n):                       # (1, n) f32 bias/gamma/beta row
        return vec_ref[r:r + 1, :n]

    def layernorm(t, g, b, eps=1e-5):
        mu = jnp.mean(t, axis=-1, keepdims=True)
        tc = t - mu
        var = jnp.mean(tc * tc, axis=-1, keepdims=True)
        return tc * lax.rsqrt(var + eps) * g + b

    def heads_attend(q, k, v, bias):
        # q: (Rq, D), k/v: (Rk, D) f32; bias: (Rq, Rk) f32 block-diagonal
        # (+ causal for self-attention).  The batch tile is stacked on the
        # sublane axis; the -1e9 bias makes cross-sequence probabilities
        # exactly 0 after softmax, so one matmul per head covers the tile.
        for h in range(num_heads):        # static unrolled head loop
            lo = h * dh
            qh = (q[:, lo:lo + dh] * scale).astype(bf)
            kh = k[:, lo:lo + dh].astype(bf)
            vh = v[:, lo:lo + dh].astype(bf)
            s = lax.dot_general(qh, kh, (((1,), (1,)), ((), ())),
                                preferred_element_type=f32) + bias
            s = s - jnp.max(s, axis=-1, keepdims=True)
            p = jnp.exp(s)
            p = p * pl.reciprocal(jnp.sum(p, axis=-1, keepdims=True),
                                  approx=True)
            attn_sc[:, lo:lo + dh] = jnp.dot(p.astype(bf), vh,
                                             preferred_element_type=f32)
        return attn_sc[...].astype(bf)    # (Rq, D)

    x = x_ref[...]                        # (R, D) f32, R = batch_tile * S
    enc_bf = enc_ref[...].astype(bf)      # (R_enc, D)

    # --- attention_1: causal self-attention (fused QKV) + residual + LN1 ----
    qkv = jnp.dot(x.astype(bf), w_qkv1_ref[...],
                  preferred_element_type=f32) + vrow(_ROW_B_QKV1, 3 * D)
    a1 = heads_attend(qkv[:, 0 * D:1 * D], qkv[:, 1 * D:2 * D],
                      qkv[:, 2 * D:3 * D], sbias_ref[...])
    a1 = jnp.dot(a1, w_o1_ref[...],
                 preferred_element_type=f32) + vrow(_ROW_B_O1, D)
    out1 = layernorm(x + a1, vrow(_ROW_G1, D), vrow(_ROW_B1, D))

    # --- attention_2: cross-attention over encoder (fused KV) + LN2 ---------
    q2 = jnp.dot(out1.astype(bf), w_q2_ref[...],
                 preferred_element_type=f32) + vrow(_ROW_B_Q2, D)
    kv2 = jnp.dot(enc_bf, w_kv2_ref[...],
                  preferred_element_type=f32) + vrow(_ROW_B_KV2, 2 * D)
    a2 = heads_attend(q2, kv2[:, :D], kv2[:, D:], xbias_ref[...])
    a2 = jnp.dot(a2, w_o2_ref[...],
                 preferred_element_type=f32) + vrow(_ROW_B_O2, D)
    out2 = layernorm(out1 + a2, vrow(_ROW_G2, D), vrow(_ROW_B2, D))

    # --- FFN (linear -> ReLU -> linear, ffn_layer_2 has no bias) + LN3 ------
    h = jnp.dot(out2.astype(bf), w_ff1_ref[...],
                preferred_element_type=f32) + vrow(_ROW_B_FF1, FF)
    h = jnp.maximum(h, 0.0)
    h = jnp.dot(h.astype(bf), w_ff2_ref[...], preferred_element_type=f32)
    ffn = layernorm(h + out2, vrow(_ROW_G3, D), vrow(_ROW_B3, D))

    # --- vocab projection + EXACT softmax (lane-dense V) --------------------
    logits = jnp.dot(ffn.astype(bf), w_out_ref[...],
                     preferred_element_type=f32) + vrow(_ROW_B_OUT, V)
    logits = logits - jnp.max(logits, axis=-1, keepdims=True)
    p = jnp.exp(logits)
    out_ref[...] = (p / jnp.sum(p, axis=-1, keepdims=True)).astype(out_ref.dtype)


# ---------------------------------------------------------------------------
# Wrapper: embedding gather, bias packing, parameter layout glue + pallas_call.
# ---------------------------------------------------------------------------
def transformer_decoder_block(tok_ids, encoder_outputs, params, *, num_heads,
                              batch_tile=None):
    B, S = tok_ids.shape
    _, S_enc, D = encoder_outputs.shape
    V = params["tok_emb"].shape[0]
    FF = params["w_ff1"].shape[1]
    bf, f32 = jnp.bfloat16, jnp.float32

    # Default: whole batch per grid step (best on v5e/v6e at small B).
    # On v7x with larger B, pass batch_tile=B//2 so the "parallel" grid axis
    # shards across the two TensorCores.
    Bt = B if batch_tile is None else batch_tile
    assert B % Bt == 0, "batch must be divisible by batch_tile"
    R, Rk = Bt * S, Bt * S_enc

    # PositionalEmbedding: token gather * sqrt(D) + positional add, done in the
    # wrapper as an XLA gather (per perf review — avoids the f32 one-hot MXU
    # matmul).  TODO(synk): an in-kernel gather would need manual DMA machinery.
    x = params["tok_emb"].astype(f32)[tok_ids] * math.sqrt(D)
    x = x + params["pos_emb"].astype(f32)[None, :, :]
    x = x.reshape(B * S, D)
    enc = encoder_outputs.astype(f32).reshape(B * S_enc, D)

    # Hoisted attention biases for one batch tile: block-diagonal across the
    # stacked sequences, causal inside each self-attention block.
    qi = jnp.arange(R)
    kj = jnp.arange(R)
    same = (qi[:, None] // S) == (kj[None, :] // S)
    causal = (qi[:, None] % S) >= (kj[None, :] % S)
    self_bias = jnp.where(same & causal, 0.0, -1e9).astype(f32)
    kx = jnp.arange(Rk)
    cross_same = (qi[:, None] // S) == (kx[None, :] // S_enc)
    cross_bias = jnp.where(cross_same, 0.0, -1e9).astype(f32)

    # Split the cross-attention in_proj into q and fused-kv halves.
    w_q2 = params["w_qkv2"][:, :D]
    w_kv2 = params["w_qkv2"][:, D:]
    b_q2 = params["b_qkv2"][:D]
    b_kv2 = params["b_qkv2"][D:]

    # Pack all small bias / gamma / beta vectors into ONE lane-dense f32 slab.
    slab_w = max(3 * D, 2 * D, FF, V, 128)
    slab_w = ((slab_w + 127) // 128) * 128
    slab = jnp.zeros((_N_SLAB_ROWS, slab_w), f32)
    for row, vec in (
            (_ROW_B_QKV1, params["b_qkv1"]), (_ROW_B_O1, params["b_o1"]),
            (_ROW_G1, params["g1"]), (_ROW_B1, params["b1"]),
            (_ROW_B_Q2, b_q2), (_ROW_B_KV2, b_kv2),
            (_ROW_B_O2, params["b_o2"]), (_ROW_G2, params["g2"]),
            (_ROW_B2, params["b2"]), (_ROW_B_FF1, params["b_ff1"]),
            (_ROW_G3, params["g3"]), (_ROW_B3, params["b3"]),
            (_ROW_B_OUT, params["b_out"])):
        slab = slab.at[row, :vec.shape[0]].set(vec.astype(f32))

    args = [
        x, enc, self_bias, cross_bias,
        params["w_qkv1"].astype(bf), params["w_o1"].astype(bf),
        w_q2.astype(bf), w_kv2.astype(bf), params["w_o2"].astype(bf),
        params["w_ff1"].astype(bf), params["w_ff2"].astype(bf),
        params["w_out"].astype(bf), slab,
    ]

    const = lambda i: (0, 0)              # weights: DMA'd once, VMEM-resident
    in_specs = [
        pl.BlockSpec((R, D), lambda i: (i, 0)),    # embedded token rows
        pl.BlockSpec((Rk, D), lambda i: (i, 0)),   # encoder rows
        pl.BlockSpec((R, R), const),               # self-attn bias
        pl.BlockSpec((R, Rk), const),              # cross-attn bias
    ] + [pl.BlockSpec(a.shape, const) for a in args[4:]]

    kernel = functools.partial(_decoder_block_kernel, num_heads=num_heads)

    out = pl.pallas_call(
        kernel,
        out_shape=jax.ShapeDtypeStruct((B * S, V), f32),
        grid=(B // Bt,),
        in_specs=in_specs,
        out_specs=pl.BlockSpec((R, V), lambda i: (i, 0)),
        scratch_shapes=[pltpu.VMEM((R, D), f32)],
        compiler_params=pltpu.CompilerParams(
            dimension_semantics=("parallel",)),
    )(*args)
    return out.reshape(B, S, V)


# ---------------------------------------------------------------------------
# Pure-JAX reference (f32) for correctness checking.
# ---------------------------------------------------------------------------
def _reference_forward(tok_ids, enc, params, num_heads):
    D = params["tok_emb"].shape[1]

    def ln(x, g, b):
        mu = x.mean(-1, keepdims=True)
        var = ((x - mu) ** 2).mean(-1, keepdims=True)
        return (x - mu) / jnp.sqrt(var + 1e-5) * g + b

    def mha(xq, xkv, w_qkv, b_qkv, w_o, b_o, mask_bias):
        q = xq @ w_qkv[:, :D] + b_qkv[:D]
        k = xkv @ w_qkv[:, D:2 * D] + b_qkv[D:2 * D]
        v = xkv @ w_qkv[:, 2 * D:] + b_qkv[2 * D:]
        Bq, Sq, _ = q.shape
        Skv = k.shape[1]
        dh = D // num_heads
        q = q.reshape(Bq, Sq, num_heads, dh).transpose(0, 2, 1, 3)
        k = k.reshape(Bq, Skv, num_heads, dh).transpose(0, 2, 1, 3)
        v = v.reshape(Bq, Skv, num_heads, dh).transpose(0, 2, 1, 3)
        s = jnp.einsum("bhqd,bhkd->bhqk", q, k) / math.sqrt(dh)
        if mask_bias is not None:
            s = s + mask_bias
        p = jax.nn.softmax(s, axis=-1)
        o = jnp.einsum("bhqk,bhkd->bhqd", p, v)
        o = o.transpose(0, 2, 1, 3).reshape(Bq, Sq, D)
        return o @ w_o + b_o

    B, S = tok_ids.shape
    x = params["tok_emb"][tok_ids] * math.sqrt(D) + params["pos_emb"][None]
    ri = jnp.arange(S)[:, None]
    rj = jnp.arange(S)[None, :]
    causal = jnp.where(ri >= rj, 0.0, -1e9)

    a1 = mha(x, x, params["w_qkv1"], params["b_qkv1"],
             params["w_o1"], params["b_o1"], causal)
    out1 = ln(x + a1, params["g1"], params["b1"])
    a2 = mha(out1, enc, params["w_qkv2"], params["b_qkv2"],
             params["w_o2"], params["b_o2"], None)
    out2 = ln(out1 + a2, params["g2"], params["b2"])
    h = jnp.maximum(out2 @ params["w_ff1"] + params["b_ff1"], 0.0)
    h = h @ params["w_ff2"]
    ffn = ln(h + out2, params["g3"], params["b3"])
    logits = ffn @ params["w_out"] + params["b_out"]
    return jax.nn.softmax(logits, axis=-1)


if __name__ == "__main__":
    # TPU-friendly small config: lane-dense D / FF / V, aligned seq length.
    B, S, S_ENC = 2, 16, 16
    V, D, FF, H = 512, 128, 256, 4

    key = jax.random.PRNGKey(0)
    ks = list(jax.random.split(key, 24))
    nrm = lambda k, shape, s: s * jax.random.normal(k, shape, jnp.float32)

    tok_ids = jax.random.randint(ks[0], (B, S), 0, V, dtype=jnp.int32)
    encoder_outputs = nrm(ks[1], (B, S_ENC, D), 0.5)

    params = {
        "tok_emb": nrm(ks[2], (V, D), 0.02),
        "pos_emb": nrm(ks[3], (S, D), 0.02),
        "w_qkv1": nrm(ks[4], (D, 3 * D), 0.05), "b_qkv1": nrm(ks[5], (3 * D,), 0.01),
        "w_o1": nrm(ks[6], (D, D), 0.05),       "b_o1": nrm(ks[7], (D,), 0.01),
        "g1": 1.0 + nrm(ks[8], (D,), 0.1),      "b1": nrm(ks[9], (D,), 0.05),
        "w_qkv2": nrm(ks[10], (D, 3 * D), 0.05), "b_qkv2": nrm(ks[11], (3 * D,), 0.01),
        "w_o2": nrm(ks[12], (D, D), 0.05),      "b_o2": nrm(ks[13], (D,), 0.01),
        "g2": 1.0 + nrm(ks[14], (D,), 0.1),     "b2": nrm(ks[15], (D,), 0.05),
        "w_ff1": nrm(ks[16], (D, FF), 0.05),    "b_ff1": nrm(ks[17], (FF,), 0.01),
        "w_ff2": nrm(ks[18], (FF, D), 0.05),
        "g3": 1.0 + nrm(ks[19], (D,), 0.1),     "b3": nrm(ks[20], (D,), 0.05),
        "w_out": nrm(ks[21], (D, V), 0.05),     "b_out": nrm(ks[22], (V,), 0.01),
    }

    out = transformer_decoder_block(tok_ids, encoder_outputs, params, num_heads=H)
    out = jax.block_until_ready(out)

    assert out.shape == (B, S, V), out.shape
    assert out.dtype == jnp.float32

    ref = _reference_forward(tok_ids, encoder_outputs, params, H)
    max_err = float(jnp.max(jnp.abs(out - ref)))
    row_sum_err = float(jnp.max(jnp.abs(jnp.sum(out, axis=-1) - 1.0)))
    assert row_sum_err < 1e-3, f"softmax rows do not sum to 1: {row_sum_err}"
    assert max_err < 1e-2, f"mismatch vs reference: {max_err}"

    print("KERNEL_OK")
</pallas_src>

<mosaic_0001>
module attributes {stable_mosaic.version = 11 : i64} {
  func.func @_decoder_block_kernel(%arg0: i32, %arg1: memref<32x128xf32, #tpu.memory_space<vmem>>, %arg2: memref<32x128xf32, #tpu.memory_space<vmem>>, %arg3: memref<32x32xf32, #tpu.memory_space<vmem>>, %arg4: memref<32x32xf32, #tpu.memory_space<vmem>>, %arg5: memref<128x384xbf16, #tpu.memory_space<vmem>>, %arg6: memref<128x128xbf16, #tpu.memory_space<vmem>>, %arg7: memref<128x128xbf16, #tpu.memory_space<vmem>>, %arg8: memref<128x256xbf16, #tpu.memory_space<vmem>>, %arg9: memref<128x128xbf16, #tpu.memory_space<vmem>>, %arg10: memref<128x256xbf16, #tpu.memory_space<vmem>>, %arg11: memref<256x128xbf16, #tpu.memory_space<vmem>>, %arg12: memref<128x512xbf16, #tpu.memory_space<vmem>>, %arg13: memref<16x512xf32, #tpu.memory_space<vmem>>, %arg14: memref<32x512xf32, #tpu.memory_space<vmem>>, %arg15: memref<32x128xf32, #tpu.memory_space<vmem>>) attributes {dimension_semantics = [#tpu.dimension_semantics<parallel>], iteration_bounds = array<i64: 1>, scalar_prefetch = 0 : i64, scratch_operands = 1 : i64, tpu.core_type = #tpu.core_type<tc>, window_params = [{transform_indices = @transform_0, window_bounds = array<i64: 32, 128>}, {transform_indices = @transform_1, window_bounds = array<i64: 32, 128>}, {pipeline_mode = #tpu.pipeline_mode<synchronous>, transform_indices = @transform_2, window_bounds = array<i64: 32, 32>}, {pipeline_mode = #tpu.pipeline_mode<synchronous>, transform_indices = @transform_3, window_bounds = array<i64: 32, 32>}, {pipeline_mode = #tpu.pipeline_mode<synchronous>, transform_indices = @transform_4, window_bounds = array<i64: 128, 384>}, {pipeline_mode = #tpu.pipeline_mode<synchronous>, transform_indices = @transform_5, window_bounds = array<i64: 128, 128>}, {pipeline_mode = #tpu.pipeline_mode<synchronous>, transform_indices = @transform_6, window_bounds = array<i64: 128, 128>}, {pipeline_mode = #tpu.pipeline_mode<synchronous>, transform_indices = @transform_7, window_bounds = array<i64: 128, 256>}, {pipeline_mode = #tpu.pipeline_mode<synchronous>, transform_indices = @transform_8, window_bounds = array<i64: 128, 128>}, {pipeline_mode = #tpu.pipeline_mode<synchronous>, transform_indices = @transform_9, window_bounds = array<i64: 128, 256>}, {pipeline_mode = #tpu.pipeline_mode<synchronous>, transform_indices = @transform_10, window_bounds = array<i64: 256, 128>}, {pipeline_mode = #tpu.pipeline_mode<synchronous>, transform_indices = @transform_11, window_bounds = array<i64: 128, 512>}, {pipeline_mode = #tpu.pipeline_mode<synchronous>, transform_indices = @transform_12, window_bounds = array<i64: 16, 512>}, {transform_indices = @transform_13, window_bounds = array<i64: 32, 512>}]} {
    %c0 = arith.constant 0 : index
    %c0_0 = arith.constant 0 : index
    %0 = vector.load %arg1[%c0, %c0_0] : memref<32x128xf32, #tpu.memory_space<vmem>>, vector<32x128xf32>
    %c0_1 = arith.constant 0 : index
    %c0_2 = arith.constant 0 : index
    %1 = vector.load %arg2[%c0_1, %c0_2] : memref<32x128xf32, #tpu.memory_space<vmem>>, vector<32x128xf32>
    %2 = arith.truncf %1 : vector<32x128xf32> to vector<32x128xbf16>
    %3 = arith.truncf %0 : vector<32x128xf32> to vector<32x128xbf16>
    %c0_3 = arith.constant 0 : index
    %c0_4 = arith.constant 0 : index
    %4 = vector.load %arg5[%c0_3, %c0_4] : memref<128x384xbf16, #tpu.memory_space<vmem>>, vector<128x384xbf16>
    %cst = arith.constant dense<0.000000e+00> : vector<32x384xf32>
    %5 = tpu.matmul %3, %4, %cst {dimension_numbers = #tpu.dot_dimension_numbers<[1], [0], [0], [1], [0, 0, 1, 1], [], []>} : vector<32x128xbf16>, vector<128x384xbf16>, vector<32x384xf32> -> vector<32x384xf32>
    %c0_5 = arith.constant 0 : index
    %c0_6 = arith.constant 0 : index
    %6 = vector.load %arg13[%c0_5, %c0_6] : memref<16x512xf32, #tpu.memory_space<vmem>>, vector<1x384xf32>
    %7 = vector.broadcast %6 : vector<1x384xf32> to vector<32x384xf32>
    %8 = arith.addf %5, %7 : vector<32x384xf32>
    %9 = vector.extract_strided_slice %8 {offsets = [0, 0], sizes = [32, 128], strides = [1, 1]} : vector<32x384xf32> to vector<32x128xf32>
    %10 = vector.extract_strided_slice %8 {offsets = [0, 128], sizes = [32, 128], strides = [1, 1]} : vector<32x384xf32> to vector<32x128xf32>
    %11 = vector.extract_strided_slice %8 {offsets = [0, 256], sizes = [32, 128], strides = [1, 1]} : vector<32x384xf32> to vector<32x128xf32>
    %c0_7 = arith.constant 0 : index
    %c0_8 = arith.constant 0 : index
    %12 = vector.load %arg3[%c0_7, %c0_8] : memref<32x32xf32, #tpu.memory_space<vmem>>, vector<32x32xf32>
    %13 = vector.extract_strided_slice %9 {offsets = [0, 0], sizes = [32, 32], strides = [1, 1]} : vector<32x128xf32> to vector<32x32xf32>
    %cst_9 = arith.constant 0.176776692 : f32
    %14 = vector.broadcast %cst_9 : f32 to vector<32x32xf32>
    %15 = arith.mulf %13, %14 : vector<32x32xf32>
    %16 = arith.truncf %15 : vector<32x32xf32> to vector<32x32xbf16>
    %17 = vector.extract_strided_slice %10 {offsets = [0, 0], sizes = [32, 32], strides = [1, 1]} : vector<32x128xf32> to vector<32x32xf32>
    %18 = arith.truncf %17 : vector<32x32xf32> to vector<32x32xbf16>
    %19 = vector.extract_strided_slice %11 {offsets = [0, 0], sizes = [32, 32], strides = [1, 1]} : vector<32x128xf32> to vector<32x32xf32>
    %20 = arith.truncf %19 : vector<32x32xf32> to vector<32x32xbf16>
    %cst_10 = arith.constant dense<0.000000e+00> : vector<32x32xf32>
    %21 = tpu.matmul %16, %18, %cst_10 {dimension_numbers = #tpu.dot_dimension_numbers<[1], [1], [0], [0], [0, 0, 1, 0], [], []>} : vector<32x32xbf16>, vector<32x32xbf16>, vector<32x32xf32> -> vector<32x32xf32>
    %22 = arith.addf %21, %12 : vector<32x32xf32>
    %cst_11 = arith.constant dense<0xFF800000> : vector<32xf32>
    %23 = vector.multi_reduction <maximumf>, %22, %cst_11 [1] : vector<32x32xf32> to vector<32xf32>
    %24 = vector.shape_cast %23 : vector<32xf32> to vector<32x1xf32>
    %25 = vector.broadcast %24 : vector<32x1xf32> to vector<32x32xf32>
    %26 = arith.subf %22, %25 : vector<32x32xf32>
    %27 = math.exp %26 : vector<32x32xf32>
    %cst_12 = arith.constant dense<0.000000e+00> : vector<32xf32>
    %28 = vector.multi_reduction <add>, %27, %cst_12 [1] : vector<32x32xf32> to vector<32xf32>
    %29 = vector.shape_cast %28 : vector<32xf32> to vector<32x1xf32>
    %30 = tpu.reciprocal %29 {approx = true} : vector<32x1xf32> -> vector<32x1xf32>
    %31 = vector.broadcast %30 : vector<32x1xf32> to vector<32x32xf32>
    %32 = arith.mulf %27, %31 : vector<32x32xf32>
    %33 = arith.truncf %32 : vector<32x32xf32> to vector<32x32xbf16>
    %cst_13 = arith.constant dense<0.000000e+00> : vector<32x32xf32>
    %34 = tpu.matmul %33, %20, %cst_13 {dimension_numbers = #tpu.dot_dimension_numbers<[1], [0], [0], [1], [0, 0, 1, 1], [], []>} : vector<32x32xbf16>, vector<32x32xbf16>, vector<32x32xf32> -> vector<32x32xf32>
    %c0_14 = arith.constant 0 : index
    %c0_15 = arith.constant 0 : index
    %35 = vector.load %arg15[%c0_14, %c0_15] : memref<32x128xf32, #tpu.memory_space<vmem>>, vector<32x32xf32>
    tpu.vector_store %arg15[%c0_14, %c0_15], %34 {strides = array<i32>} : memref<32x128xf32, #tpu.memory_space<vmem>>, vector<32x32xf32>,
    %36 = vector.extract_strided_slice %9 {offsets = [0, 32], sizes = [32, 32], strides = [1, 1]} : vector<32x128xf32> to vector<32x32xf32>
    %cst_16 = arith.constant 0.176776692 : f32
    %37 = vector.broadcast %cst_16 : f32 to vector<32x32xf32>
    %38 = arith.mulf %36, %37 : vector<32x32xf32>
    %39 = arith.truncf %38 : vector<32x32xf32> to vector<32x32xbf16>
    %40 = vector.extract_strided_slice %10 {offsets = [0, 32], sizes = [32, 32], strides = [1, 1]} : vector<32x128xf32> to vector<32x32xf32>
    %41 = arith.truncf %40 : vector<32x32xf32> to vector<32x32xbf16>
    %42 = vector.extract_strided_slice %11 {offsets = [0, 32], sizes = [32, 32], strides = [1, 1]} : vector<32x128xf32> to vector<32x32xf32>
    %43 = arith.truncf %42 : vector<32x32xf32> to vector<32x32xbf16>
    %cst_17 = arith.constant dense<0.000000e+00> : vector<32x32xf32>
    %44 = tpu.matmul %39, %41, %cst_17 {dimension_numbers = #tpu.dot_dimension_numbers<[1], [1], [0], [0], [0, 0, 1, 0], [], []>} : vector<32x32xbf16>, vector<32x32xbf16>, vector<32x32xf32> -> vector<32x32xf32>
    %45 = arith.addf %44, %12 : vector<32x32xf32>
    %cst_18 = arith.constant dense<0xFF800000> : vector<32xf32>
    %46 = vector.multi_reduction <maximumf>, %45, %cst_18 [1] : vector<32x32xf32> to vector<32xf32>
    %47 = vector.shape_cast %46 : vector<32xf32> to vector<32x1xf32>
    %48 = vector.broadcast %47 : vector<32x1xf32> to vector<32x32xf32>
    %49 = arith.subf %45, %48 : vector<32x32xf32>
    %50 = math.exp %49 : vector<32x32xf32>
    %cst_19 = arith.constant dense<0.000000e+00> : vector<32xf32>
    %51 = vector.multi_reduction <add>, %50, %cst_19 [1] : vector<32x32xf32> to vector<32xf32>
    %52 = vector.shape_cast %51 : vector<32xf32> to vector<32x1xf32>
    %53 = tpu.reciprocal %52 {approx = true} : vector<32x1xf32> -> vector<32x1xf32>
    %54 = vector.broadcast %53 : vector<32x1xf32> to vector<32x32xf32>
    %55 = arith.mulf %50, %54 : vector<32x32xf32>
    %56 = arith.truncf %55 : vector<32x32xf32> to vector<32x32xbf16>
    %cst_20 = arith.constant dense<0.000000e+00> : vector<32x32xf32>
    %57 = tpu.matmul %56, %43, %cst_20 {dimension_numbers = #tpu.dot_dimension_numbers<[1], [0], [0], [1], [0, 0, 1, 1], [], []>} : vector<32x32xbf16>, vector<32x32xbf16>, vector<32x32xf32> -> vector<32x32xf32>
    %c0_21 = arith.constant 0 : index
    %c32 = arith.constant 32 : index
    %58 = vector.load %arg15[%c0_21, %c32] : memref<32x128xf32, #tpu.memory_space<vmem>>, vector<32x32xf32>
    tpu.vector_store %arg15[%c0_21, %c32], %57 {strides = array<i32>} : memref<32x128xf32, #tpu.memory_space<vmem>>, vector<32x32xf32>,
    %59 = vector.extract_strided_slice %9 {offsets = [0, 64], sizes = [32, 32], strides = [1, 1]} : vector<32x128xf32> to vector<32x32xf32>
    %cst_22 = arith.constant 0.176776692 : f32
    %60 = vector.broadcast %cst_22 : f32 to vector<32x32xf32>
    %61 = arith.mulf %59, %60 : vector<32x32xf32>
    %62 = arith.truncf %61 : vector<32x32xf32> to vector<32x32xbf16>
    %63 = vector.extract_strided_slice %10 {offsets = [0, 64], sizes = [32, 32], strides = [1, 1]} : vector<32x128xf32> to vector<32x32xf32>
    %64 = arith.truncf %63 : vector<32x32xf32> to vector<32x32xbf16>
    %65 = vector.extract_strided_slice %11 {offsets = [0, 64], sizes = [32, 32], strides = [1, 1]} : vector<32x128xf32> to vector<32x32xf32>
    %66 = arith.truncf %65 : vector<32x32xf32> to vector<32x32xbf16>
    %cst_23 = arith.constant dense<0.000000e+00> : vector<32x32xf32>
    %67 = tpu.matmul %62, %64, %cst_23 {dimension_numbers = #tpu.dot_dimension_numbers<[1], [1], [0], [0], [0, 0, 1, 0], [], []>} : vector<32x32xbf16>, vector<32x32xbf16>, vector<32x32xf32> -> vector<32x32xf32>
    %68 = arith.addf %67, %12 : vector<32x32xf32>
    %cst_24 = arith.constant dense<0xFF800000> : vector<32xf32>
    %69 = vector.multi_reduction <maximumf>, %68, %cst_24 [1] : vector<32x32xf32> to vector<32xf32>
    %70 = vector.shape_cast %69 : vector<32xf32> to vector<32x1xf32>
    %71 = vector.broadcast %70 : vector<32x1xf32> to vector<32x32xf32>
    %72 = arith.subf %68, %71 : vector<32x32xf32>
    %73 = math.exp %72 : vector<32x32xf32>
    %cst_25 = arith.constant dense<0.000000e+00> : vector<32xf32>
    %74 = vector.multi_reduction <add>, %73, %cst_25 [1] : vector<32x32xf32> to vector<32xf32>
    %75 = vector.shape_cast %74 : vector<32xf32> to vector<32x1xf32>
    %76 = tpu.reciprocal %75 {approx = true} : vector<32x1xf32> -> vector<32x1xf32>
    %77 = vector.broadcast %76 : vector<32x1xf32> to vector<32x32xf32>
    %78 = arith.mulf %73, %77 : vector<32x32xf32>
    %79 = arith.truncf %78 : vector<32x32xf32> to vector<32x32xbf16>
    %cst_26 = arith.constant dense<0.000000e+00> : vector<32x32xf32>
    %80 = tpu.matmul %79, %66, %cst_26 {dimension_numbers = #tpu.dot_dimension_numbers<[1], [0], [0], [1], [0, 0, 1, 1], [], []>} : vector<32x32xbf16>, vector<32x32xbf16>, vector<32x32xf32> -> vector<32x32xf32>
    %c0_27 = arith.constant 0 : index
    %c64 = arith.constant 64 : index
    %81 = vector.load %arg15[%c0_27, %c64] : memref<32x128xf32, #tpu.memory_space<vmem>>, vector<32x32xf32>
    tpu.vector_store %arg15[%c0_27, %c64], %80 {strides = array<i32>} : memref<32x128xf32, #tpu.memory_space<vmem>>, vector<32x32xf32>,
    %82 = vector.extract_strided_slice %9 {offsets = [0, 96], sizes = [32, 32], strides = [1, 1]} : vector<32x128xf32> to vector<32x32xf32>
    %cst_28 = arith.constant 0.176776692 : f32
    %83 = vector.broadcast %cst_28 : f32 to vector<32x32xf32>
    %84 = arith.mulf %82, %83 : vector<32x32xf32>
    %85 = arith.truncf %84 : vector<32x32xf32> to vector<32x32xbf16>
    %86 = vector.extract_strided_slice %10 {offsets = [0, 96], sizes = [32, 32], strides = [1, 1]} : vector<32x128xf32> to vector<32x32xf32>
    %87 = arith.truncf %86 : vector<32x32xf32> to vector<32x32xbf16>
    %88 = vector.extract_strided_slice %11 {offsets = [0, 96], sizes = [32, 32], strides = [1, 1]} : vector<32x128xf32> to vector<32x32xf32>
    %89 = arith.truncf %88 : vector<32x32xf32> to vector<32x32xbf16>
    %cst_29 = arith.constant dense<0.000000e+00> : vector<32x32xf32>
    %90 = tpu.matmul %85, %87, %cst_29 {dimension_numbers = #tpu.dot_dimension_numbers<[1], [1], [0], [0], [0, 0, 1, 0], [], []>} : vector<32x32xbf16>, vector<32x32xbf16>, vector<32x32xf32> -> vector<32x32xf32>
    %91 = arith.addf %90, %12 : vector<32x32xf32>
    %cst_30 = arith.constant dense<0xFF800000> : vector<32xf32>
    %92 = vector.multi_reduction <maximumf>, %91, %cst_30 [1] : vector<32x32xf32> to vector<32xf32>
    %93 = vector.shape_cast %92 : vector<32xf32> to vector<32x1xf32>
    %94 = vector.broadcast %93 : vector<32x1xf32> to vector<32x32xf32>
    %95 = arith.subf %91, %94 : vector<32x32xf32>
    %96 = math.exp %95 : vector<32x32xf32>
    %cst_31 = arith.constant dense<0.000000e+00> : vector<32xf32>
    %97 = vector.multi_reduction <add>, %96, %cst_31 [1] : vector<32x32xf32> to vector<32xf32>
    %98 = vector.shape_cast %97 : vector<32xf32> to vector<32x1xf32>
    %99 = tpu.reciprocal %98 {approx = true} : vector<32x1xf32> -> vector<32x1xf32>
    %100 = vector.broadcast %99 : vector<32x1xf32> to vector<32x32xf32>
    %101 = arith.mulf %96, %100 : vector<32x32xf32>
    %102 = arith.truncf %101 : vector<32x32xf32> to vector<32x32xbf16>
    %cst_32 = arith.constant dense<0.000000e+00> : vector<32x32xf32>
    %103 = tpu.matmul %102, %89, %cst_32 {dimension_numbers = #tpu.dot_dimension_numbers<[1], [0], [0], [1], [0, 0, 1, 1], [], []>} : vector<32x32xbf16>, vector<32x32xbf16>, vector<32x32xf32> -> vector<32x32xf32>
    %c0_33 = arith.constant 0 : index
    %c96 = arith.constant 96 : index
    %104 = vector.load %arg15[%c0_33, %c96] : memref<32x128xf32, #tpu.memory_space<vmem>>, vector<32x32xf32>
    tpu.vector_store %arg15[%c0_33, %c96], %103 {strides = array<i32>} : memref<32x128xf32, #tpu.memory_space<vmem>>, vector<32x32xf32>,
    %c0_34 = arith.constant 0 : index
    %c0_35 = arith.constant 0 : index
    %105 = vector.load %arg15[%c0_34, %c0_35] : memref<32x128xf32, #tpu.memory_space<vmem>>, vector<32x128xf32>
    %106 = arith.truncf %105 : vector<32x128xf32> to vector<32x128xbf16>
    %c0_36 = arith.constant 0 : index
    %c0_37 = arith.constant 0 : index
    %107 = vector.load %arg6[%c0_36, %c0_37] : memref<128x128xbf16, #tpu.memory_space<vmem>>, vector<128x128xbf16>
    %cst_38 = arith.constant dense<0.000000e+00> : vector<32x128xf32>
    %108 = tpu.matmul %106, %107, %cst_38 {dimension_numbers = #tpu.dot_dimension_numbers<[1], [0], [0], [1], [0, 0, 1, 1], [], []>} : vector<32x128xbf16>, vector<128x128xbf16>, vector<32x128xf32> -> vector<32x128xf32>
    %c1 = arith.constant 1 : index
    %c0_39 = arith.constant 0 : index
    %109 = vector.load %arg13[%c1, %c0_39] : memref<16x512xf32, #tpu.memory_space<vmem>>, vector<1x128xf32>
    %110 = vector.broadcast %109 : vector<1x128xf32> to vector<32x128xf32>
    %111 = arith.addf %108, %110 : vector<32x128xf32>
    %112 = arith.addf %0, %111 : vector<32x128xf32>
    %c2 = arith.constant 2 : index
    %c0_40 = arith.constant 0 : index
    %113 = vector.load %arg13[%c2, %c0_40] : memref<16x512xf32, #tpu.memory_space<vmem>>, vector<1x128xf32>
    %c3 = arith.constant 3 : index
    %c0_41 = arith.constant 0 : index
    %114 = vector.load %arg13[%c3, %c0_41] : memref<16x512xf32, #tpu.memory_space<vmem>>, vector<1x128xf32>
    %cst_42 = arith.constant dense<0.000000e+00> : vector<32xf32>
    %115 = vector.multi_reduction <add>, %112, %cst_42 [1] : vector<32x128xf32> to vector<32xf32>
    %116 = vector.shape_cast %115 : vector<32xf32> to vector<32x1xf32>
    %cst_43 = arith.constant 1.280000e+02 : f32
    %117 = vector.broadcast %cst_43 : f32 to vector<32x1xf32>
    %118 = arith.divf %116, %117 : vector<32x1xf32>
    %119 = vector.broadcast %118 : vector<32x1xf32> to vector<32x128xf32>
    %120 = arith.subf %112, %119 : vector<32x128xf32>
    %121 = arith.mulf %120, %120 : vector<32x128xf32>
    %cst_44 = arith.constant dense<0.000000e+00> : vector<32xf32>
    %122 = vector.multi_reduction <add>, %121, %cst_44 [1] : vector<32x128xf32> to vector<32xf32>
    %123 = vector.shape_cast %122 : vector<32xf32> to vector<32x1xf32>
    %cst_45 = arith.constant 1.280000e+02 : f32
    %124 = vector.broadcast %cst_45 : f32 to vector<32x1xf32>
    %125 = arith.divf %123, %124 : vector<32x1xf32>
    %cst_46 = arith.constant 9.99999974E-6 : f32
    %126 = vector.broadcast %cst_46 : f32 to vector<32x1xf32>
    %127 = arith.addf %125, %126 : vector<32x1xf32>
    %128 = math.rsqrt %127 : vector<32x1xf32>
    %129 = vector.broadcast %128 : vector<32x1xf32> to vector<32x128xf32>
    %130 = arith.mulf %120, %129 : vector<32x128xf32>
    %131 = vector.broadcast %113 : vector<1x128xf32> to vector<32x128xf32>
    %132 = arith.mulf %130, %131 : vector<32x128xf32>
    %133 = vector.broadcast %114 : vector<1x128xf32> to vector<32x128xf32>
    %134 = arith.addf %132, %133 : vector<32x128xf32>
    %135 = arith.truncf %134 : vector<32x128xf32> to vector<32x128xbf16>
    %c0_47 = arith.constant 0 : index
    %c0_48 = arith.constant 0 : index
    %136 = vector.load %arg7[%c0_47, %c0_48] : memref<128x128xbf16, #tpu.memory_space<vmem>>, vector<128x128xbf16>
    %cst_49 = arith.constant dense<0.000000e+00> : vector<32x128xf32>
    %137 = tpu.matmul %135, %136, %cst_49 {dimension_numbers = #tpu.dot_dimension_numbers<[1], [0], [0], [1], [0, 0, 1, 1], [], []>} : vector<32x128xbf16>, vector<128x128xbf16>, vector<32x128xf32> -> vector<32x128xf32>
    %c4 = arith.constant 4 : index
    %c0_50 = arith.constant 0 : index
    %138 = vector.load %arg13[%c4, %c0_50] : memref<16x512xf32, #tpu.memory_space<vmem>>, vector<1x128xf32>
    %139 = vector.broadcast %138 : vector<1x128xf32> to vector<32x128xf32>
    %140 = arith.addf %137, %139 : vector<32x128xf32>
    %c0_51 = arith.constant 0 : index
    %c0_52 = arith.constant 0 : index
    %141 = vector.load %arg8[%c0_51, %c0_52] : memref<128x256xbf16, #tpu.memory_space<vmem>>, vector<128x256xbf16>
    %cst_53 = arith.constant dense<0.000000e+00> : vector<32x256xf32>
    %142 = tpu.matmul %2, %141, %cst_53 {dimension_numbers = #tpu.dot_dimension_numbers<[1], [0], [0], [1], [0, 0, 1, 1], [], []>} : vector<32x128xbf16>, vector<128x256xbf16>, vector<32x256xf32> -> vector<32x256xf32>
    %c5 = arith.constant 5 : index
    %c0_54 = arith.constant 0 : index
    %143 = vector.load %arg13[%c5, %c0_54] : memref<16x512xf32, #tpu.memory_space<vmem>>, vector<1x256xf32>
    %144 = vector.broadcast %143 : vector<1x256xf32> to vector<32x256xf32>
    %145 = arith.addf %142, %144 : vector<32x256xf32>
    %146 = vector.extract_strided_slice %145 {offsets = [0, 0], sizes = [32, 128], strides = [1, 1]} : vector<32x256xf32> to vector<32x128xf32>
    %147 = vector.extract_strided_slice %145 {offsets = [0, 128], sizes = [32, 128], strides = [1, 1]} : vector<32x256xf32> to vector<32x128xf32>
    %c0_55 = arith.constant 0 : index
    %c0_56 = arith.constant 0 : index
    %148 = vector.load %arg4[%c0_55, %c0_56] : memref<32x32xf32, #tpu.memory_space<vmem>>, vector<32x32xf32>
    %149 = vector.extract_strided_slice %140 {offsets = [0, 0], sizes = [32, 32], strides = [1, 1]} : vector<32x128xf32> to vector<32x32xf32>
    %cst_57 = arith.constant 0.176776692 : f32
    %150 = vector.broadcast %cst_57 : f32 to vector<32x32xf32>
    %151 = arith.mulf %149, %150 : vector<32x32xf32>
    %152 = arith.truncf %151 : vector<32x32xf32> to vector<32x32xbf16>
    %153 = vector.extract_strided_slice %146 {offsets = [0, 0], sizes = [32, 32], strides = [1, 1]} : vector<32x128xf32> to vector<32x32xf32>
    %154 = arith.truncf %153 : vector<32x32xf32> to vector<32x32xbf16>
    %155 = vector.extract_strided_slice %147 {offsets = [0, 0], sizes = [32, 32], strides = [1, 1]} : vector<32x128xf32> to vector<32x32xf32>
    %156 = arith.truncf %155 : vector<32x32xf32> to vector<32x32xbf16>
    %cst_58 = arith.constant dense<0.000000e+00> : vector<32x32xf32>
    %157 = tpu.matmul %152, %154, %cst_58 {dimension_numbers = #tpu.dot_dimension_numbers<[1], [1], [0], [0], [0, 0, 1, 0], [], []>} : vector<32x32xbf16>, vector<32x32xbf16>, vector<32x32xf32> -> vector<32x32xf32>
    %158 = arith.addf %157, %148 : vector<32x32xf32>
    %cst_59 = arith.constant dense<0xFF800000> : vector<32xf32>
    %159 = vector.multi_reduction <maximumf>, %158, %cst_59 [1] : vector<32x32xf32> to vector<32xf32>
    %160 = vector.shape_cast %159 : vector<32xf32> to vector<32x1xf32>
    %161 = vector.broadcast %160 : vector<32x1xf32> to vector<32x32xf32>
    %162 = arith.subf %158, %161 : vector<32x32xf32>
    %163 = math.exp %162 : vector<32x32xf32>
    %cst_60 = arith.constant dense<0.000000e+00> : vector<32xf32>
    %164 = vector.multi_reduction <add>, %163, %cst_60 [1] : vector<32x32xf32> to vector<32xf32>
    %165 = vector.shape_cast %164 : vector<32xf32> to vector<32x1xf32>
    %166 = tpu.reciprocal %165 {approx = true} : vector<32x1xf32> -> vector<32x1xf32>
    %167 = vector.broadcast %166 : vector<32x1xf32> to vector<32x32xf32>
    %168 = arith.mulf %163, %167 : vector<32x32xf32>
    %169 = arith.truncf %168 : vector<32x32xf32> to vector<32x32xbf16>
    %cst_61 = arith.constant dense<0.000000e+00> : vector<32x32xf32>
    %170 = tpu.matmul %169, %156, %cst_61 {dimension_numbers = #tpu.dot_dimension_numbers<[1], [0], [0], [1], [0, 0, 1, 1], [], []>} : vector<32x32xbf16>, vector<32x32xbf16>, vector<32x32xf32> -> vector<32x32xf32>
    %c0_62 = arith.constant 0 : index
    %c0_63 = arith.constant 0 : index
    %171 = vector.load %arg15[%c0_62, %c0_63] : memref<32x128xf32, #tpu.memory_space<vmem>>, vector<32x32xf32>
    tpu.vector_store %arg15[%c0_62, %c0_63], %170 {strides = array<i32>} : memref<32x128xf32, #tpu.memory_space<vmem>>, vector<32x32xf32>,
    %172 = vector.extract_strided_slice %140 {offsets = [0, 32], sizes = [32, 32], strides = [1, 1]} : vector<32x128xf32> to vector<32x32xf32>
    %cst_64 = arith.constant 0.176776692 : f32
    %173 = vector.broadcast %cst_64 : f32 to vector<32x32xf32>
    %174 = arith.mulf %172, %173 : vector<32x32xf32>
    %175 = arith.truncf %174 : vector<32x32xf32> to vector<32x32xbf16>
    %176 = vector.extract_strided_slice %146 {offsets = [0, 32], sizes = [32, 32], strides = [1, 1]} : vector<32x128xf32> to vector<32x32xf32>
    %177 = arith.truncf %176 : vector<32x32xf32> to vector<32x32xbf16>
    %178 = vector.extract_strided_slice %147 {offsets = [0, 32], sizes = [32, 32], strides = [1, 1]} : vector<32x128xf32> to vector<32x32xf32>
    %179 = arith.truncf %178 : vector<32x32xf32> to vector<32x32xbf16>
    %cst_65 = arith.constant dense<0.000000e+00> : vector<32x32xf32>
    %180 = tpu.matmul %175, %177, %cst_65 {dimension_numbers = #tpu.dot_dimension_numbers<[1], [1], [0], [0], [0, 0, 1, 0], [], []>} : vector<32x32xbf16>, vector<32x32xbf16>, vector<32x32xf32> -> vector<32x32xf32>
    %181 = arith.addf %180, %148 : vector<32x32xf32>
    %cst_66 = arith.constant dense<0xFF800000> : vector<32xf32>
    %182 = vector.multi_reduction <maximumf>, %181, %cst_66 [1] : vector<32x32xf32> to vector<32xf32>
    %183 = vector.shape_cast %182 : vector<32xf32> to vector<32x1xf32>
    %184 = vector.broadcast %183 : vector<32x1xf32> to vector<32x32xf32>
    %185 = arith.subf %181, %184 : vector<32x32xf32>
    %186 = math.exp %185 : vector<32x32xf32>
    %cst_67 = arith.constant dense<0.000000e+00> : vector<32xf32>
    %187 = vector.multi_reduction <add>, %186, %cst_67 [1] : vector<32x32xf32> to vector<32xf32>
    %188 = vector.shape_cast %187 : vector<32xf32> to vector<32x1xf32>
    %189 = tpu.reciprocal %188 {approx = true} : vector<32x1xf32> -> vector<32x1xf32>
    %190 = vector.broadcast %189 : vector<32x1xf32> to vector<32x32xf32>
    %191 = arith.mulf %186, %190 : vector<32x32xf32>
    %192 = arith.truncf %191 : vector<32x32xf32> to vector<32x32xbf16>
    %cst_68 = arith.constant dense<0.000000e+00> : vector<32x32xf32>
    %193 = tpu.matmul %192, %179, %cst_68 {dimension_numbers = #tpu.dot_dimension_numbers<[1], [0], [0], [1], [0, 0, 1, 1], [], []>} : vector<32x32xbf16>, vector<32x32xbf16>, vector<32x32xf32> -> vector<32x32xf32>
    %c0_69 = arith.constant 0 : index
    %c32_70 = arith.constant 32 : index
    %194 = vector.load %arg15[%c0_69, %c32_70] : memref<32x128xf32, #tpu.memory_space<vmem>>, vector<32x32xf32>
    tpu.vector_store %arg15[%c0_69, %c32_70], %193 {strides = array<i32>} : memref<32x128xf32, #tpu.memory_space<vmem>>, vector<32x32xf32>,
    %195 = vector.extract_strided_slice %140 {offsets = [0, 64], sizes = [32, 32], strides = [1, 1]} : vector<32x128xf32> to vector<32x32xf32>
    %cst_71 = arith.constant 0.176776692 : f32
    %196 = vector.broadcast %cst_71 : f32 to vector<32x32xf32>
    %197 = arith.mulf %195, %196 : vector<32x32xf32>
    %198 = arith.truncf %197 : vector<32x32xf32> to vector<32x32xbf16>
    %199 = vector.extract_strided_slice %146 {offsets = [0, 64], sizes = [32, 32], strides = [1, 1]} : vector<32x128xf32> to vector<32x32xf32>
    %200 = arith.truncf %199 : vector<32x32xf32> to vector<32x32xbf16>
    %201 = vector.extract_strided_slice %147 {offsets = [0, 64], sizes = [32, 32], strides = [1, 1]} : vector<32x128xf32> to vector<32x32xf32>
    %202 = arith.truncf %201 : vector<32x32xf32> to vector<32x32xbf16>
    %cst_72 = arith.constant dense<0.000000e+00> : vector<32x32xf32>
    %203 = tpu.matmul %198, %200, %cst_72 {dimension_numbers = #tpu.dot_dimension_numbers<[1], [1], [0], [0], [0, 0, 1, 0], [], []>} : vector<32x32xbf16>, vector<32x32xbf16>, vector<32x32xf32> -> vector<32x32xf32>
    %204 = arith.addf %203, %148 : vector<32x32xf32>
    %cst_73 = arith.constant dense<0xFF800000> : vector<32xf32>
    %205 = vector.multi_reduction <maximumf>, %204, %cst_73 [1] : vector<32x32xf32> to vector<32xf32>
    %206 = vector.shape_cast %205 : vector<32xf32> to vector<32x1xf32>
    %207 = vector.broadcast %206 : vector<32x1xf32> to vector<32x32xf32>
    %208 = arith.subf %204, %207 : vector<32x32xf32>
    %209 = math.exp %208 : vector<32x32xf32>
    %cst_74 = arith.constant dense<0.000000e+00> : vector<32xf32>
    %210 = vector.multi_reduction <add>, %209, %cst_74 [1] : vector<32x32xf32> to vector<32xf32>
    %211 = vector.shape_cast %210 : vector<32xf32> to vector<32x1xf32>
    %212 = tpu.reciprocal %211 {approx = true} : vector<32x1xf32> -> vector<32x1xf32>
    %213 = vector.broadcast %212 : vector<32x1xf32> to vector<32x32xf32>
    %214 = arith.mulf %209, %213 : vector<32x32xf32>
    %215 = arith.truncf %214 : vector<32x32xf32> to vector<32x32xbf16>
    %cst_75 = arith.constant dense<0.000000e+00> : vector<32x32xf32>
    %216 = tpu.matmul %215, %202, %cst_75 {dimension_numbers = #tpu.dot_dimension_numbers<[1], [0], [0], [1], [0, 0, 1, 1], [], []>} : vector<32x32xbf16>, vector<32x32xbf16>, vector<32x32xf32> -> vector<32x32xf32>
    %c0_76 = arith.constant 0 : index
    %c64_77 = arith.constant 64 : index
    %217 = vector.load %arg15[%c0_76, %c64_77] : memref<32x128xf32, #tpu.memory_space<vmem>>, vector<32x32xf32>
    tpu.vector_store %arg15[%c0_76, %c64_77], %216 {strides = array<i32>} : memref<32x128xf32, #tpu.memory_space<vmem>>, vector<32x32xf32>,
    %218 = vector.extract_strided_slice %140 {offsets = [0, 96], sizes = [32, 32], strides = [1, 1]} : vector<32x128xf32> to vector<32x32xf32>
    %cst_78 = arith.constant 0.176776692 : f32
    %219 = vector.broadcast %cst_78 : f32 to vector<32x32xf32>
    %220 = arith.mulf %218, %219 : vector<32x32xf32>
    %221 = arith.truncf %220 : vector<32x32xf32> to vector<32x32xbf16>
    %222 = vector.extract_strided_slice %146 {offsets = [0, 96], sizes = [32, 32], strides = [1, 1]} : vector<32x128xf32> to vector<32x32xf32>
    %223 = arith.truncf %222 : vector<32x32xf32> to vector<32x32xbf16>
    %224 = vector.extract_strided_slice %147 {offsets = [0, 96], sizes = [32, 32], strides = [1, 1]} : vector<32x128xf32> to vector<32x32xf32>
    %225 = arith.truncf %224 : vector<32x32xf32> to vector<32x32xbf16>
    %cst_79 = arith.constant dense<0.000000e+00> : vector<32x32xf32>
    %226 = tpu.matmul %221, %223, %cst_79 {dimension_numbers = #tpu.dot_dimension_numbers<[1], [1], [0], [0], [0, 0, 1, 0], [], []>} : vector<32x32xbf16>, vector<32x32xbf16>, vector<32x32xf32> -> vector<32x32xf32>
    %227 = arith.addf %226, %148 : vector<32x32xf32>
    %cst_80 = arith.constant dense<0xFF800000> : vector<32xf32>
    %228 = vector.multi_reduction <maximumf>, %227, %cst_80 [1] : vector<32x32xf32> to vector<32xf32>
    %229 = vector.shape_cast %228 : vector<32xf32> to vector<32x1xf32>
    %230 = vector.broadcast %229 : vector<32x1xf32> to vector<32x32xf32>
    %231 = arith.subf %227, %230 : vector<32x32xf32>
    %232 = math.exp %231 : vector<32x32xf32>
    %cst_81 = arith.constant dense<0.000000e+00> : vector<32xf32>
    %233 = vector.multi_reduction <add>, %232, %cst_81 [1] : vector<32x32xf32> to vector<32xf32>
    %234 = vector.shape_cast %233 : vector<32xf32> to vector<32x1xf32>
    %235 = tpu.reciprocal %234 {approx = true} : vector<32x1xf32> -> vector<32x1xf32>
    %236 = vector.broadcast %235 : vector<32x1xf32> to vector<32x32xf32>
    %237 = arith.mulf %232, %236 : vector<32x32xf32>
    %238 = arith.truncf %237 : vector<32x32xf32> to vector<32x32xbf16>
    %cst_82 = arith.constant dense<0.000000e+00> : vector<32x32xf32>
    %239 = tpu.matmul %238, %225, %cst_82 {dimension_numbers = #tpu.dot_dimension_numbers<[1], [0], [0], [1], [0, 0, 1, 1], [], []>} : vector<32x32xbf16>, vector<32x32xbf16>, vector<32x32xf32> -> vector<32x32xf32>
    %c0_83 = arith.constant 0 : index
    %c96_84 = arith.constant 96 : index
    %240 = vector.load %arg15[%c0_83, %c96_84] : memref<32x128xf32, #tpu.memory_space<vmem>>, vector<32x32xf32>
    tpu.vector_store %arg15[%c0_83, %c96_84], %239 {strides = array<i32>} : memref<32x128xf32, #tpu.memory_space<vmem>>, vector<32x32xf32>,
    %c0_85 = arith.constant 0 : index
    %c0_86 = arith.constant 0 : index
    %241 = vector.load %arg15[%c0_85, %c0_86] : memref<32x128xf32, #tpu.memory_space<vmem>>, vector<32x128xf32>
    %242 = arith.truncf %241 : vector<32x128xf32> to vector<32x128xbf16>
    %c0_87 = arith.constant 0 : index
    %c0_88 = arith.constant 0 : index
    %243 = vector.load %arg9[%c0_87, %c0_88] : memref<128x128xbf16, #tpu.memory_space<vmem>>, vector<128x128xbf16>
    %cst_89 = arith.constant dense<0.000000e+00> : vector<32x128xf32>
    %244 = tpu.matmul %242, %243, %cst_89 {dimension_numbers = #tpu.dot_dimension_numbers<[1], [0], [0], [1], [0, 0, 1, 1], [], []>} : vector<32x128xbf16>, vector<128x128xbf16>, vector<32x128xf32> -> vector<32x128xf32>
    %c6 = arith.constant 6 : index
    %c0_90 = arith.constant 0 : index
    %245 = vector.load %arg13[%c6, %c0_90] : memref<16x512xf32, #tpu.memory_space<vmem>>, vector<1x128xf32>
    %246 = vector.broadcast %245 : vector<1x128xf32> to vector<32x128xf32>
    %247 = arith.addf %244, %246 : vector<32x128xf32>
    %248 = arith.addf %134, %247 : vector<32x128xf32>
    %c7 = arith.constant 7 : index
    %c0_91 = arith.constant 0 : index
    %249 = vector.load %arg13[%c7, %c0_91] : memref<16x512xf32, #tpu.memory_space<vmem>>, vector<1x128xf32>
    %c8 = arith.constant 8 : index
    %c0_92 = arith.constant 0 : index
    %250 = vector.load %arg13[%c8, %c0_92] : memref<16x512xf32, #tpu.memory_space<vmem>>, vector<1x128xf32>
    %cst_93 = arith.constant dense<0.000000e+00> : vector<32xf32>
    %251 = vector.multi_reduction <add>, %248, %cst_93 [1] : vector<32x128xf32> to vector<32xf32>
    %252 = vector.shape_cast %251 : vector<32xf32> to vector<32x1xf32>
    %cst_94 = arith.constant 1.280000e+02 : f32
    %253 = vector.broadcast %cst_94 : f32 to vector<32x1xf32>
    %254 = arith.divf %252, %253 : vector<32x1xf32>
    %255 = vector.broadcast %254 : vector<32x1xf32> to vector<32x128xf32>
    %256 = arith.subf %248, %255 : vector<32x128xf32>
    %257 = arith.mulf %256, %256 : vector<32x128xf32>
    %cst_95 = arith.constant dense<0.000000e+00> : vector<32xf32>
    %258 = vector.multi_reduction <add>, %257, %cst_95 [1] : vector<32x128xf32> to vector<32xf32>
    %259 = vector.shape_cast %258 : vector<32xf32> to vector<32x1xf32>
    %cst_96 = arith.constant 1.280000e+02 : f32
    %260 = vector.broadcast %cst_96 : f32 to vector<32x1xf32>
    %261 = arith.divf %259, %260 : vector<32x1xf32>
    %cst_97 = arith.constant 9.99999974E-6 : f32
    %262 = vector.broadcast %cst_97 : f32 to vector<32x1xf32>
    %263 = arith.addf %261, %262 : vector<32x1xf32>
    %264 = math.rsqrt %263 : vector<32x1xf32>
    %265 = vector.broadcast %264 : vector<32x1xf32> to vector<32x128xf32>
    %266 = arith.mulf %256, %265 : vector<32x128xf32>
    %267 = vector.broadcast %249 : vector<1x128xf32> to vector<32x128xf32>
    %268 = arith.mulf %266, %267 : vector<32x128xf32>
    %269 = vector.broadcast %250 : vector<1x128xf32> to vector<32x128xf32>
    %270 = arith.addf %268, %269 : vector<32x128xf32>
    %271 = arith.truncf %270 : vector<32x128xf32> to vector<32x128xbf16>
    %c0_98 = arith.constant 0 : index
    %c0_99 = arith.constant 0 : index
    %272 = vector.load %arg10[%c0_98, %c0_99] : memref<128x256xbf16, #tpu.memory_space<vmem>>, vector<128x256xbf16>
    %cst_100 = arith.constant dense<0.000000e+00> : vector<32x256xf32>
    %273 = tpu.matmul %271, %272, %cst_100 {dimension_numbers = #tpu.dot_dimension_numbers<[1], [0], [0], [1], [0, 0, 1, 1], [], []>} : vector<32x128xbf16>, vector<128x256xbf16>, vector<32x256xf32> -> vector<32x256xf32>
    %c9 = arith.constant 9 : index
    %c0_101 = arith.constant 0 : index
    %274 = vector.load %arg13[%c9, %c0_101] : memref<16x512xf32, #tpu.memory_space<vmem>>, vector<1x256xf32>
    %275 = vector.broadcast %274 : vector<1x256xf32> to vector<32x256xf32>
    %276 = arith.addf %273, %275 : vector<32x256xf32>
    %cst_102 = arith.constant 0.000000e+00 : f32
    %277 = vector.broadcast %cst_102 : f32 to vector<32x256xf32>
    %278 = arith.maximumf %276, %277 : vector<32x256xf32>
    %279 = arith.truncf %278 : vector<32x256xf32> to vector<32x256xbf16>
    %c0_103 = arith.constant 0 : index
    %c0_104 = arith.constant 0 : index
    %280 = vector.load %arg11[%c0_103, %c0_104] : memref<256x128xbf16, #tpu.memory_space<vmem>>, vector<256x128xbf16>
    %cst_105 = arith.constant dense<0.000000e+00> : vector<32x128xf32>
    %281 = tpu.matmul %279, %280, %cst_105 {dimension_numbers = #tpu.dot_dimension_numbers<[1], [0], [0], [1], [0, 0, 1, 1], [], []>} : vector<32x256xbf16>, vector<256x128xbf16>, vector<32x128xf32> -> vector<32x128xf32>
    %282 = arith.addf %281, %270 : vector<32x128xf32>
    %c10 = arith.constant 10 : index
    %c0_106 = arith.constant 0 : index
    %283 = vector.load %arg13[%c10, %c0_106] : memref<16x512xf32, #tpu.memory_space<vmem>>, vector<1x128xf32>
    %c11 = arith.constant 11 : index
    %c0_107 = arith.constant 0 : index
    %284 = vector.load %arg13[%c11, %c0_107] : memref<16x512xf32, #tpu.memory_space<vmem>>, vector<1x128xf32>
    %cst_108 = arith.constant dense<0.000000e+00> : vector<32xf32>
    %285 = vector.multi_reduction <add>, %282, %cst_108 [1] : vector<32x128xf32> to vector<32xf32>
    %286 = vector.shape_cast %285 : vector<32xf32> to vector<32x1xf32>
    %cst_109 = arith.constant 1.280000e+02 : f32
    %287 = vector.broadcast %cst_109 : f32 to vector<32x1xf32>
    %288 = arith.divf %286, %287 : vector<32x1xf32>
    %289 = vector.broadcast %288 : vector<32x1xf32> to vector<32x128xf32>
    %290 = arith.subf %282, %289 : vector<32x128xf32>
    %291 = arith.mulf %290, %290 : vector<32x128xf32>
    %cst_110 = arith.constant dense<0.000000e+00> : vector<32xf32>
    %292 = vector.multi_reduction <add>, %291, %cst_110 [1] : vector<32x128xf32> to vector<32xf32>
    %293 = vector.shape_cast %292 : vector<32xf32> to vector<32x1xf32>
    %cst_111 = arith.constant 1.280000e+02 : f32
    %294 = vector.broadcast %cst_111 : f32 to vector<32x1xf32>
    %295 = arith.divf %293, %294 : vector<32x1xf32>
    %cst_112 = arith.constant 9.99999974E-6 : f32
    %296 = vector.broadcast %cst_112 : f32 to vector<32x1xf32>
    %297 = arith.addf %295, %296 : vector<32x1xf32>
    %298 = math.rsqrt %297 : vector<32x1xf32>
    %299 = vector.broadcast %298 : vector<32x1xf32> to vector<32x128xf32>
    %300 = arith.mulf %290, %299 : vector<32x128xf32>
    %301 = vector.broadcast %283 : vector<1x128xf32> to vector<32x128xf32>
    %302 = arith.mulf %300, %301 : vector<32x128xf32>
    %303 = vector.broadcast %284 : vector<1x128xf32> to vector<32x128xf32>
    %304 = arith.addf %302, %303 : vector<32x128xf32>
    %305 = arith.truncf %304 : vector<32x128xf32> to vector<32x128xbf16>
    %c0_113 = arith.constant 0 : index
    %c0_114 = arith.constant 0 : index
    %306 = vector.load %arg12[%c0_113, %c0_114] : memref<128x512xbf16, #tpu.memory_space<vmem>>, vector<128x512xbf16>
    %cst_115 = arith.constant dense<0.000000e+00> : vector<32x512xf32>
    %307 = tpu.matmul %305, %306, %cst_115 {dimension_numbers = #tpu.dot_dimension_numbers<[1], [0], [0], [1], [0, 0, 1, 1], [], []>} : vector<32x128xbf16>, vector<128x512xbf16>, vector<32x512xf32> -> vector<32x512xf32>
    %c12 = arith.constant 12 : index
    %c0_116 = arith.constant 0 : index
    %308 = vector.load %arg13[%c12, %c0_116] : memref<16x512xf32, #tpu.memory_space<vmem>>, vector<1x512xf32>
    %309 = vector.broadcast %308 : vector<1x512xf32> to vector<32x512xf32>
    %310 = arith.addf %307, %309 : vector<32x512xf32>
    %cst_117 = arith.constant dense<0xFF800000> : vector<32xf32>
    %311 = vector.multi_reduction <maximumf>, %310, %cst_117 [1] : vector<32x512xf32> to vector<32xf32>
    %312 = vector.shape_cast %311 : vector<32xf32> to vector<32x1xf32>
    %313 = vector.broadcast %312 : vector<32x1xf32> to vector<32x512xf32>
    %314 = arith.subf %310, %313 : vector<32x512xf32>
    %315 = math.exp %314 : vector<32x512xf32>
    %cst_118 = arith.constant dense<0.000000e+00> : vector<32xf32>
    %316 = vector.multi_reduction <add>, %315, %cst_118 [1] : vector<32x512xf32> to vector<32xf32>
    %317 = vector.shape_cast %316 : vector<32xf32> to vector<32x1xf32>
    %318 = vector.broadcast %317 : vector<32x1xf32> to vector<32x512xf32>
    %319 = arith.divf %315, %318 : vector<32x512xf32>
    %c0_119 = arith.constant 0 : index
    %c0_120 = arith.constant 0 : index
    %320 = vector.load %arg14[%c0_119, %c0_120] : memref<32x512xf32, #tpu.memory_space<vmem>>, vector<32x512xf32>
    tpu.vector_store %arg14[%c0_119, %c0_120], %319 {strides = array<i32>} : memref<32x512xf32, #tpu.memory_space<vmem>>, vector<32x512xf32>,
    return
  }
  func.func @transform_0(%arg0: i32) -> (i32, i32) {
    %c0_i32 = arith.constant 0 : i32
    %c0_i32_0 = arith.constant 0 : i32
    return %arg0, %c0_i32 : i32, i32
  }
  func.func @transform_1(%arg0: i32) -> (i32, i32) {
    %c0_i32 = arith.constant 0 : i32
    %c0_i32_0 = arith.constant 0 : i32
    return %arg0, %c0_i32 : i32, i32
  }
  func.func @transform_2(%arg0: i32) -> (i32, i32) {
    %c0_i32 = arith.constant 0 : i32
    %c0_i32_0 = arith.constant 0 : i32
    %c0_i32_1 = arith.constant 0 : i32
    return %c0_i32, %c0_i32_0 : i32, i32
  }
  func.func @transform_3(%arg0: i32) -> (i32, i32) {
    %c0_i32 = arith.constant 0 : i32
    %c0_i32_0 = arith.constant 0 : i32
    %c0_i32_1 = arith.constant 0 : i32
    return %c0_i32, %c0_i32_0 : i32, i32
  }
  func.func @transform_4(%arg0: i32) -> (i32, i32) {
    %c0_i32 = arith.constant 0 : i32
    %c0_i32_0 = arith.constant 0 : i32
    %c0_i32_1 = arith.constant 0 : i32
    return %c0_i32, %c0_i32_0 : i32, i32
  }
  func.func @transform_5(%arg0: i32) -> (i32, i32) {
    %c0_i32 = arith.constant 0 : i32
    %c0_i32_0 = arith.constant 0 : i32
    %c0_i32_1 = arith.constant 0 : i32
    return %c0_i32, %c0_i32_0 : i32, i32
  }
  func.func @transform_6(%arg0: i32) -> (i32, i32) {
    %c0_i32 = arith.constant 0 : i32
    %c0_i32_0 = arith.constant 0 : i32
    %c0_i32_1 = arith.constant 0 : i32
    return %c0_i32, %c0_i32_0 : i32, i32
  }
  func.func @transform_7(%arg0: i32) -> (i32, i32) {
    %c0_i32 = arith.constant 0 : i32
    %c0_i32_0 = arith.constant 0 : i32
    %c0_i32_1 = arith.constant 0 : i32
    return %c0_i32, %c0_i32_0 : i32, i32
  }
  func.func @transform_8(%arg0: i32) -> (i32, i32) {
    %c0_i32 = arith.constant 0 : i32
    %c0_i32_0 = arith.constant 0 : i32
    %c0_i32_1 = arith.constant 0 : i32
    return %c0_i32, %c0_i32_0 : i32, i32
  }
  func.func @transform_9(%arg0: i32) -> (i32, i32) {
    %c0_i32 = arith.constant 0 : i32
    %c0_i32_0 = arith.constant 0 : i32
    %c0_i32_1 = arith.constant 0 : i32
    return %c0_i32, %c0_i32_0 : i32, i32
  }
  func.func @transform_10(%arg0: i32) -> (i32, i32) {
    %c0_i32 = arith.constant 0 : i32
    %c0_i32_0 = arith.constant 0 : i32
    %c0_i32_1 = arith.constant 0 : i32
    return %c0_i32, %c0_i32_0 : i32, i32
  }
  func.func @transform_11(%arg0: i32) -> (i32, i32) {
    %c0_i32 = arith.constant 0 : i32
    %c0_i32_0 = arith.constant 0 : i32
    %c0_i32_1 = arith.constant 0 : i32
    return %c0_i32, %c0_i32_0 : i32, i32
  }
  func.func @transform_12(%arg0: i32) -> (i32, i32) {
    %c0_i32 = arith.constant 0 : i32
    %c0_i32_0 = arith.constant 0 : i32
    %c0_i32_1 = arith.constant 0 : i32
    return %c0_i32, %c0_i32_0 : i32, i32
  }
  func.func @transform_13(%arg0: i32) -> (i32, i32) {
    %c0_i32 = arith.constant 0 : i32
    %c0_i32_0 = arith.constant 0 : i32
    return %arg0, %c0_i32 : i32, i32
  }
}

</mosaic_0001>

<bundles_post_ra>
// kernel: tpu_custom_call.1
= control target key start
LH: loop header
LB: loop body
LE: loop exit
PB: predicated region body
PF: predicated region fallthrough
CT: control target
= control target key end

     0   :  { %18 = vsyncpa [#allocation4], 0  ;;  %s5634_s0 = inlined_call_operand.hbm [shape: f32[32,128], index: 0, kind: input, shape index: {}]   ;;  %s5635_s1 = inlined_call_operand.hbm [shape: f32[32,128], index: 1, kind: input, shape index: {}]   ;;  %s5636_s2 = inlined_call_operand.hbm [shape: f32[32,32], index: 2, kind: input, shape index: {}]   ;;  %s5637_s3 = inlined_call_operand.hbm [shape: f32[32,32], index: 3, kind: input, shape index: {}]   ;;  %s5638_s4 = inlined_call_operand.hbm [shape: bf16[128,384], index: 4, kind: input, shape index: {}]   ;;  %s5639_s5 = inlined_call_operand.hbm [shape: bf16[128,128], index: 5, kind: input, shape index: {}]   ;;  %s5640_s6 = inlined_call_operand.hbm [shape: bf16[128,128], index: 6, kind: input, shape index: {}]   ;;  %s5641_s7 = inlined_call_operand.hbm [shape: bf16[128,256], index: 7, kind: input, shape index: {}]   ;;  %s5642_s8 = inlined_call_operand.hbm [shape: bf16[128,128], index: 8, kind: input, shape index: {}]   ;;  %s5643_s9 = inlined_call_operand.hbm [shape: bf16[128,256], index: 9, kind: input, shape index: {}]   ;;  %s5644_s10 = inlined_call_operand.hbm [shape: bf16[256,128], index: 10, kind: input, shape index: {}]   ;;  %s5645_s11 = inlined_call_operand.hbm [shape: bf16[128,512], index: 11, kind: input, shape index: {}]   ;;  %s5646_s12 = inlined_call_operand.hbm [shape: f32[16,512], index: 12, kind: input, shape index: {}]   ;;  %s5647_s13 = inlined_call_operand.hbm [shape: f32[32,512], index: 13, kind: output, shape index: {}]  }
   0x1   :  { %19 = vsyncpa [#allocation7], 0 }
   0x2   :  { %20 = vsyncpa [#allocation10], 0 }
   0x3   :  { %21 = vsyncpa [#allocation13], 0 }
   0x4   :  { %22 = vsyncpa [#allocation16], 0 }
   0x5   :  { %23 = vsyncpa [#allocation19], 0 }
   0x6   :  { %24 = vsyncpa [#allocation22], 0 }
   0x7   :  { %25 = vsyncpa [#allocation5], 0  ;;  %s4807_s25 = smov [#allocation6]   ;;  %s4808_s27 = smov [#allocation9]  }
   0x8   :  { %s43_s26 = sshll.u32 %s4807_s25, 4  ;;  %s67_s28 = sshll.u32 %s4808_s27, 4  ;;  %s44_s26 = int_to_ptr.vmem [resolvable:$true] %s43_s26  ;;  %s4903_s28 = int_to_ptr.vmem [resolvable:$true] %s67_s28 }
   0x9   :  { %s4483_s14 = scalar_lea.hbm %s5635_s1, 512 }
   0xa   :  { %p4484_p0 = scmp.ne.s32.totalorder %s5635_s1, %s4483_s14  ;;  %p4487_p1 = scmp.lt.u32.totalorder %s4483_s14, %s5635_s1 }
   0xc   :  { %p4489_p2 = pnand %p4487_p1, %p4484_p0 }
   0xe   :  { %4492 = shalt.err (!%p4489_p2)
}
   0xf   :  { %s4493_s19 = scalar_lea.vmem %s44_s26, 512  ;;  %p4498_p4 = scmp.lt.s32.totalorder %s44_s26, %s44_s26 }
  0x10   :  { %p4494_p3 = scmp.ne.s32.totalorder %s44_s26, %s4493_s19  ;;  %p4499_p5 = scmp.lt.s32.totalorder %s4493_s19, %s4493_s19 }
  0x12   :  { %p4500_p6 = por %p4499_p5, %p4498_p4 }
  0x14   :  { %p4501_p7 = pnand %p4500_p6, %p4494_p3 }
  0x16   :  { %4504 = shalt.err (!%p4501_p7)
}
  0x17   :  { %s4809_s20 = smov 128   ;;  %s4810_s21 = smov 8  }
  0x18   :  { %49 = dma.hbm_to_vmem [thread:$0]  %s5635_s1, 512, %s44_s26, [#allocation7], %s4809_s20, %s4809_s20, %s4810_s21  }
  0x19   :  { %s4505_s27 = scalar_lea.hbm %s5637_s3, 512 }
  0x1a   :  { %p4506_p8 = scmp.ne.s32.totalorder %s5637_s3, %s4505_s27  ;;  %p4509_p9 = scmp.lt.u32.totalorder %s4505_s27, %s5637_s3 }
  0x1c   :  { %p4511_p10 = pnand %p4509_p9, %p4506_p8 }
  0x1e   :  { %4514 = shalt.err (!%p4511_p10)
}
  0x1f   :  { %s4515_s16 = scalar_lea.vmem %s4903_s28, 512  ;;  %p4520_p12 = scmp.lt.s32.totalorder %s4903_s28, %s4903_s28 }
  0x20   :  { %p4516_p11 = scmp.ne.s32.totalorder %s4903_s28, %s4515_s16  ;;  %p4521_p13 = scmp.lt.s32.totalorder %s4515_s16, %s4515_s16 }
  0x22   :  { %p4522_p0 = por %p4521_p13, %p4520_p12 }
  0x24   :  { %p4523_p1 = pnand %p4522_p0, %p4516_p11 }
  0x26   :  { %4526 = shalt.err (!%p4523_p1)
}
  0x27   :  { %73 = dma.hbm_to_vmem [thread:$0]  %s5637_s3, 512, %s4903_s28, [#allocation10], %s4809_s20, %s4809_s20, %s4810_s21  }
  0x28   :  { %s4811_s17 = smov [#allocation12]   ;;  %s4527_s23 = scalar_lea.hbm %s5639_s5, 1024 }
  0x29   :  { %s91_s18 = sshll.u32 %s4811_s17, 4  ;;  %p4528_p2 = scmp.ne.s32.totalorder %s5639_s5, %s4527_s23  ;;  %s92_s18 = int_to_ptr.vmem [resolvable:$true] %s91_s18 }
  0x2a   :  { %p4531_p3 = scmp.lt.u32.totalorder %s4527_s23, %s5639_s5 }
  0x2c   :  { %p4533_p4 = pnand %p4531_p3, %p4528_p2 }
  0x2e   :  { %4536 = shalt.err (!%p4533_p4)
}
  0x2f   :  { %s4537_s30 = scalar_lea.vmem %s92_s18, 1024  ;;  %p4542_p6 = scmp.lt.s32.totalorder %s92_s18, %s92_s18 }
  0x30   :  { %p4538_p5 = scmp.ne.s32.totalorder %s92_s18, %s4537_s30  ;;  %p4543_p7 = scmp.lt.s32.totalorder %s4537_s30, %s4537_s30 }
  0x32   :  { %p4544_p8 = por %p4543_p7, %p4542_p6 }
  0x34   :  { %p4545_p9 = pnand %p4544_p8, %p4538_p5 }
  0x36   :  { %4548 = shalt.err (!%p4545_p9)
}
  0x37   :  { %s4812_s3 = smov 64   ;;  %s4813_s28 = smov 4  }
  0x38   :  { %97 = dma.hbm_to_vmem [thread:$0]  %s5639_s5, 1024, %s92_s18, [#allocation13], %s4812_s3, %s4812_s3, %s4813_s28  }
  0x39   :  { %s4814_s16 = smov [#allocation15]   ;;  %s4815_s26 = smov [#allocation18]  }
  0x3a   :  { %s115_s1 = sshll.u32 %s4814_s16, 4  ;;  %s139_s17 = sshll.u32 %s4815_s26, 4  ;;  %s116_s1 = int_to_ptr.vmem [resolvable:$true] %s115_s1  ;;  %s140_s17 = int_to_ptr.vmem [resolvable:$true] %s139_s17 }
  0x3b   :  { %s4549_s23 = scalar_lea.hbm %s5641_s7, 2048 }
  0x3c   :  { %p4550_p10 = scmp.ne.s32.totalorder %s5641_s7, %s4549_s23  ;;  %p4553_p11 = scmp.lt.u32.totalorder %s4549_s23, %s5641_s7 }
  0x3e   :  { %p4555_p12 = pnand %p4553_p11, %p4550_p10 }
  0x40   :  { %4558 = shalt.err (!%p4555_p12)
}
  0x41   :  { %s4559_s5 = scalar_lea.vmem %s116_s1, 2048  ;;  %p4564_p0 = scmp.lt.s32.totalorder %s116_s1, %s116_s1 }
  0x42   :  { %p4560_p13 = scmp.ne.s32.totalorder %s116_s1, %s4559_s5  ;;  %p4565_p1 = scmp.lt.s32.totalorder %s4559_s5, %s4559_s5 }
  0x44   :  { %p4566_p2 = por %p4565_p1, %p4564_p0 }
  0x46   :  { %p4567_p3 = pnand %p4566_p2, %p4560_p13 }
  0x48   :  { %4570 = shalt.err (!%p4567_p3)
}
  0x49   :  { %121 = dma.hbm_to_vmem [thread:$0]  %s5641_s7, 2048, %s116_s1, [#allocation16], %s4809_s20, %s4809_s20, %s4810_s21  }
  0x4a   :  { %s4571_s16 = scalar_lea.hbm %s5643_s9, 2048 }
  0x4b   :  { %p4572_p4 = scmp.ne.s32.totalorder %s5643_s9, %s4571_s16  ;;  %p4575_p5 = scmp.lt.u32.totalorder %s4571_s16, %s5643_s9 }
  0x4d   :  { %p4577_p6 = pnand %p4575_p5, %p4572_p4 }
  0x4f   :  { %4580 = shalt.err (!%p4577_p6)
}
  0x50   :  { %s4581_s24 = scalar_lea.vmem %s140_s17, 2048  ;;  %p4586_p8 = scmp.lt.s32.totalorder %s140_s17, %s140_s17 }
  0x51   :  { %p4582_p7 = scmp.ne.s32.totalorder %s140_s17, %s4581_s24  ;;  %p4587_p9 = scmp.lt.s32.totalorder %s4581_s24, %s4581_s24 }
  0x53   :  { %p4588_p10 = por %p4587_p9, %p4586_p8 }
  0x55   :  { %p4589_p11 = pnand %p4588_p10, %p4582_p7 }
  0x57   :  { %4592 = shalt.err (!%p4589_p11)
}
  0x58   :  { %145 = dma.hbm_to_vmem [thread:$0]  %s5643_s9, 2048, %s140_s17, [#allocation19], %s4809_s20, %s4809_s20, %s4810_s21  }
  0x59   :  { %s4816_s25 = smov [#allocation21]   ;;  %s4593_s18 = scalar_lea.hbm %s5645_s11, 4096 }
  0x5a   :  { %s163_s27 = sshll.u32 %s4816_s25, 4  ;;  %p4594_p12 = scmp.ne.s32.totalorder %s5645_s11, %s4593_s18  ;;  %s164_s27 = int_to_ptr.vmem [resolvable:$true] %s163_s27 }
  0x5b   :  { %p4597_p13 = scmp.lt.u32.totalorder %s4593_s18, %s5645_s11 }
  0x5d   :  { %p4599_p0 = pnand %p4597_p13, %p4594_p12 }
  0x5f   :  { %4602 = shalt.err (!%p4599_p0)
}
  0x60   :  { %s4603_s26 = scalar_lea.vmem %s164_s27, 4096  ;;  %p4608_p2 = scmp.lt.s32.totalorder %s164_s27, %s164_s27 }
  0x61   :  { %p4604_p1 = scmp.ne.s32.totalorder %s164_s27, %s4603_s26  ;;  %p4609_p3 = scmp.lt.s32.totalorder %s4603_s26, %s4603_s26 }
  0x63   :  { %p4610_p4 = por %p4609_p3, %p4608_p2 }
  0x65   :  { %p4611_p5 = pnand %p4610_p4, %p4604_p1 }
  0x67   :  { %4614 = shalt.err (!%p4611_p5)
}
  0x68   :  { %s4817_s9 = smov 256   ;;  %s4818_s17 = smov 16  }
  0x69   :  { %169 = dma.hbm_to_vmem [thread:$0]  %s5645_s11, 4096, %s164_s27, [#allocation22], %s4817_s9, %s4817_s9, %s4818_s17  }
  0x6a   :  { %s4819_s23 = smov [#allocation3]   ;;  %s4820_s7 = smov [#allocation8]  }
  0x6b   :  { %s31_s24 = sshll.u32 %s4819_s23, 4  ;;  %s55_s1 = sshll.u32 %s4820_s7, 4  ;;  %s32_s24 = int_to_ptr.vmem [resolvable:$true] %s31_s24  ;;  %s4997_s1 = int_to_ptr.vmem [resolvable:$true] %s55_s1 }
  0x6c   :  { %s4615_s5 = scalar_lea.hbm %s5634_s0, 512 }
  0x6d   :  { %p4616_p6 = scmp.ne.s32.totalorder %s5634_s0, %s4615_s5  ;;  %p4619_p7 = scmp.lt.u32.totalorder %s4615_s5, %s5634_s0 }
  0x6f   :  { %p4621_p8 = pnand %p4619_p7, %p4616_p6 }
  0x71   :  { %4624 = shalt.err (!%p4621_p8)
}
  0x72   :  { %s4625_s11 = scalar_lea.vmem %s32_s24, 512  ;;  %p4630_p10 = scmp.lt.s32.totalorder %s32_s24, %s32_s24 }
  0x73   :  { %p4626_p9 = scmp.ne.s32.totalorder %s32_s24, %s4625_s11  ;;  %p4631_p11 = scmp.lt.s32.totalorder %s4625_s11, %s4625_s11 }
  0x75   :  { %p4632_p12 = por %p4631_p11, %p4630_p10 }
  0x77   :  { %p4633_p13 = pnand %p4632_p12, %p4626_p9 }
  0x79   :  { %4636 = shalt.err (!%p4633_p13)
}
  0x7a   :  { %37 = dma.hbm_to_vmem [thread:$0]  %s5634_s0, 512, %s32_s24, [#allocation4], %s4809_s20, %s4809_s20, %s4810_s21  }
  0x7b   :  { %s4637_s17 = scalar_lea.hbm %s5636_s2, 512 }
  0x7c   :  { %p4638_p0 = scmp.ne.s32.totalorder %s5636_s2, %s4637_s17  ;;  %p4641_p1 = scmp.lt.u32.totalorder %s4637_s17, %s5636_s2 }
  0x7e   :  { %p4643_p2 = pnand %p4641_p1, %p4638_p0 }
  0x80   :  { %4646 = shalt.err (!%p4643_p2)
}
  0x81   :  { %s4647_s25 = scalar_lea.vmem %s4997_s1, 512  ;;  %p4652_p4 = scmp.lt.s32.totalorder %s4997_s1, %s4997_s1 }
  0x82   :  { %p4648_p3 = scmp.ne.s32.totalorder %s4997_s1, %s4647_s25  ;;  %p4653_p5 = scmp.lt.s32.totalorder %s4647_s25, %s4647_s25 }
  0x84   :  { %p4654_p6 = por %p4653_p5, %p4652_p4 }
  0x86   :  { %p4655_p7 = pnand %p4654_p6, %p4648_p3 }
  0x88   :  { %4658 = shalt.err (!%p4655_p7)
}
  0x89   :  { %61 = dma.hbm_to_vmem [thread:$0]  %s5636_s2, 512, %s4997_s1, [#allocation7], %s4809_s20, %s4809_s20, %s4810_s21  }
  0x8a   :  { %s4821_s29 = smov [#allocation11]   ;;  %s4659_s14 = scalar_lea.hbm %s5638_s4, 3072 }
  0x8b   :  { %s79_s5 = sshll.u32 %s4821_s29, 4  ;;  %p4660_p8 = scmp.ne.s32.totalorder %s5638_s4, %s4659_s14  ;;  %s80_s5 = int_to_ptr.vmem [resolvable:$true] %s79_s5 }
  0x8c   :  { %p4663_p9 = scmp.lt.u32.totalorder %s4659_s14, %s5638_s4 }
  0x8e   :  { %p4665_p10 = pnand %p4663_p9, %p4660_p8 }
  0x90   :  { %4668 = shalt.err (!%p4665_p10)
}
  0x91   :  { %s4669_s26 = scalar_lea.vmem %s80_s5, 3072  ;;  %p4674_p12 = scmp.lt.s32.totalorder %s80_s5, %s80_s5 }
  0x92   :  { %p4670_p11 = scmp.ne.s32.totalorder %s80_s5, %s4669_s26  ;;  %p4675_p13 = scmp.lt.s32.totalorder %s4669_s26, %s4669_s26 }
  0x94   :  { %p4676_p0 = por %p4675_p13, %p4674_p12 }
  0x96   :  { %p4677_p1 = pnand %p4676_p0, %p4670_p11 }
  0x98   :  { %4680 = shalt.err (!%p4677_p1)
}
  0x99   :  { %s4822_s2 = smov 192   ;;  %s4823_s20 = smov 12  }
  0x9a   :  { %85 = dma.hbm_to_vmem [thread:$0]  %s5638_s4, 3072, %s80_s5, [#allocation10], %s4822_s2, %s4822_s2, %s4823_s20  }
  0x9b   :  { %s4824_s9 = smov [#allocation14]   ;;  %s4825_s19 = smov [#allocation17]  }
  0x9c   :  { %s103_s17 = sshll.u32 %s4824_s9, 4  ;;  %s127_s22 = sshll.u32 %s4825_s19, 4  ;;  %s104_s17 = int_to_ptr.vmem [resolvable:$true] %s103_s17  ;;  %s128_s22 = int_to_ptr.vmem [resolvable:$true] %s127_s22 }
  0x9d   :  { %s4681_s25 = scalar_lea.hbm %s5640_s6, 1024 }
  0x9e   :  { %p4682_p2 = scmp.ne.s32.totalorder %s5640_s6, %s4681_s25  ;;  %p4685_p3 = scmp.lt.u32.totalorder %s4681_s25, %s5640_s6 }
  0xa0   :  { %p4687_p4 = pnand %p4685_p3, %p4682_p2 }
  0xa2   :  { %4690 = shalt.err (!%p4687_p4)
}
  0xa3   :  { %s4691_s4 = scalar_lea.vmem %s104_s17, 1024  ;;  %p4696_p6 = scmp.lt.s32.totalorder %s104_s17, %s104_s17 }
  0xa4   :  { %p4692_p5 = scmp.ne.s32.totalorder %s104_s17, %s4691_s4  ;;  %p4697_p7 = scmp.lt.s32.totalorder %s4691_s4, %s4691_s4 }
  0xa6   :  { %p4698_p8 = por %p4697_p7, %p4696_p6 }
  0xa8   :  { %p4699_p9 = pnand %p4698_p8, %p4692_p5 }
  0xaa   :  { %4702 = shalt.err (!%p4699_p9)
}
  0xab   :  { %109 = dma.hbm_to_vmem [thread:$0]  %s5640_s6, 1024, %s104_s17, [#allocation13], %s4812_s3, %s4812_s3, %s4813_s28  }
  0xac   :  { %s4703_s11 = scalar_lea.hbm %s5642_s8, 1024 }
  0xad   :  { %p4704_p10 = scmp.ne.s32.totalorder %s5642_s8, %s4703_s11  ;;  %p4707_p11 = scmp.lt.u32.totalorder %s4703_s11, %s5642_s8 }
  0xaf   :  { %p4709_p12 = pnand %p4707_p11, %p4704_p10 }
  0xb1   :  { %4712 = shalt.err (!%p4709_p12)
}
  0xb2   :  { %s4713_s20 = scalar_lea.vmem %s128_s22, 1024  ;;  %p4718_p0 = scmp.lt.s32.totalorder %s128_s22, %s128_s22 }
  0xb3   :  { %p4714_p13 = scmp.ne.s32.totalorder %s128_s22, %s4713_s20  ;;  %p4719_p1 = scmp.lt.s32.totalorder %s4713_s20, %s4713_s20 }
  0xb5   :  { %p4720_p2 = por %p4719_p1, %p4718_p0 }
  0xb7   :  { %p4721_p3 = pnand %p4720_p2, %p4714_p13 }
  0xb9   :  { %4724 = shalt.err (!%p4721_p3)
}
  0xba   :  { %133 = dma.hbm_to_vmem [thread:$0]  %s5642_s8, 1024, %s128_s22, [#allocation16], %s4812_s3, %s4812_s3, %s4813_s28  }
  0xbb   :  { %s4826_s1 = smov [#allocation20]   ;;  %s4827_s17 = smov [#allocation23]  }
  0xbc   :  { %s151_s9 = sshll.u32 %s4826_s1, 4  ;;  %s175_s19 = sshll.u32 %s4827_s17, 4  ;;  %s152_s9 = int_to_ptr.vmem [resolvable:$true] %s151_s9  ;;  %s176_s19 = int_to_ptr.vmem [resolvable:$true] %s175_s19 }
  0xbd   :  { %s4725_s25 = scalar_lea.hbm %s5644_s10, 2048 }
  0xbe   :  { %p4726_p4 = scmp.ne.s32.totalorder %s5644_s10, %s4725_s25  ;;  %p4729_p5 = scmp.lt.u32.totalorder %s4725_s25, %s5644_s10 }
  0xc0   :  { %p4731_p6 = pnand %p4729_p5, %p4726_p4 }
  0xc2   :  { %4734 = shalt.err (!%p4731_p6)
}
  0xc3   :  { %s4735_s8 = scalar_lea.vmem %s152_s9, 2048  ;;  %p4740_p8 = scmp.lt.s32.totalorder %s152_s9, %s152_s9 }
  0xc4   :  { %p4736_p7 = scmp.ne.s32.totalorder %s152_s9, %s4735_s8  ;;  %p4741_p9 = scmp.lt.s32.totalorder %s4735_s8, %s4735_s8 }
  0xc6   :  { %p4742_p10 = por %p4741_p9, %p4740_p8 }
  0xc8   :  { %p4743_p11 = pnand %p4742_p10, %p4736_p7 }
  0xca   :  { %4746 = shalt.err (!%p4743_p11)
}
  0xcb   :  { %157 = dma.hbm_to_vmem [thread:$0]  %s5644_s10, 2048, %s152_s9, [#allocation19], %s4812_s3, %s4812_s3, %s4813_s28  }
  0xcc   :  { %s4747_s14 = scalar_lea.hbm %s5646_s12, 1024 }
  0xcd   :  { %p4748_p12 = scmp.ne.s32.totalorder %s5646_s12, %s4747_s14  ;;  %p4751_p13 = scmp.lt.u32.totalorder %s4747_s14, %s5646_s12 }
  0xcf   :  { %p4753_p0 = pnand %p4751_p13, %p4748_p12 }
  0xd1   :  { %4756 = shalt.err (!%p4753_p0)
}
  0xd2   :  { %s4757_s26 = scalar_lea.vmem %s176_s19, 1024  ;;  %p4762_p2 = scmp.lt.s32.totalorder %s176_s19, %s176_s19 }
  0xd3   :  { %p4758_p1 = scmp.ne.s32.totalorder %s176_s19, %s4757_s26  ;;  %p4763_p3 = scmp.lt.s32.totalorder %s4757_s26, %s4757_s26 }
  0xd5   :  { %p4764_p4 = por %p4763_p3, %p4762_p2 }
  0xd7   :  { %p4765_p5 = pnand %p4764_p4, %p4758_p1 }
  0xd9   :  { %4768 = shalt.err (!%p4765_p5)
}
  0xda   :  { %s4828_s10 = smov 512   ;;  %s4829_s28 = smov 32  }
  0xdb   :  { %181 = dma.hbm_to_vmem [thread:$0]  %s5646_s12, 1024, %s176_s19, [#allocation22], %s4828_s10, %s4828_s10, %s4829_s28  }
  0xdc   :  { %4791 = dma.done.wait [#allocation4], 512  }
  0xdd   :  { %4792 = vsyncadd [#allocation4], 4294966784 }
  0xde   :  { %4793 = dma.done.wait [#allocation7], 1024  }
  0xdf   :  { %4794 = vsyncadd [#allocation7], 4294966272 }
  0xe0   :  { %4795 = dma.done.wait [#allocation10], 3584  }
  0xe1   :  { %4796 = vsyncadd [#allocation10], 4294963712 }
  0xe2   :  { %4797 = dma.done.wait [#allocation13], 2048  }
  0xe3   :  { %4798 = vsyncadd [#allocation13], 4294965248 }
  0xe4   :  { %4799 = dma.done.wait [#allocation16], 3072  }
  0xe5   :  { %4800 = vsyncadd [#allocation16], 4294964224 }
  0xe6   :  { %4801 = dma.done.wait [#allocation19], 4096  }
  0xe7   :  { %4802 = vsyncadd [#allocation19], 4294963200 }
  0xe8   :  { %4803 = dma.done.wait [#allocation22], 5120  }
  0xe9   :  { %4804 = vsyncadd [#allocation22], 4294962176  ;;  %v4830_v0 = vmov 0   ;;  %v4119_v1 = vld [vmem:[#allocation11 + $0x4] ss:$12 sps:$4 sm:$0xff]   ;;  %v223_v10 = vld [vmem:[#allocation3 + $0x8] sm:$0xff]  ;;  %v268_v23 = vlaneseq }
  0xea   :  { %443 = vmatprep.mubr.bf16.mxu0 %v4830_v0  ;;  %v4121_v2 = vld [vmem:[#allocation11] ss:$12 sps:$4 sm:$0xff]   ;;  %411 = vmatprep.subr.bf16.mxu0 %v4119_v1  ;;  %v4122_v3 = vld [vmem:[#allocation11 + $0x1c] ss:$12 sps:$4 sm:$0xff]   ;;  %v4124_v4 = vld [vmem:[#allocation11 + $0x18] ss:$12 sps:$4 sm:$0xff]  }
  0xeb   :  { %412 = vmatpush1.bf16.msra.mxu0 %v4121_v2  ;;  %v4125_v5 = vld [vmem:[#allocation11 + $0x34] ss:$12 sps:$4 sm:$0xff]   ;;  %v4127_v6 = vld [vmem:[#allocation11 + $0x30] ss:$12 sps:$4 sm:$0xff]   ;;  %v4128_v7 = vld [vmem:[#allocation11 + $0x4c] ss:$12 sps:$4 sm:$0xff]  }
  0xec   :  { %413 = vmatprep.subr.bf16.mxu0 %v4122_v3  ;;  %v222_v8 = vld [vmem:[#allocation3] sm:$0xff]  ;;  %v4130_v9 = vld [vmem:[#allocation11 + $0x48] ss:$12 sps:$4 sm:$0xff]   ;;  %v4139_v17 = vld [vmem:[#allocation11 + $0x90] ss:$12 sps:$4 sm:$0xff]   ;;  %v5111_v24 = vshrl.u32 %v268_v23, 7 }
  0xed   :  { %v4131_v11 = vld [vmem:[#allocation11 + $0x64] ss:$12 sps:$4 sm:$0xff]   ;;  %v232_v12 = vpack.c.bf16 %v223_v10, %v222_v8  ;;  %v4133_v13 = vld [vmem:[#allocation11 + $0x60] ss:$12 sps:$4 sm:$0xff]   ;;  %v4134_v14 = vld [vmem:[#allocation11 + $0x7c] ss:$12 sps:$4 sm:$0xff]  }
  0xee   :  { %v4136_v15 = vld [vmem:[#allocation11 + $0x78] ss:$12 sps:$4 sm:$0xff]   ;;  %v4137_v16 = vld [vmem:[#allocation11 + $0x94] ss:$12 sps:$4 sm:$0xff]   ;;  %v5114_v25 = vsub.s32 0, %v5111_v24  ;;  %v5119_v27 = vsub.s32 1, %v5111_v24 }
  0xef   :  { %414 = vmatpush1.bf16.msra.mxu0 %v4124_v4  ;;  %3885 = vmatprep.mubr.bf16.mxu1 %v232_v12  ;;  %v4140_v18 = vld [vmem:[#allocation11 + $0xac] ss:$12 sps:$4 sm:$0xff]   ;;  %v4142_v19 = vld [vmem:[#allocation11 + $0xa8] ss:$12 sps:$4 sm:$0xff]   ;;  %vm527_vm0 = vcmask 261120   ;;  %v5148_v2 = vld [vmem:[#allocation8] sm:$0xff] }
  0xf0   :  { %415 = vmatprep.subr.bf16.mxu0 %v4125_v5  ;;  %v224_v20 = vld [vmem:[#allocation3 + $0x10] sm:$0xff]  ;;  %v225_v21 = vld [vmem:[#allocation3 + $0x18] sm:$0xff]  ;;  %v4144_v57 = vld [vmem:[#allocation11 + $0x20] ss:$12 sps:$4 sm:$0xff]   ;;  %s4831_s12 = smov 96   ;;  %vm892_vm1 = vcmask 523520  }
  0xf1   :  { %v5108_v22 = vpack.c.bf16 %v225_v21, %v224_v20  ;;  %v5116_v26 = vld [vmem:[#allocation23] ss:$8 sm:$0x7]  ;;  %v4145_v58 = vld [vmem:[#allocation11 + $0x38] ss:$12 sps:$4 sm:$0xff]   ;;  %vm1089_vm2 = vcmask 785920  }
  0xf2   :  { %v271_v28 = vrot.slane %v5116_v26, %v5114_v25  ;;  %v275_v30 = vrot.slane %v5116_v26, %v5119_v27  ;;  %v4143_v56 = vld [vmem:[#allocation11 + $0x8] ss:$12 sps:$4 sm:$0xff]   ;;  %v4146_v59 = vld [vmem:[#allocation11 + $0x50] ss:$12 sps:$4 sm:$0xff]   ;;  %v4148_v61 = vld [vmem:[#allocation11 + $0x80] ss:$12 sps:$4 sm:$0xff]  }
  0xf3   :  { %416 = vmatpush1.bf16.msra.mxu0 %v4127_v6  ;;  %3869 = vmatprep.subr.bf16.mxu1 %v4143_v56  ;;  %v4147_v60 = vld [vmem:[#allocation11 + $0x68] ss:$12 sps:$4 sm:$0xff]   ;;  %v4149_v62 = vld [vmem:[#allocation11 + $0x98] ss:$12 sps:$4 sm:$0xff]   ;;  %v4150_v63 = vld [vmem:[#allocation11 + $0xb0] ss:$12 sps:$4 sm:$0xff]  }
  0xf4   :  { %417 = vmatprep.subr.bf16.mxu0 %v4128_v7  ;;  %3870 = vmatpush3.bf16.msra.mxu1 %v4143_v56  ;;  %v5146_v1 = vld [vmem:[#allocation8 + $0x10] sm:$0xff]  ;;  %v5150_v4 = vld [vmem:[#allocation8 + $0x18] sm:$0xff]  ;;  %v5153_v7 = vld [vmem:[#allocation8 + $0x8] sm:$0xff]  ;;  %vm1286_vm3 = vcmask 1048320  }
  0xf5   :  { %3871 = vmatprep.subr.bf16.mxu1 %v4144_v57 }
  0xf7   :  { %418 = vmatpush1.bf16.msra.mxu0 %v4130_v9 }
  0xf8   :  { %419 = vmatprep.subr.bf16.mxu0 %v4131_v11  ;;  %3872 = vmatpush3.bf16.msra.mxu1 %v4144_v57 }
  0xf9   :  { %3873 = vmatprep.subr.bf16.mxu1 %v4145_v58 }
  0xfb   :  { %420 = vmatpush1.bf16.msra.mxu0 %v4133_v13 }
  0xfc   :  { %421 = vmatprep.subr.bf16.mxu0 %v4134_v14  ;;  %3874 = vmatpush3.bf16.msra.mxu1 %v4145_v58 }
  0xfd   :  { %3875 = vmatprep.subr.bf16.mxu1 %v4146_v59 }
  0xff   :  { %422 = vmatpush1.bf16.msra.mxu0 %v4136_v15 }
 0x100   :  { %423 = vmatprep.subr.bf16.mxu0 %v4137_v16  ;;  %3876 = vmatpush3.bf16.msra.mxu1 %v4146_v59 }
 0x101   :  { %3877 = vmatprep.subr.bf16.mxu1 %v4147_v60 }
 0x103   :  { %424 = vmatpush1.bf16.msra.mxu0 %v4139_v17  ;;  %v278_v17 = vsub.s32 2, %v5111_v24 }
 0x104   :  { %425 = vmatprep.subr.bf16.mxu0 %v4140_v18  ;;  %3878 = vmatpush3.bf16.msra.mxu1 %v4147_v60 }
 0x105   :  { %3879 = vmatprep.subr.bf16.mxu1 %v4148_v61  ;;  %v279_v18 = vrot.slane %v5116_v26, %v278_v17 }
 0x107   :  { %426 = vmatpush1.bf16.msra.mxu0 %v4142_v19 }
 0x108   :  { %3880 = vmatpush3.bf16.msra.mxu1 %v4148_v61 }
 0x109   :  { %3881 = vmatprep.subr.bf16.mxu1 %v4149_v62 }
 0x10a   :  { %444 = vmatmul.mubr.bf16.vlgmr.msra.gmra.mrb[0].mxu0 %v232_v12 }
 0x10b   :  { %453 = vmatprep.mubr.bf16.mxu0 %v4830_v0 }
 0x10c   :  { %3882 = vmatpush3.bf16.msra.mxu1 %v4149_v62 }
 0x10d   :  { %3883 = vmatprep.subr.bf16.mxu1 %v4150_v63 }
 0x110   :  { %3884 = vmatpush3.bf16.msra.mxu1 %v4150_v63 }
 0x112   :  { %454 = vmatmul.mubr.bf16.gmra.mrb[4].mxu0 %v5108_v22 }
 0x113   :  { %3886 = vmatmul.mubr.bf16.vlgmr.msra.gmra.mrb[0].mxu1 %v5108_v22 }
 0x1dd   :  { %v445_v29 = vpop.f32.mrb[0].mxu0 }
 0x1de   :  { %v446_v31 = vadd.f32 %v445_v29, %v271_v28  ;;  %v447_v32 = vpop.f32.mrb[1].mxu0 }
 0x1df   :  { %v449_v33 = vpop.f32.mrb[2].mxu0  ;;  %v448_v36 = vadd.f32 %v447_v32, %v275_v30 }
 0x1e0   :  { %v450_v34 = vadd.f32 %v449_v33, %v271_v28  ;;  %v451_v35 = vpop.f32.mrb[3].mxu0  ;;  %v517_v38 = vmul.f32 0.17677669, %v446_v31 }
 0x1e1   :  { %v452_v37 = vadd.f32 %v451_v35, %v275_v30 }
 0x1e2   :  { %v518_v39 = vmul.f32 0.17677669, %v450_v34 }
 0x1e3   :  { %v5125_v40 = vpack.c.bf16 %v452_v37, %v448_v36 }
 0x1e4   :  { %v5127_v41 = vpack.c.bf16 %v518_v39, %v517_v38 }
 0x1e5   :  { %v455_v42 = vpop.f32.mrb[4].mxu0  ;;  %4077 = vmatprep.subr.msk.bf16.mxu0 %vm527_vm0, %v5125_v40  ;;  %v535_v43 = vsel %vm527_vm0, %v5125_v40, 0 }
 0x1e6   :  { %v456_v44 = vadd.f32 %v455_v42, %v271_v28  ;;  %v457_v45 = vpop.f32.mrb[5].mxu0  ;;  %3890 = vmatpush3.bf16.xpose.msra.mxu0 %v535_v43  ;;  %3893 = vmatprep.mubr.msk.bf16.mxu0 %vm527_vm0, %v5127_v41  ;;  %v3887_v19 = vpop.f32.mrb[0].mxu1 }
 0x1e7   :  { %v459_v46 = vpop.f32.mrb[6].mxu0  ;;  %v458_v49 = vadd.f32 %v457_v45, %v275_v30  ;;  %v507_v20 = vadd.f32 %v3887_v19, %v279_v18  ;;  %v498_v21 = vpop.f32.mrb[1].mxu1 }
 0x1e8   :  { %v460_v47 = vadd.f32 %v459_v46, %v271_v28  ;;  %v461_v48 = vpop.f32.mrb[7].mxu0  ;;  %v519_v51 = vmul.f32 0.17677669, %v456_v44  ;;  %v499_v22 = vadd.f32 %v498_v21, %v279_v18  ;;  %v3888_v23 = vpop.f32.mrb[2].mxu1 }
 0x1e9   :  { %v462_v50 = vadd.f32 %v461_v48, %v275_v30  ;;  %v510_v28 = vadd.f32 %v3888_v23, %v279_v18  ;;  %v501_v29 = vpop.f32.mrb[3].mxu1 }
 0x1ea   :  { %v520_v52 = vmul.f32 0.17677669, %v460_v47  ;;  %v502_v30 = vadd.f32 %v501_v29, %v279_v18 }
 0x1eb   :  { %v5135_v53 = vpack.c.bf16 %v462_v50, %v458_v49  ;;  %v5166_v31 = vpack.c.bf16 %v510_v28, %v507_v20 }
 0x1ec   :  { %v5137_v54 = vpack.c.bf16 %v520_v52, %v519_v51  ;;  %v5168_v32 = vpack.c.bf16 %v502_v30, %v499_v22 }
 0x1ed   :  { %4078 = vmatprep.subr.msk.bf16.mxu0 %vm527_vm0, %v5135_v53  ;;  %v538_v55 = vsel %vm527_vm0, %v5135_v53, 0 }
 0x1ee   :  { %3892 = vmatpush3.bf16.xpose.msra.mxu0 %v538_v55  ;;  %3897 = vmatprep.subr.bf16.mxu1 %v5168_v32 }
 0x1ef   :  { %3898 = vmatpush3.bf16.msra.mxu1 %v5168_v32 }
 0x1f0   :  { %3899 = vmatprep.subr.bf16.mxu1 %v5166_v31 }
 0x1f3   :  { %3900 = vmatpush3.bf16.msra.mxu1 %v5166_v31 }
 0x1f5   :  { %3894 = vmatmul.mubr.msk.bf16.vlgmr.msra.gmra.mrb[8].mxu0 %vm527_vm0, %v5137_v54 }
 0x2c8   :  { %v3895_v3 = vpop.f32.mrb[8].mxu0 }
 0x2c9   :  { %v583_v5 = vadd.f32 %v3895_v3, %v5146_v1  ;;  %v574_v6 = vpop.f32.mrb[9].mxu0 }
 0x2ca   :  { %v575_v8 = vadd.f32 %v574_v6, %v5148_v2  ;;  %v3896_v9 = vpop.f32.mrb[10].mxu0 }
 0x2cb   :  { %v586_v10 = vadd.f32 %v3896_v9, %v5150_v4  ;;  %v577_v11 = vpop.f32.mrb[11].mxu0  ;;  %v595_v12 = vsel %vm527_vm0, %v583_v5, -inf }
 0x2cc   :  { %v578_v13 = vadd.f32 %v577_v11, %v5153_v7  ;;  %596 = vmax.xlane.f32.xlu1 %v595_v12  ;;  %v589_v14 = vsel %vm527_vm0, %v575_v8, -inf }
 0x2cd   :  { %590 = vmax.xlane.f32.xlu0 %v589_v14  ;;  %v598_v15 = vsel %vm527_vm0, %v586_v10, -inf }
 0x2ce   :  { %v592_v16 = vsel %vm527_vm0, %v578_v13, -inf }
 0x2d0   :  { %599 = vmax.xlane.f32.xlu1 %v598_v15 }
 0x2d1   :  { %593 = vmax.xlane.f32.xlu0 %v592_v16 }
 0x359   :  { %v597_v26 = vpop.xlane.xlu1 %596 }
 0x35a   :  { %v603_v33 = vsub.f32 %v583_v5, %v597_v26  ;;  %v591_v34 = vpop.xlane.xlu0 %590 }
 0x35b   :  { %v601_v35 = vsub.f32 %v575_v8, %v591_v34 }
 0x35c   :  { %v609_v36 = vmul.f32 1.442695, %v603_v33 }
 0x35d   :  { %v605_v37 = vmul.f32 1.442695, %v601_v35  ;;  %v600_v38 = vpop.xlane.xlu1 %599 }
 0x35e   :  { %4287 = vpow2.f32 %v609_v36  ;;  %v604_v39 = vsub.f32 %v586_v10, %v600_v38  ;;  %v594_v42 = vpop.xlane.xlu0 %593 }
 0x35f   :  { %v602_v43 = vsub.f32 %v578_v13, %v594_v42  ;;  %4289 = vpow2.f32 %v605_v37 }
 0x360   :  { %v611_v44 = vmul.f32 1.442695, %v604_v39 }
 0x361   :  { %v607_v45 = vmul.f32 1.442695, %v602_v43 }
 0x363   :  { %4291 = vpow2.f32 %v607_v45 }
 0x364   :  { %4293 = vpow2.f32 %v611_v44 }
 0x368   :  { %v4288_v46 = vpop.eup %4287 }
 0x369   :  { %v619_v47 = vsel %vm527_vm0, %v4288_v46, 0.0  ;;  %v4290_v48 = vpop.eup %4289 }
 0x36a   :  { %620 = vadd.xlane.f32.xlu0 %v619_v47  ;;  %v613_v50 = vsel %vm527_vm0, %v4290_v48, 0.0 }
 0x36d   :  { %v4292_v49 = vpop.eup %4291 }
 0x36e   :  { %614 = vadd.xlane.f32.xlu0 %v613_v50  ;;  %v616_v51 = vsel %vm527_vm0, %v4292_v49, 0.0  ;;  %v4294_v52 = vpop.eup %4293 }
 0x36f   :  { %617 = vadd.xlane.f32.xlu1 %v616_v51  ;;  %v622_v55 = vsel %vm527_vm0, %v4294_v52, 0.0 }
 0x373   :  { %623 = vadd.xlane.f32.xlu1 %v622_v55 }
 0x384   :  { %702 = vrot.lane.b32.xlu0 %v5125_v40, %s4831_s12  ;;  %704 = vrot.lane.b32.xlu1 %v5135_v53, %s4831_s12 }
 0x388   :  { %696 = vrot.lane.b32.xlu1 %v5127_v41, %s4831_s12 }
 0x38c   :  { %698 = vrot.lane.b32.xlu1 %v5137_v54, %s4831_s12 }
 0x3f7   :  { %v621_v56 = vpop.xlane.xlu0 %620 }
 0x3fb   :  { %v615_v57 = vpop.xlane.xlu0 %614 }
 0x3fc   :  { %4295 = vrcp.f32 %v615_v57  ;;  %v618_v58 = vpop.xlane.xlu1 %617 }
 0x3fd   :  { %4297 = vrcp.f32 %v618_v58 }
 0x3fe   :  { %4299 = vrcp.f32 %v621_v56 }
 0x3ff   :  { %v703_v59 = vpop.permute.xlu0 %702 }
 0x400   :  { %v624_v60 = vpop.xlane.xlu1 %623  ;;  %4079 = vmatprep.subr.msk.bf16.mxu1 %vm527_vm0, %v703_v59  ;;  %v713_v14 = vsel %vm527_vm0, %v703_v59, 0 }
 0x401   :  { %4301 = vrcp.f32 %v624_v60 }
 0x404   :  { %v705_v6 = vpop.permute.xlu1 %704 }
 0x405   :  { %v716_v15 = vsel %vm527_vm0, %v705_v6, 0 }
 0x406   :  { %v4296_v61 = vpop.eup %4295 }
 0x407   :  { %v4298_v62 = vpop.eup %4297  ;;  %v629_v63 = vmul.f32 %v4296_v61, %v4290_v48 }
 0x408   :  { %v630_v3 = vmul.f32 %v4298_v62, %v4292_v49  ;;  %v4300_v5 = vpop.eup %4299  ;;  %v697_v13 = vpop.permute.xlu1 %696 }
 0x409   :  { %v631_v10 = vmul.f32 %v4300_v5, %v4288_v46 }
 0x40a   :  { %v633_v8 = vpack.c.bf16 %v630_v3, %v629_v63 }
 0x40b   :  { %v4302_v9 = vpop.eup %4301 }
 0x40c   :  { %v632_v11 = vmul.f32 %v4302_v9, %v4294_v52  ;;  %3901 = vmatprep.mubr.msk.bf16.mxu1 %vm527_vm0, %v633_v8  ;;  %v699_v16 = vpop.permute.xlu1 %698 }
 0x40e   :  { %v634_v12 = vpack.c.bf16 %v632_v11, %v631_v10 }
 0x410   :  { %3902 = vmatmul.mubr.msk.bf16.vlgmr.msra.gmra.mrb[4].mxu1 %vm527_vm0, %v634_v12 }
 0x411   :  { %3906 = vmatpush3.bf16.xpose.msra.mxu1 %v713_v14  ;;  %3909 = vmatprep.mubr.msk.bf16.mxu1 %vm527_vm0, %v697_v13 }
 0x412   :  { %4080 = vmatprep.subr.msk.bf16.mxu1 %vm527_vm0, %v705_v6 }
 0x419   :  { %3908 = vmatpush3.bf16.xpose.msra.mxu1 %v716_v15 }
 0x420   :  { %3910 = vmatmul.mubr.msk.bf16.vlgmr.msra.gmra.mrb[8].mxu1 %vm527_vm0, %v699_v16 }
 0x4e3   :  { %v3903_v18 = vpop.f32.mrb[4].mxu1 }
 0x4e4   :  { %692 = vst.msk [vmem:[#allocation2 + $0x10] sm:$0xff] %vm527_vm0, %v3903_v18  ;;  %v675_v19 = vpop.f32.mrb[5].mxu1 }
 0x4e5   :  { %690 = vst.msk [vmem:[#allocation2] sm:$0xff] %vm527_vm0, %v675_v19  ;;  %v3904_v20 = vpop.f32.mrb[6].mxu1 }
 0x4e6   :  { %693 = vst.msk [vmem:[#allocation2 + $0x18] sm:$0xff] %vm527_vm0, %v3904_v20  ;;  %v678_v21 = vpop.f32.mrb[7].mxu1 }
 0x4e7   :  { %691 = vst.msk [vmem:[#allocation2 + $0x8] sm:$0xff] %vm527_vm0, %v678_v21 }
 0x4f3   :  { %v3911_v22 = vpop.f32.mrb[8].mxu1 }
 0x4f4   :  { %v752_v23 = vpop.f32.mrb[9].mxu1  ;;  %v761_v26 = vadd.f32 %v3911_v22, %v5146_v1 }
 0x4f5   :  { %v753_v28 = vadd.f32 %v752_v23, %v5148_v2  ;;  %v3912_v29 = vpop.f32.mrb[10].mxu1 }
 0x4f6   :  { %v755_v30 = vpop.f32.mrb[11].mxu1  ;;  %v764_v36 = vadd.f32 %v3912_v29, %v5150_v4  ;;  %v773_v37 = vsel %vm527_vm0, %v761_v26, -inf }
 0x4f7   :  { %v756_v33 = vadd.f32 %v755_v30, %v5153_v7  ;;  %v767_v34 = vsel %vm527_vm0, %v753_v28, -inf }
 0x4f8   :  { %768 = vmax.xlane.f32.xlu0 %v767_v34  ;;  %v776_v38 = vsel %vm527_vm0, %v764_v36, -inf }
 0x4f9   :  { %v770_v35 = vsel %vm527_vm0, %v756_v33, -inf }
 0x4fa   :  { %771 = vmax.xlane.f32.xlu1 %v770_v35 }
 0x4fc   :  { %774 = vmax.xlane.f32.xlu0 %v773_v37 }
 0x500   :  { %777 = vmax.xlane.f32.xlu0 %v776_v38 }
 0x50b   :  { %817 = vrot.lane.b32.xlu1 %v5166_v31, %s4831_s12 }
 0x585   :  { %v769_v39 = vpop.xlane.xlu0 %768 }
 0x586   :  { %v779_v42 = vsub.f32 %v753_v28, %v769_v39 }
 0x587   :  { %v772_v43 = vpop.xlane.xlu1 %771 }
 0x588   :  { %v783_v46 = vmul.f32 1.442695, %v779_v42  ;;  %v780_v47 = vsub.f32 %v756_v33, %v772_v43 }
 0x589   :  { %v775_v44 = vpop.xlane.xlu0 %774 }
 0x58a   :  { %v781_v45 = vsub.f32 %v761_v26, %v775_v44  ;;  %v785_v51 = vmul.f32 1.442695, %v780_v47 }
 0x58b   :  { %v818_v63 = vpop.permute.xlu1 %817 }
 0x58c   :  { %v787_v48 = vmul.f32 1.442695, %v781_v45 }
 0x58d   :  { %v778_v49 = vpop.xlane.xlu0 %777 }
 0x58e   :  { %4303 = vpow2.f32 %v787_v48  ;;  %v782_v50 = vsub.f32 %v764_v36, %v778_v49 }
 0x58f   :  { %4305 = vpow2.f32 %v783_v46 }
 0x590   :  { %v789_v52 = vmul.f32 1.442695, %v782_v50 }
 0x592   :  { %4307 = vpow2.f32 %v789_v52 }
 0x593   :  { %4309 = vpow2.f32 %v785_v51 }
 0x598   :  { %v4304_v55 = vpop.eup %4303 }
 0x599   :  { %v797_v56 = vsel %vm527_vm0, %v4304_v55, 0.0  ;;  %v4306_v57 = vpop.eup %4305 }
 0x59a   :  { %798 = vadd.xlane.f32.xlu0 %v797_v56  ;;  %v791_v59 = vsel %vm527_vm0, %v4306_v57, 0.0 }
 0x59c   :  { %v4308_v58 = vpop.eup %4307 }
 0x59d   :  { %v800_v60 = vsel %vm527_vm0, %v4308_v58, 0.0  ;;  %v4310_v61 = vpop.eup %4309 }
 0x59e   :  { %792 = vadd.xlane.f32.xlu0 %v791_v59  ;;  %801 = vadd.xlane.f32.xlu1 %v800_v60  ;;  %v794_v62 = vsel %vm527_vm0, %v4310_v61, 0.0 }
 0x5a2   :  { %795 = vadd.xlane.f32.xlu1 %v794_v62 }
 0x5b3   :  { %901 = vrot.lane.b32.xlu1 %v5125_v40, %s4812_s3 }
 0x5b4   :  { %815 = vrot.lane.b32.xlu0 %v5168_v32, %s4831_s12 }
 0x5b7   :  { %903 = vrot.lane.b32.xlu1 %v5135_v53, %s4812_s3 }
 0x5b8   :  { %897 = vrot.lane.b32.xlu0 %v5127_v41, %s4812_s3 }
 0x5bb   :  { %899 = vrot.lane.b32.xlu1 %v5137_v54, %s4812_s3 }
 0x627   :  { %v799_v3 = vpop.xlane.xlu0 %798 }
 0x62b   :  { %v802_v5 = vpop.xlane.xlu1 %801  ;;  %v793_v6 = vpop.xlane.xlu0 %792 }
 0x62c   :  { %4311 = vrcp.f32 %v802_v5 }
 0x62d   :  { %4313 = vrcp.f32 %v793_v6 }
 0x62e   :  { %4315 = vrcp.f32 %v799_v3 }
 0x62f   :  { %v796_v8 = vpop.xlane.xlu1 %795  ;;  %v816_v9 = vpop.permute.xlu0 %815 }
 0x630   :  { %4317 = vrcp.f32 %v796_v8  ;;  %3913 = vmatprep.subr.bf16.mxu0 %v816_v9 }
 0x631   :  { %3914 = vmatpush3.bf16.msra.mxu0 %v816_v9 }
 0x632   :  { %3915 = vmatprep.subr.bf16.mxu0 %v818_v63 }
 0x633   :  { %v902_v10 = vpop.permute.xlu1 %901  ;;  %v898_v22 = vpop.permute.xlu0 %897 }
 0x634   :  { %v912_v23 = vsel %vm527_vm0, %v902_v10, 0 }
 0x635   :  { %3916 = vmatpush3.bf16.msra.mxu0 %v818_v63 }
 0x636   :  { %4081 = vmatprep.subr.msk.bf16.mxu0 %vm527_vm0, %v902_v10  ;;  %v4312_v11 = vpop.eup %4311 }
 0x637   :  { %v4314_v12 = vpop.eup %4313  ;;  %v810_v15 = vmul.f32 %v4312_v11, %v4308_v58  ;;  %v904_v28 = vpop.permute.xlu1 %903 }
 0x638   :  { %v4316_v13 = vpop.eup %4315  ;;  %v807_v16 = vmul.f32 %v4314_v12, %v4306_v57  ;;  %v915_v29 = vsel %vm527_vm0, %v904_v28, 0 }
 0x639   :  { %v809_v19 = vmul.f32 %v4316_v13, %v4304_v55 }
 0x63a   :  { %v4318_v14 = vpop.eup %4317 }
 0x63b   :  { %v808_v18 = vmul.f32 %v4318_v14, %v4310_v61  ;;  %v812_v21 = vpack.c.bf16 %v810_v15, %v809_v19  ;;  %v900_v30 = vpop.permute.xlu1 %899 }
 0x63d   :  { %v811_v20 = vpack.c.bf16 %v808_v18, %v807_v16 }
 0x63f   :  { %3917 = vmatprep.mubr.msk.bf16.mxu0 %vm527_vm0, %v811_v20 }
 0x640   :  { %3918 = vmatmul.mubr.msk.bf16.vlgmr.msra.gmra.mrb[12].mxu0 %vm527_vm0, %v812_v21 }
 0x641   :  { %3922 = vmatpush3.bf16.xpose.msra.mxu0 %v912_v23  ;;  %3925 = vmatprep.mubr.msk.bf16.mxu0 %vm527_vm0, %v898_v22 }
 0x642   :  { %4082 = vmatprep.subr.msk.bf16.mxu0 %vm527_vm0, %v904_v28 }
 0x649   :  { %3924 = vmatpush3.bf16.xpose.msra.mxu0 %v915_v29 }
 0x650   :  { %3926 = vmatmul.mubr.msk.bf16.vlgmr.msra.gmra.mrb[16].mxu0 %vm527_vm0, %v900_v30 }
 0x713   :  { %v5230_v26 = vpop.f32.mrb[12].mxu0 }
 0x714   :  { %v5232_v33 = vpop.f32.mrb[13].mxu0 }
 0x715   :  { %v5234_v34 = vpop.f32.mrb[14].mxu0 }
 0x716   :  { %v5236_v35 = vpop.f32.mrb[15].mxu0 }
 0x723   :  { %v3927_v36 = vpop.f32.mrb[16].mxu0 }
 0x724   :  { %v951_v37 = vpop.f32.mrb[17].mxu0  ;;  %v960_v43 = vadd.f32 %v3927_v36, %v5146_v1 }
 0x725   :  { %v952_v38 = vadd.f32 %v951_v37, %v5148_v2  ;;  %v3928_v39 = vpop.f32.mrb[18].mxu0 }
 0x726   :  { %v954_v42 = vpop.f32.mrb[19].mxu0  ;;  %v963_v47 = vadd.f32 %v3928_v39, %v5150_v4  ;;  %v972_v48 = vsel %vm527_vm0, %v960_v43, -inf }
 0x727   :  { %v955_v44 = vadd.f32 %v954_v42, %v5153_v7  ;;  %v966_v45 = vsel %vm527_vm0, %v952_v38, -inf }
 0x728   :  { %967 = vmax.xlane.f32.xlu0 %v966_v45  ;;  %v975_v49 = vsel %vm527_vm0, %v963_v47, -inf }
 0x729   :  { %v969_v46 = vsel %vm527_vm0, %v955_v44, -inf }
 0x72a   :  { %970 = vmax.xlane.f32.xlu1 %v969_v46 }
 0x72c   :  { %973 = vmax.xlane.f32.xlu0 %v972_v48 }
 0x730   :  { %976 = vmax.xlane.f32.xlu0 %v975_v49 }
 0x73b   :  { %1014 = vrot.lane.b32.xlu1 %v5166_v31, %s4812_s3 }
 0x7b5   :  { %v968_v50 = vpop.xlane.xlu0 %967 }
 0x7b6   :  { %v978_v51 = vsub.f32 %v952_v38, %v968_v50 }
 0x7b7   :  { %v971_v52 = vpop.xlane.xlu1 %970 }
 0x7b8   :  { %v982_v57 = vmul.f32 1.442695, %v978_v51  ;;  %v979_v58 = vsub.f32 %v955_v44, %v971_v52 }
 0x7b9   :  { %v974_v55 = vpop.xlane.xlu0 %973 }
 0x7ba   :  { %v980_v56 = vsub.f32 %v960_v43, %v974_v55  ;;  %v984_v62 = vmul.f32 1.442695, %v979_v58 }
 0x7bb   :  { %v1015_v13 = vpop.permute.xlu1 %1014 }
 0x7bc   :  { %v986_v59 = vmul.f32 1.442695, %v980_v56 }
 0x7bd   :  { %v977_v60 = vpop.xlane.xlu0 %976 }
 0x7be   :  { %4319 = vpow2.f32 %v986_v59  ;;  %v981_v61 = vsub.f32 %v963_v47, %v977_v60 }
 0x7bf   :  { %4321 = vpow2.f32 %v982_v57 }
 0x7c0   :  { %v988_v63 = vmul.f32 1.442695, %v981_v61 }
 0x7c2   :  { %4323 = vpow2.f32 %v988_v63 }
 0x7c3   :  { %4325 = vpow2.f32 %v984_v62 }
 0x7c8   :  { %v4320_v3 = vpop.eup %4319 }
 0x7c9   :  { %v996_v5 = vsel %vm527_vm0, %v4320_v3, 0.0  ;;  %v4322_v6 = vpop.eup %4321 }
 0x7ca   :  { %997 = vadd.xlane.f32.xlu0 %v996_v5  ;;  %v990_v9 = vsel %vm527_vm0, %v4322_v6, 0.0 }
 0x7cc   :  { %v4324_v8 = vpop.eup %4323 }
 0x7cd   :  { %v999_v10 = vsel %vm527_vm0, %v4324_v8, 0.0  ;;  %v4326_v11 = vpop.eup %4325 }
 0x7ce   :  { %991 = vadd.xlane.f32.xlu0 %v990_v9  ;;  %1000 = vadd.xlane.f32.xlu1 %v999_v10  ;;  %v993_v12 = vsel %vm527_vm0, %v4326_v11, 0.0 }
 0x7d2   :  { %994 = vadd.xlane.f32.xlu1 %v993_v12 }
 0x7e3   :  { %1098 = vrot.lane.b32.xlu1 %v5125_v40, %s4829_s28 }
 0x7e4   :  { %1012 = vrot.lane.b32.xlu0 %v5168_v32, %s4812_s3 }
 0x7e7   :  { %1100 = vrot.lane.b32.xlu1 %v5135_v53, %s4829_s28 }
 0x7e8   :  { %1094 = vrot.lane.b32.xlu0 %v5127_v41, %s4829_s28 }
 0x7eb   :  { %1096 = vrot.lane.b32.xlu1 %v5137_v54, %s4829_s28 }
 0x857   :  { %v998_v14 = vpop.xlane.xlu0 %997 }
 0x85b   :  { %v1001_v15 = vpop.xlane.xlu1 %1000  ;;  %v992_v16 = vpop.xlane.xlu0 %991 }
 0x85c   :  { %4327 = vrcp.f32 %v1001_v15 }
 0x85d   :  { %4329 = vrcp.f32 %v992_v16 }
 0x85e   :  { %4331 = vrcp.f32 %v998_v14 }
 0x85f   :  { %v995_v40 = vpop.xlane.xlu1 %994  ;;  %v1013_v18 = vpop.permute.xlu0 %1012 }
 0x860   :  { %4333 = vrcp.f32 %v995_v40  ;;  %3929 = vmatprep.subr.bf16.mxu1 %v1013_v18 }
 0x861   :  { %3930 = vmatpush3.bf16.msra.mxu1 %v1013_v18 }
 0x862   :  { %3931 = vmatprep.subr.bf16.mxu1 %v1015_v13 }
 0x863   :  { %v1099_v53 = vpop.permute.xlu1 %1098  ;;  %v1095_v36 = vpop.permute.xlu0 %1094 }
 0x864   :  { %v1109_v37 = vsel %vm527_vm0, %v1099_v53, 0 }
 0x865   :  { %3932 = vmatpush3.bf16.msra.mxu1 %v1015_v13 }
 0x866   :  { %4083 = vmatprep.subr.msk.bf16.mxu1 %vm527_vm0, %v1099_v53  ;;  %v4328_v41 = vpop.eup %4327 }
 0x867   :  { %v4330_v19 = vpop.eup %4329  ;;  %v1009_v21 = vmul.f32 %v4328_v41, %v4324_v8  ;;  %v1101_v38 = vpop.permute.xlu1 %1100 }
 0x868   :  { %v4332_v54 = vpop.eup %4331  ;;  %v1006_v22 = vmul.f32 %v4330_v19, %v4322_v6  ;;  %v1112_v39 = vsel %vm527_vm0, %v1101_v38, 0 }
 0x869   :  { %v1008_v28 = vmul.f32 %v4332_v54, %v4320_v3 }
 0x86a   :  { %v4334_v20 = vpop.eup %4333 }
 0x86b   :  { %v1007_v23 = vmul.f32 %v4334_v20, %v4326_v11  ;;  %v1011_v30 = vpack.c.bf16 %v1009_v21, %v1008_v28  ;;  %v1097_v42 = vpop.permute.xlu1 %1096 }
 0x86d   :  { %v1010_v29 = vpack.c.bf16 %v1007_v23, %v1006_v22 }
 0x86f   :  { %3933 = vmatprep.mubr.msk.bf16.mxu1 %vm527_vm0, %v1010_v29 }
 0x870   :  { %3934 = vmatmul.mubr.msk.bf16.vlgmr.msra.gmra.mrb[12].mxu1 %vm527_vm0, %v1011_v30 }
 0x871   :  { %3938 = vmatpush3.bf16.xpose.msra.mxu1 %v1109_v37  ;;  %3941 = vmatprep.mubr.msk.bf16.mxu1 %vm527_vm0, %v1095_v36 }
 0x872   :  { %4084 = vmatprep.subr.msk.bf16.mxu1 %vm527_vm0, %v1101_v38 }
 0x879   :  { %3940 = vmatpush3.bf16.xpose.msra.mxu1 %v1112_v39 }
 0x880   :  { %3942 = vmatmul.mubr.msk.bf16.vlgmr.msra.gmra.mrb[16].mxu1 %vm527_vm0, %v1097_v42 }
 0x943   :  { %v3935_v43 = vpop.f32.mrb[12].mxu1 }
 0x944   :  { %v1058_v44 = vpop.f32.mrb[13].mxu1 }
 0x945   :  { %v3936_v45 = vpop.f32.mrb[14].mxu1 }
 0x946   :  { %v1061_v46 = vpop.f32.mrb[15].mxu1 }
 0x953   :  { %v3943_v47 = vpop.f32.mrb[16].mxu1 }
 0x954   :  { %v1148_v48 = vpop.f32.mrb[17].mxu1  ;;  %v1157_v52 = vadd.f32 %v3943_v47, %v5146_v1  ;;  %v4154_v47 = vld [vmem:[#allocation12 + $0x18] sm:$0xff]  }
 0x955   :  { %v1149_v49 = vadd.f32 %v1148_v48, %v5148_v2  ;;  %v3944_v50 = vpop.f32.mrb[18].mxu1  ;;  %v4155_v48 = vld [vmem:[#allocation12 + $0x20] sm:$0xff]  }
 0x956   :  { %v1151_v51 = vpop.f32.mrb[19].mxu1  ;;  %v1160_v58 = vadd.f32 %v3944_v50, %v5150_v4  ;;  %v1169_v59 = vsel %vm527_vm0, %v1157_v52, -inf  ;;  %v4157_v50 = vld [vmem:[#allocation12 + $0x30] sm:$0xff]  }
 0x957   :  { %v1152_v55 = vadd.f32 %v1151_v51, %v5153_v7  ;;  %v1163_v56 = vsel %vm527_vm0, %v1149_v49, -inf  ;;  %v4158_v51 = vld [vmem:[#allocation12 + $0x38] sm:$0xff]  }
 0x958   :  { %1164 = vmax.xlane.f32.xlu0 %v1163_v56  ;;  %v1172_v60 = vsel %vm527_vm0, %v1160_v58, -inf }
 0x959   :  { %v1166_v57 = vsel %vm527_vm0, %v1152_v55, -inf }
 0x95a   :  { %1167 = vmax.xlane.f32.xlu1 %v1166_v57 }
 0x95c   :  { %1170 = vmax.xlane.f32.xlu0 %v1169_v59 }
 0x960   :  { %1173 = vmax.xlane.f32.xlu0 %v1172_v60 }
 0x9e5   :  { %v1165_v2 = vpop.xlane.xlu0 %1164 }
 0x9e6   :  { %v1175_v61 = vsub.f32 %v1149_v49, %v1165_v2  ;;  %v4156_v49 = vld [vmem:[#allocation12 + $0x28] sm:$0xff]  }
 0x9e7   :  { %v1168_v62 = vpop.xlane.xlu1 %1167 }
 0x9e8   :  { %v1179_v7 = vmul.f32 1.442695, %v1175_v61  ;;  %v1176_v3 = vsub.f32 %v1152_v55, %v1168_v62 }
 0x9e9   :  { %v1171_v1 = vpop.xlane.xlu0 %1170 }
 0x9ea   :  { %v1177_v63 = vsub.f32 %v1157_v52, %v1171_v1  ;;  %v1181_v9 = vmul.f32 1.442695, %v1176_v3 }
 0x9ec   :  { %v1183_v5 = vmul.f32 1.442695, %v1177_v63 }
 0x9ed   :  { %v1174_v6 = vpop.xlane.xlu0 %1173 }
 0x9ee   :  { %4335 = vpow2.f32 %v1183_v5  ;;  %v1178_v8 = vsub.f32 %v1160_v58, %v1174_v6  ;;  %v1313_v5 = vld [vmem:[#allocation23 + $0x1] ss:$0 sm:$0xff] }
 0x9ef   :  { %4337 = vpow2.f32 %v1179_v7 }
 0x9f0   :  { %v1185_v4 = vmul.f32 1.442695, %v1178_v8 }
 0x9f2   :  { %4339 = vpow2.f32 %v1185_v4 }
 0x9f3   :  { %4341 = vpow2.f32 %v1181_v9 }
 0x9f8   :  { %v4336_v10 = vpop.eup %4335 }
 0x9f9   :  { %v1193_v11 = vsel %vm527_vm0, %v4336_v10, 0.0  ;;  %v4338_v12 = vpop.eup %4337 }
 0x9fa   :  { %1194 = vadd.xlane.f32.xlu0 %v1193_v11  ;;  %v1187_v14 = vsel %vm527_vm0, %v4338_v12, 0.0 }
 0x9fc   :  { %v4340_v13 = vpop.eup %4339 }
 0x9fd   :  { %v1196_v15 = vsel %vm527_vm0, %v4340_v13, 0.0  ;;  %v4342_v16 = vpop.eup %4341 }
 0x9fe   :  { %1188 = vadd.xlane.f32.xlu0 %v1187_v14  ;;  %1197 = vadd.xlane.f32.xlu1 %v1196_v15  ;;  %v1190_v40 = vsel %vm527_vm0, %v4342_v16, 0.0  ;;  %v4480_v15 = vld [vmem:[#allocation3 + $0x8] sm:$0xff] }
 0xa02   :  { %1191 = vadd.xlane.f32.xlu1 %v1190_v40 }
 0xa13   :  { %1211 = vrot.lane.b32.xlu1 %v5166_v31, %s4829_s28 }
 0xa14   :  { %1209 = vrot.lane.b32.xlu0 %v5168_v32, %s4829_s28 }
 0xa17   :  { %880 = vrot.lane.b32.xlu1 %v5232_v33, %s4829_s28 }
 0xa18   :  { %884 = vrot.lane.b32.xlu0 %v5230_v26, %s4829_s28 }
 0xa1b   :  { %882 = vrot.lane.b32.xlu1 %v5236_v35, %s4829_s28 }
 0xa1c   :  { %1077 = vrot.lane.b32.xlu0 %v1058_v44, %s4812_s3  ;;  %v4151_v44 = vld [vmem:[#allocation12] sm:$0xff]  }
 0xa1f   :  { %886 = vrot.lane.b32.xlu1 %v5234_v34, %s4829_s28 }
 0xa20   :  { %1081 = vrot.lane.b32.xlu0 %v3935_v43, %s4812_s3 }
 0xa23   :  { %1079 = vrot.lane.b32.xlu1 %v1061_v46, %s4812_s3  ;;  %v4153_v46 = vld [vmem:[#allocation12 + $0x10] sm:$0xff]  }
 0xa27   :  { %1083 = vrot.lane.b32.xlu1 %v3936_v45, %s4812_s3  ;;  %v4152_v45 = vld [vmem:[#allocation12 + $0x8] sm:$0xff]  }
 0xa87   :  { %v1195_v31 = vpop.xlane.xlu0 %1194 }
 0xa8b   :  { %v1198_v32 = vpop.xlane.xlu1 %1197  ;;  %v1189_v33 = vpop.xlane.xlu0 %1188 }
 0xa8c   :  { %4343 = vrcp.f32 %v1198_v32 }
 0xa8d   :  { %4345 = vrcp.f32 %v1189_v33  ;;  %v4482_v33 = vld [vmem:[#allocation3 + $0x18] sm:$0xff] }
 0xa8e   :  { %4347 = vrcp.f32 %v1195_v31  ;;  %v4481_v31 = vld [vmem:[#allocation3 + $0x10] sm:$0xff] }
 0xa8f   :  { %v1192_v26 = vpop.xlane.xlu1 %1191  ;;  %v1210_v18 = vpop.permute.xlu0 %1209 }
 0xa90   :  { %4349 = vrcp.f32 %v1192_v26  ;;  %3945 = vmatprep.subr.bf16.mxu0 %v1210_v18 }
 0xa91   :  { %3946 = vmatpush3.bf16.msra.mxu0 %v1210_v18  ;;  %v4159_v18 = vld [vmem:[#allocation15] ss:$8 sps:$4 sm:$0xff]  }
 0xa93   :  { %v1212_v35 = vpop.permute.xlu1 %1211  ;;  %v885_v34 = vpop.permute.xlu0 %884 }
 0xa94   :  { %895 = vst.msk [vmem:[#allocation2 + $0x10] sm:$0xff] %vm892_vm1, %v885_v34  ;;  %3947 = vmatprep.subr.bf16.mxu0 %v1212_v35  ;;  %v4164_v34 = vld [vmem:[#allocation15 + $0x14] ss:$8 sps:$4 sm:$0xff]  }
 0xa95   :  { %3948 = vmatpush3.bf16.msra.mxu0 %v1212_v35  ;;  %v4161_v35 = vld [vmem:[#allocation15 + $0x4] ss:$8 sps:$4 sm:$0xff]  }
 0xa96   :  { %v4344_v53 = vpop.eup %4343  ;;  %3953 = vmatprep.subr.bf16.mxu0 %v4151_v44 }
 0xa97   :  { %v881_v41 = vpop.permute.xlu1 %880  ;;  %v1078_v19 = vpop.permute.xlu0 %1077  ;;  %v1206_v22 = vmul.f32 %v4344_v53, %v4340_v13  ;;  %v4479_v13 = vld [vmem:[#allocation3] sm:$0xff] }
 0xa98   :  { %v4346_v54 = vpop.eup %4345  ;;  %893 = vst.msk [vmem:[#allocation2] sm:$0xff] %vm892_vm1, %v881_v41  ;;  %v4171_v53 = vld [vmem:[#allocation14] sm:$0xff]   ;;  %v4162_v41 = vld [vmem:[#allocation15 + $0x10] ss:$8 sps:$4 sm:$0xff]  }
 0xa99   :  { %v4348_v20 = vpop.eup %4347  ;;  %1090 = vst.msk [vmem:[#allocation2] sm:$0xff] %vm1089_vm2, %v1078_v19  ;;  %v1203_v29 = vmul.f32 %v4346_v54, %v4338_v12  ;;  %v4167_v19 = vld [vmem:[#allocation15 + $0x24] ss:$8 sps:$4 sm:$0xff]   ;;  %3973 = vmatprep.subr.bf16.mxu1 %v4171_v53  ;;  %v4165_v54 = vld [vmem:[#allocation15 + $0x20] ss:$8 sps:$4 sm:$0xff]  }
 0xa9a   :  { %v4350_v21 = vpop.eup %4349  ;;  %v1205_v36 = vmul.f32 %v4348_v20, %v4336_v10  ;;  %3974 = vmatpush3.bf16.msra.mxu1 %v4171_v53  ;;  %v4170_v20 = vld [vmem:[#allocation15 + $0x34] ss:$8 sps:$4 sm:$0xff]  }
 0xa9b   :  { %v883_v23 = vpop.permute.xlu1 %882  ;;  %v1082_v28 = vpop.permute.xlu0 %1081  ;;  %v1204_v30 = vmul.f32 %v4350_v21, %v4342_v16  ;;  %v4168_v21 = vld [vmem:[#allocation15 + $0x30] ss:$8 sps:$4 sm:$0xff]  }
 0xa9c   :  { %894 = vst.msk [vmem:[#allocation2 + $0x8] sm:$0xff] %vm892_vm1, %v883_v23  ;;  %v1208_v38 = vpack.c.bf16 %v1206_v22, %v1205_v36  ;;  %v4174_v22 = vld [vmem:[#allocation15 + $0x44] ss:$8 sps:$4 sm:$0xff]   ;;  %v4172_v23 = vld [vmem:[#allocation15 + $0x40] ss:$8 sps:$4 sm:$0xff]  }
 0xa9d   :  { %1092 = vst.msk [vmem:[#allocation2 + $0x10] sm:$0xff] %vm1089_vm2, %v1082_v28  ;;  %v1207_v37 = vpack.c.bf16 %v1204_v30, %v1203_v29 }
 0xa9f   :  { %v887_v39 = vpop.permute.xlu1 %886  ;;  %3949 = vmatprep.mubr.msk.bf16.mxu0 %vm527_vm0, %v1207_v37 }
 0xaa0   :  { %896 = vst.msk [vmem:[#allocation2 + $0x18] sm:$0xff] %vm892_vm1, %v887_v39  ;;  %3950 = vmatmul.mubr.msk.bf16.vlgmr.msra.gmra.mrb[20].mxu0 %vm527_vm0, %v1208_v38 }
 0xaa1   :  { %3954 = vmatpush3.bf16.msra.mxu0 %v4151_v44 }
 0xaa2   :  { %3955 = vmatprep.subr.bf16.mxu0 %v4152_v45 }
 0xaa3   :  { %v1080_v42 = vpop.permute.xlu1 %1079 }
 0xaa4   :  { %1091 = vst.msk [vmem:[#allocation2 + $0x8] sm:$0xff] %vm1089_vm2, %v1080_v42 }
 0xaa5   :  { %3956 = vmatpush3.bf16.msra.mxu0 %v4152_v45 }
 0xaa6   :  { %3957 = vmatprep.subr.bf16.mxu0 %v4153_v46 }
 0xaa7   :  { %v1084_v43 = vpop.permute.xlu1 %1083 }
 0xaa8   :  { %1093 = vst.msk [vmem:[#allocation2 + $0x18] sm:$0xff] %vm1089_vm2, %v1084_v43 }
 0xaa9   :  { %3958 = vmatpush3.bf16.msra.mxu0 %v4153_v46 }
 0xaaa   :  { %3959 = vmatprep.subr.bf16.mxu0 %v4154_v47 }
 0xaad   :  { %3960 = vmatpush3.bf16.msra.mxu0 %v4154_v47 }
 0xaae   :  { %3961 = vmatprep.subr.bf16.mxu0 %v4155_v48 }
 0xab1   :  { %3962 = vmatpush3.bf16.msra.mxu0 %v4155_v48 }
 0xab2   :  { %3963 = vmatprep.subr.bf16.mxu0 %v4156_v49 }
 0xab5   :  { %3964 = vmatpush3.bf16.msra.mxu0 %v4156_v49 }
 0xab6   :  { %3965 = vmatprep.subr.bf16.mxu0 %v4157_v50 }
 0xab9   :  { %3966 = vmatpush3.bf16.msra.mxu0 %v4157_v50 }
 0xaba   :  { %3967 = vmatprep.subr.bf16.mxu0 %v4158_v51 }
 0xabd   :  { %3968 = vmatpush3.bf16.msra.mxu0 %v4158_v51  ;;  %v4175_v51 = vld [vmem:[#allocation14 + $0x8] sm:$0xff]  }
 0xabe   :  { %1695 = vmatprep.subr.bf16.mxu0 %v4161_v35  ;;  %3975 = vmatprep.subr.bf16.mxu1 %v4175_v51 }
 0xabf   :  { %3976 = vmatpush3.bf16.msra.mxu1 %v4175_v51 }
 0xb73   :  { %v3951_v52 = vpop.f32.mrb[20].mxu0 }
 0xb74   :  { %v1255_v55 = vpop.f32.mrb[21].mxu0 }
 0xb75   :  { %1274 = vrot.lane.b32.xlu0 %v1255_v55, %s4831_s12  ;;  %v3952_v56 = vpop.f32.mrb[22].mxu0  ;;  %v4176_v55 = vld [vmem:[#allocation15 + $0x50] ss:$8 sps:$4 sm:$0xff]  }
 0xb76   :  { %v1258_v57 = vpop.f32.mrb[23].mxu0 }
 0xb77   :  { %1276 = vrot.lane.b32.xlu1 %v1258_v57, %s4831_s12  ;;  %v4182_v57 = vld [vmem:[#allocation15 + $0x64] ss:$8 sps:$4 sm:$0xff]  }
 0xb79   :  { %1278 = vrot.lane.b32.xlu0 %v3951_v52, %s4831_s12  ;;  %v4178_v52 = vld [vmem:[#allocation15 + $0x54] ss:$8 sps:$4 sm:$0xff]  }
 0xb7b   :  { %1280 = vrot.lane.b32.xlu1 %v3952_v56, %s4831_s12  ;;  %v4179_v56 = vld [vmem:[#allocation14 + $0x10] sm:$0xff]  }
 0xb7c   :  { %3977 = vmatprep.subr.bf16.mxu1 %v4179_v56 }
 0xb7d   :  { %3978 = vmatpush3.bf16.msra.mxu1 %v4179_v56 }
 0xbe7   :  { %v1275_v58 = vpop.permute.xlu0 %1274 }
 0xbe8   :  { %1287 = vst.msk [vmem:[#allocation2] sm:$0xff] %vm1286_vm3, %v1275_v58  ;;  %v4180_v58 = vld [vmem:[#allocation15 + $0x60] ss:$8 sps:$4 sm:$0xff]  }
 0xbe9   :  { %v1277_v59 = vpop.permute.xlu1 %1276 }
 0xbea   :  { %1288 = vst.msk [vmem:[#allocation2 + $0x8] sm:$0xff] %vm1286_vm3, %v1277_v59  ;;  %v4183_v59 = vld [vmem:[#allocation14 + $0x18] sm:$0xff]  }
 0xbeb   :  { %v1279_v60 = vpop.permute.xlu0 %1278  ;;  %3979 = vmatprep.subr.bf16.mxu1 %v4183_v59 }
 0xbec   :  { %1289 = vst.msk [vmem:[#allocation2 + $0x10] sm:$0xff] %vm1286_vm3, %v1279_v60  ;;  %v4186_v60 = vld [vmem:[#allocation15 + $0x74] ss:$8 sps:$4 sm:$0xff]   ;;  %3980 = vmatpush3.bf16.msra.mxu1 %v4183_v59 }
 0xbed   :  { %v1281_v2 = vpop.permute.xlu1 %1280 }
 0xbee   :  { %1290 = vst.msk [vmem:[#allocation2 + $0x18] sm:$0xff] %vm1286_vm3, %v1281_v2  ;;  %v4184_v2 = vld [vmem:[#allocation15 + $0x70] ss:$8 sps:$4 sm:$0xff]  }
 0xbef   :  { %v1291_v61 = vld [vmem:[#allocation2] sm:$0xff] }
 0xbf1   :  { %v1292_v62 = vld [vmem:[#allocation2 + $0x8] sm:$0xff] }
 0xbf2   :  { %v1295_v1 = vpack.c.bf16 %v1292_v62, %v1291_v61  ;;  %v226_v61 = vld [vmem:[#allocation6] sm:$0xff]  ;;  %v227_v62 = vld [vmem:[#allocation6 + $0x8] sm:$0xff] }
 0xbf3   :  { %v1293_v63 = vld [vmem:[#allocation2 + $0x10] sm:$0xff] }
 0xbf4   :  { %3969 = vmatprep.mubr.bf16.mxu0 %v1295_v1  ;;  %v4187_v1 = vld [vmem:[#allocation14 + $0x20] sm:$0xff]  }
 0xbf5   :  { %v1294_v7 = vld [vmem:[#allocation2 + $0x18] sm:$0xff]  ;;  %3981 = vmatprep.subr.bf16.mxu1 %v4187_v1 }
 0xbf6   :  { %v1296_v3 = vpack.c.bf16 %v1294_v7, %v1293_v63  ;;  %v230_v63 = vpack.c.bf16 %v227_v62, %v226_v61  ;;  %3982 = vmatpush3.bf16.msra.mxu1 %v4187_v1  ;;  %v4188_v7 = vld [vmem:[#allocation14 + $0x28] sm:$0xff]  }
 0xbf7   :  { %3983 = vmatprep.subr.bf16.mxu1 %v4188_v7 }
 0xbf8   :  { %3970 = vmatmul.mubr.bf16.vlgmr.msra.gmra.mrb[24].mxu0 %v1296_v3  ;;  %v228_v3 = vld [vmem:[#allocation6 + $0x10] sm:$0xff] }
 0xbf9   :  { %1727 = vmatprep.mubr.bf16.mxu0 %v4830_v0  ;;  %1696 = vmatpush1.bf16.msra.mxu0 %v4159_v18  ;;  %v1415_v18 = vld [vmem:[#allocation23 + $0x2] ss:$0 sm:$0xff] }
 0xbfa   :  { %1697 = vmatprep.subr.bf16.mxu0 %v4164_v34  ;;  %3984 = vmatpush3.bf16.msra.mxu1 %v4188_v7 }
 0xbfd   :  { %1698 = vmatpush1.bf16.msra.mxu0 %v4162_v41 }
 0xbfe   :  { %1699 = vmatprep.subr.bf16.mxu0 %v4167_v19 }
 0xc01   :  { %1700 = vmatpush1.bf16.msra.mxu0 %v4165_v54  ;;  %v1416_v54 = vld [vmem:[#allocation23 + $0x3] ss:$0 sm:$0xff] }
 0xc02   :  { %1701 = vmatprep.subr.bf16.mxu0 %v4170_v20 }
 0xc05   :  { %1702 = vmatpush1.bf16.msra.mxu0 %v4168_v21 }
 0xc06   :  { %1703 = vmatprep.subr.bf16.mxu0 %v4174_v22 }
 0xc09   :  { %1704 = vmatpush1.bf16.msra.mxu0 %v4172_v23 }
 0xc0a   :  { %1705 = vmatprep.subr.bf16.mxu0 %v4178_v52 }
 0xc0d   :  { %1706 = vmatpush1.bf16.msra.mxu0 %v4176_v55 }
 0xc0e   :  { %1707 = vmatprep.subr.bf16.mxu0 %v4182_v57 }
 0xc11   :  { %1708 = vmatpush1.bf16.msra.mxu0 %v4180_v58 }
 0xc12   :  { %1709 = vmatprep.subr.bf16.mxu0 %v4186_v60 }
 0xc15   :  { %1710 = vmatpush1.bf16.msra.mxu0 %v4184_v2 }
 0xc18   :  { %1728 = vmatmul.mubr.bf16.vlgmr.msra.gmra.mrb[28].mxu0 %v230_v63 }
 0xc19   :  { %1737 = vmatprep.mubr.bf16.mxu0 %v4830_v0 }
 0xccb   :  { %v3971_v6 = vpop.f32.mrb[24].mxu0 }
 0xccc   :  { %v1396_v8 = vpop.f32.mrb[25].mxu0  ;;  %v1405_v11 = vadd.f32 %v3971_v6, %v1313_v5  ;;  %v4189_v6 = vld [vmem:[#allocation14 + $0x30] sm:$0xff]  }
 0xccd   :  { %v1397_v9 = vadd.f32 %v1396_v8, %v1313_v5  ;;  %v3972_v4 = vpop.f32.mrb[26].mxu0  ;;  %3985 = vmatprep.subr.bf16.mxu1 %v4189_v6 }
 0xcce   :  { %v1399_v10 = vpop.f32.mrb[27].mxu0  ;;  %v1408_v40 = vadd.f32 %v3972_v4, %v1313_v5  ;;  %v1413_v32 = vadd.f32 %v4481_v31, %v1405_v11  ;;  %3986 = vmatpush3.bf16.msra.mxu1 %v4189_v6 }
 0xccf   :  { %v1400_v12 = vadd.f32 %v1399_v10, %v1313_v5  ;;  %v1411_v14 = vadd.f32 %v4479_v13, %v1397_v9  ;;  %v229_v5 = vld [vmem:[#allocation6 + $0x18] sm:$0xff] }
 0xcd0   :  { %v1414_v26 = vadd.f32 %v4482_v33, %v1408_v40  ;;  %v231_v8 = vpack.c.bf16 %v229_v5, %v228_v3  ;;  %v4190_v9 = vld [vmem:[#allocation14 + $0x38] sm:$0xff]  }
 0xcd1   :  { %1417 = vadd.xlane.f32.xlu0 %v1411_v14  ;;  %v1412_v16 = vadd.f32 %v4480_v15, %v1400_v12  ;;  %3987 = vmatprep.subr.bf16.mxu1 %v4190_v9 }
 0xcd2   :  { %1738 = vmatmul.mubr.bf16.gmra.mrb[32].mxu0 %v231_v8  ;;  %3988 = vmatpush3.bf16.msra.mxu1 %v4190_v9  ;;  %v1488_v8 = vld [vmem:[#allocation23 + $0x4] ss:$0 sm:$0xff] }
 0xcd3   :  { %1419 = vadd.xlane.f32.xlu1 %v1412_v16 }
 0xcd5   :  { %1421 = vadd.xlane.f32.xlu0 %v1413_v32 }
 0xcd9   :  { %1423 = vadd.xlane.f32.xlu0 %v1414_v26 }
 0xd5e   :  { %v1418_v28 = vpop.xlane.xlu0 %1417 }
 0xd5f   :  { %v1426_v29 = vmul.f32 0.0078125, %v1418_v28 }
 0xd60   :  { %v1420_v30 = vpop.xlane.xlu1 %1419 }
 0xd61   :  { %v5317_v36 = vsub.f32 %v1411_v14, %v1426_v29  ;;  %v1427_v37 = vmul.f32 0.0078125, %v1420_v30 }
 0xd62   :  { %v1422_v38 = vpop.xlane.xlu0 %1421 }
 0xd63   :  { %v5319_v39 = vsub.f32 %v1412_v16, %v1427_v37  ;;  %v1428_v42 = vmul.f32 0.0078125, %v1422_v38  ;;  %v1434_v43 = vmul.f32 %v5317_v36, %v5317_v36 }
 0xd65   :  { %v5323_v44 = vsub.f32 %v1413_v32, %v1428_v42  ;;  %1438 = vadd.xlane.f32.xlu0 %v1434_v43  ;;  %v1435_v45 = vmul.f32 %v5319_v39, %v5319_v39  ;;  %v1603_v43 = vld [vmem:[#allocation23 + $0x5] ss:$8 sm:$0x3] }
 0xd66   :  { %v1424_v46 = vpop.xlane.xlu0 %1423 }
 0xd67   :  { %v1429_v47 = vmul.f32 0.0078125, %v1424_v46  ;;  %1440 = vadd.xlane.f32.xlu1 %v1435_v45  ;;  %v1436_v48 = vmul.f32 %v5323_v44, %v5323_v44  ;;  %v1612_v45 = vrot.slane %v1603_v43, %v5119_v27  ;;  %v1729_v46 = vpop.f32.mrb[28].mxu0 }
 0xd69   :  { %v5329_v49 = vsub.f32 %v1414_v26, %v1429_v47  ;;  %1442 = vadd.xlane.f32.xlu0 %v1436_v48  ;;  %v1731_v48 = vpop.f32.mrb[29].mxu0 }
 0xd6b   :  { %v1437_v50 = vmul.f32 %v5329_v49, %v5329_v49 }
 0xd6d   :  { %1444 = vadd.xlane.f32.xlu1 %v1437_v50  ;;  %v1733_v50 = vpop.f32.mrb[30].mxu0 }
 0xd6e   :  { %v1735_v52 = vpop.f32.mrb[31].mxu0 }
 0xd6f   :  { %v1736_v55 = vadd.f32 %v1735_v52, %v1612_v45 }
 0xda5   :  { %v1739_v59 = vpop.f32.mrb[32].mxu0 }
 0xda6   :  { %v1741_v2 = vpop.f32.mrb[33].mxu0 }
 0xda7   :  { %v1742_v61 = vadd.f32 %v1741_v2, %v1612_v45  ;;  %v1743_v62 = vpop.f32.mrb[34].mxu0 }
 0xda8   :  { %v1745_v63 = vpop.f32.mrb[35].mxu0 }
 0xda9   :  { %v1746_v7 = vadd.f32 %v1745_v63, %v1612_v45 }
 0xdab   :  { %v5364_v5 = vpack.c.bf16 %v1746_v7, %v1742_v61 }
 0xdf2   :  { %v1439_v4 = vpop.xlane.xlu0 %1438 }
 0xdf3   :  { %v1446_v10 = vmul.f32 0.0078125, %v1439_v4 }
 0xdf4   :  { %v1441_v11 = vpop.xlane.xlu1 %1440 }
 0xdf5   :  { %v1450_v12 = vadd.f32 1e-05, %v1446_v10  ;;  %v1447_v13 = vmul.f32 0.0078125, %v1441_v11 }
 0xdf6   :  { %v1443_v14 = vpop.xlane.xlu0 %1442 }
 0xdf7   :  { %4351 = vrsqrt.f32 %v1450_v12  ;;  %v1451_v15 = vadd.f32 1e-05, %v1447_v13  ;;  %v1448_v16 = vmul.f32 0.0078125, %v1443_v14 }
 0xdf9   :  { %4353 = vrsqrt.f32 %v1451_v15  ;;  %v1452_v40 = vadd.f32 1e-05, %v1448_v16 }
 0xdfa   :  { %v1445_v31 = vpop.xlane.xlu1 %1444 }
 0xdfb   :  { %4355 = vrsqrt.f32 %v1452_v40  ;;  %v1449_v32 = vmul.f32 0.0078125, %v1445_v31 }
 0xdfd   :  { %v1453_v33 = vadd.f32 1e-05, %v1449_v32 }
 0xdff   :  { %4357 = vrsqrt.f32 %v1453_v33 }
 0xe01   :  { %v4352_v26 = vpop.eup %4351 }
 0xe02   :  { %v1458_v35 = vmul.f32 %v4352_v26, %v5317_v36 }
 0xe03   :  { %v4354_v34 = vpop.eup %4353 }
 0xe04   :  { %v1459_v53 = vmul.f32 %v4354_v34, %v5319_v39  ;;  %v1462_v41 = vmul.f32 %v1458_v35, %v1415_v18  ;;  %v5382_v34 = vld [vmem:[#allocation9 + $0x10] sm:$0xff] }
 0xe05   :  { %v4356_v19 = vpop.eup %4355 }
 0xe06   :  { %v1460_v20 = vmul.f32 %v4356_v19, %v5323_v44  ;;  %v1463_v21 = vmul.f32 %v1459_v53, %v1415_v18  ;;  %v5337_v22 = vadd.f32 %v1462_v41, %v1416_v54  ;;  %v1608_v44 = vrot.slane %v1603_v43, %v5114_v25  ;;  %v5384_v41 = vld [vmem:[#allocation9 + $0x8] sm:$0xff] }
 0xe08   :  { %v5339_v23 = vadd.f32 %v1463_v21, %v1416_v54  ;;  %v1464_v36 = vmul.f32 %v1460_v20, %v1415_v18  ;;  %v1730_v47 = vadd.f32 %v1729_v46, %v1608_v44  ;;  %v1734_v51 = vadd.f32 %v1733_v50, %v1608_v44  ;;  %v5387_v20 = vld [vmem:[#allocation9 + $0x18] sm:$0xff] }
 0xe09   :  { %v4358_v28 = vpop.eup %4357  ;;  %v1740_v60 = vadd.f32 %v1739_v59, %v1608_v44  ;;  %v1744_v1 = vadd.f32 %v1743_v62, %v1608_v44 }
 0xe0a   :  { %v1461_v29 = vmul.f32 %v4358_v28, %v5329_v49  ;;  %v1470_v30 = vpack.c.bf16 %v5339_v23, %v5337_v22  ;;  %v5344_v38 = vadd.f32 %v1464_v36, %v1416_v54  ;;  %v1732_v49 = vadd.f32 %v1731_v48, %v1612_v45 }
 0xe0b   :  { %v5352_v56 = vpack.c.bf16 %v1734_v51, %v1730_v47  ;;  %v5362_v3 = vpack.c.bf16 %v1744_v1, %v1740_v60 }
 0xe0c   :  { %3989 = vmatprep.mubr.bf16.mxu1 %v1470_v30  ;;  %v1465_v37 = vmul.f32 %v1461_v29, %v1415_v18  ;;  %v5354_v57 = vpack.c.bf16 %v1736_v55, %v1732_v49  ;;  %v5380_v18 = vld [vmem:[#allocation9] sm:$0xff] }
 0xe0d   :  { %4085 = vmatprep.subr.msk.bf16.mxu0 %vm527_vm0, %v5352_v56  ;;  %v1769_v58 = vsel %vm527_vm0, %v5352_v56, 0  ;;  %v1772_v6 = vsel %vm527_vm0, %v5362_v3, 0 }
 0xe0e   :  { %v5346_v39 = vadd.f32 %v1465_v37, %v1416_v54  ;;  %4001 = vmatprep.subr.bf16.mxu1 %v5354_v57  ;;  %3994 = vmatpush3.bf16.xpose.msra.mxu0 %v1769_v58 }
 0xe0f   :  { %4086 = vmatprep.subr.msk.bf16.mxu0 %vm527_vm0, %v5362_v3 }
 0xe10   :  { %v1471_v42 = vpack.c.bf16 %v5346_v39, %v5344_v38 }
 0xe12   :  { %3990 = vmatmul.mubr.bf16.vlgmr.msra.gmra.mrb[20].mxu1 %v1471_v42 }
 0xe13   :  { %4002 = vmatpush3.bf16.msra.mxu1 %v5354_v57 }
 0xe14   :  { %4003 = vmatprep.subr.bf16.mxu1 %v5364_v5 }
 0xe16   :  { %3996 = vmatpush3.bf16.xpose.msra.mxu0 %v1772_v6 }
 0xe17   :  { %4004 = vmatpush3.bf16.msra.mxu1 %v5364_v5 }
 0xee5   :  { %v3991_v9 = vpop.f32.mrb[20].mxu1 }
 0xee6   :  { %v1580_v4 = vadd.f32 %v3991_v9, %v1488_v8  ;;  %v1571_v10 = vpop.f32.mrb[21].mxu1 }
 0xee7   :  { %v1572_v11 = vadd.f32 %v1571_v10, %v1488_v8  ;;  %v3992_v12 = vpop.f32.mrb[22].mxu1 }
 0xee8   :  { %v1583_v13 = vadd.f32 %v3992_v12, %v1488_v8  ;;  %v1574_v14 = vpop.f32.mrb[23].mxu1  ;;  %v1754_v16 = vmul.f32 0.17677669, %v1580_v4 }
 0xee9   :  { %v1575_v15 = vadd.f32 %v1574_v14, %v1488_v8  ;;  %v1752_v31 = vmul.f32 0.17677669, %v1572_v11 }
 0xeea   :  { %v1755_v40 = vmul.f32 0.17677669, %v1583_v13 }
 0xeeb   :  { %v1753_v32 = vmul.f32 0.17677669, %v1575_v15 }
 0xeec   :  { %v5372_v33 = vpack.c.bf16 %v1755_v40, %v1754_v16 }
 0xeed   :  { %v5374_v26 = vpack.c.bf16 %v1753_v32, %v1752_v31 }
 0xeef   :  { %3997 = vmatprep.mubr.msk.bf16.mxu0 %vm527_vm0, %v5374_v26 }
 0xef0   :  { %3998 = vmatmul.mubr.msk.bf16.vlgmr.msra.gmra.mrb[36].mxu0 %vm527_vm0, %v5372_v33 }
 0xfc3   :  { %v3999_v35 = vpop.f32.mrb[36].mxu0 }
 0xfc4   :  { %v1808_v53 = vpop.f32.mrb[37].mxu0  ;;  %v1817_v28 = vadd.f32 %v3999_v35, %v5382_v34 }
 0xfc5   :  { %v1809_v19 = vadd.f32 %v1808_v53, %v5380_v18  ;;  %v4000_v54 = vpop.f32.mrb[38].mxu0 }
 0xfc6   :  { %v1811_v21 = vpop.f32.mrb[39].mxu0  ;;  %v1820_v36 = vadd.f32 %v4000_v54, %v5387_v20  ;;  %v1829_v42 = vsel %vm527_vm0, %v1817_v28, -inf }
 0xfc7   :  { %v1812_v29 = vadd.f32 %v1811_v21, %v5384_v41  ;;  %v1823_v30 = vsel %vm527_vm0, %v1809_v19, -inf }
 0xfc8   :  { %1824 = vmax.xlane.f32.xlu0 %v1823_v30  ;;  %v1832_v43 = vsel %vm527_vm0, %v1820_v36, -inf }
 0xfc9   :  { %v1826_v37 = vsel %vm527_vm0, %v1812_v29, -inf }
 0xfca   :  { %1827 = vmax.xlane.f32.xlu1 %v1826_v37 }
 0xfcc   :  { %1830 = vmax.xlane.f32.xlu0 %v1829_v42 }
 0xfce   :  { %1833 = vmax.xlane.f32.xlu1 %v1832_v43 }
0x1055   :  { %v1825_v44 = vpop.xlane.xlu0 %1824 }
0x1056   :  { %v1835_v45 = vsub.f32 %v1809_v19, %v1825_v44 }
0x1057   :  { %v1828_v46 = vpop.xlane.xlu1 %1827 }
0x1058   :  { %v1836_v47 = vsub.f32 %v1812_v29, %v1828_v46  ;;  %v1839_v51 = vmul.f32 1.442695, %v1835_v45 }
0x1059   :  { %v1831_v48 = vpop.xlane.xlu0 %1830 }
0x105a   :  { %v1841_v49 = vmul.f32 1.442695, %v1836_v47  ;;  %v1837_v50 = vsub.f32 %v1817_v28, %v1831_v48 }
0x105b   :  { %v1834_v52 = vpop.xlane.xlu1 %1833 }
0x105c   :  { %4359 = vpow2.f32 %v1841_v49  ;;  %v1843_v55 = vmul.f32 1.442695, %v1837_v50  ;;  %v1838_v58 = vsub.f32 %v1820_v36, %v1834_v52 }
0x105e   :  { %4361 = vpow2.f32 %v1843_v55  ;;  %v1845_v59 = vmul.f32 1.442695, %v1838_v58 }
0x105f   :  { %4363 = vpow2.f32 %v1839_v51 }
0x1060   :  { %4365 = vpow2.f32 %v1845_v59 }
0x1066   :  { %v4360_v60 = vpop.eup %4359 }
0x1067   :  { %v1850_v2 = vsel %vm527_vm0, %v4360_v60, 0.0 }
0x1068   :  { %v4362_v61 = vpop.eup %4361  ;;  %1851 = vadd.xlane.f32.xlu1 %v1850_v2 }
0x1069   :  { %v4364_v62 = vpop.eup %4363  ;;  %v1853_v1 = vsel %vm527_vm0, %v4362_v61, 0.0 }
0x106a   :  { %v4366_v63 = vpop.eup %4365  ;;  %1854 = vadd.xlane.f32.xlu0 %v1853_v1  ;;  %v1847_v6 = vsel %vm527_vm0, %v4364_v62, 0.0 }
0x106b   :  { %v1856_v7 = vsel %vm527_vm0, %v4366_v63, 0.0 }
0x106c   :  { %1857 = vadd.xlane.f32.xlu1 %v1856_v7 }
0x106e   :  { %1848 = vadd.xlane.f32.xlu0 %v1847_v6 }
0x107d   :  { %1938 = vrot.lane.b32.xlu1 %v5362_v3, %s4831_s12 }
0x1081   :  { %1930 = vrot.lane.b32.xlu1 %v5374_v26, %s4831_s12 }
0x1084   :  { %1936 = vrot.lane.b32.xlu0 %v5352_v56, %s4831_s12 }
0x1085   :  { %2134 = vrot.lane.b32.xlu1 %v5352_v56, %s4812_s3 }
0x1088   :  { %1932 = vrot.lane.b32.xlu0 %v5372_v33, %s4831_s12 }
0x1089   :  { %2136 = vrot.lane.b32.xlu1 %v5362_v3, %s4812_s3 }
0x108c   :  { %2130 = vrot.lane.b32.xlu0 %v5374_v26, %s4812_s3 }
0x108d   :  { %2132 = vrot.lane.b32.xlu1 %v5372_v33, %s4812_s3 }
0x10f5   :  { %v1852_v8 = vpop.xlane.xlu1 %1851 }
0x10f6   :  { %4367 = vrcp.f32 %v1852_v8 }
0x10f7   :  { %v1855_v9 = vpop.xlane.xlu0 %1854 }
0x10f9   :  { %v1858_v4 = vpop.xlane.xlu1 %1857 }
0x10fa   :  { %4369 = vrcp.f32 %v1858_v4 }
0x10fb   :  { %4371 = vrcp.f32 %v1855_v9  ;;  %v1849_v10 = vpop.xlane.xlu0 %1848 }
0x10fc   :  { %4373 = vrcp.f32 %v1849_v10 }
0x10fd   :  { %v1939_v40 = vpop.permute.xlu1 %1938 }
0x10fe   :  { %v1950_v28 = vsel %vm527_vm0, %v1939_v40, 0 }
0x10ff   :  { %v1937_v11 = vpop.permute.xlu0 %1936 }
0x1100   :  { %4087 = vmatprep.subr.msk.bf16.mxu1 %vm527_vm0, %v1937_v11  ;;  %v4368_v12 = vpop.eup %4367  ;;  %v1947_v54 = vsel %vm527_vm0, %v1937_v11, 0 }
0x1101   :  { %v1864_v32 = vmul.f32 %v4368_v12, %v4360_v60  ;;  %v1931_v21 = vpop.permute.xlu1 %1930 }
0x1103   :  { %v1933_v30 = vpop.permute.xlu0 %1932 }
0x1104   :  { %v4370_v13 = vpop.eup %4369 }
0x1105   :  { %v4372_v14 = vpop.eup %4371  ;;  %v1866_v16 = vmul.f32 %v4370_v13, %v4366_v63  ;;  %v2135_v29 = vpop.permute.xlu1 %2134 }
0x1106   :  { %v4374_v15 = vpop.eup %4373  ;;  %v1865_v35 = vmul.f32 %v4372_v14, %v4362_v61  ;;  %v2145_v36 = vsel %vm527_vm0, %v2135_v29, 0 }
0x1107   :  { %v1863_v31 = vmul.f32 %v4374_v15, %v4364_v62  ;;  %v2131_v37 = vpop.permute.xlu0 %2130 }
0x1108   :  { %v1868_v19 = vpack.c.bf16 %v1866_v16, %v1865_v35 }
0x1109   :  { %v1867_v53 = vpack.c.bf16 %v1864_v32, %v1863_v31  ;;  %v2137_v42 = vpop.permute.xlu1 %2136 }
0x110a   :  { %v2148_v43 = vsel %vm527_vm0, %v2137_v42, 0 }
0x110b   :  { %4005 = vmatprep.mubr.msk.bf16.mxu1 %vm527_vm0, %v1867_v53 }
0x110c   :  { %4006 = vmatmul.mubr.msk.bf16.vlgmr.msra.gmra.mrb[24].mxu1 %vm527_vm0, %v1868_v19 }
0x110d   :  { %4010 = vmatpush3.bf16.xpose.msra.mxu1 %v1947_v54  ;;  %4013 = vmatprep.mubr.msk.bf16.mxu1 %vm527_vm0, %v1931_v21  ;;  %v2133_v44 = vpop.permute.xlu1 %2132 }
0x110e   :  { %4088 = vmatprep.subr.msk.bf16.mxu1 %vm527_vm0, %v1939_v40 }
0x1115   :  { %4012 = vmatpush3.bf16.xpose.msra.mxu1 %v1950_v28 }
0x1116   :  { %4089 = vmatprep.subr.msk.bf16.mxu1 %vm527_vm0, %v2135_v29 }
0x111c   :  { %4014 = vmatmul.mubr.msk.bf16.vlgmr.msra.gmra.mrb[28].mxu1 %vm527_vm0, %v1933_v30 }
0x111d   :  { %4026 = vmatpush3.bf16.xpose.msra.mxu1 %v2145_v36  ;;  %4029 = vmatprep.mubr.msk.bf16.mxu1 %vm527_vm0, %v2131_v37 }
0x111e   :  { %4090 = vmatprep.subr.msk.bf16.mxu1 %vm527_vm0, %v2137_v42 }
0x1125   :  { %4028 = vmatpush3.bf16.xpose.msra.mxu1 %v2148_v43 }
0x112c   :  { %4030 = vmatmul.mubr.msk.bf16.vlgmr.msra.gmra.mrb[32].mxu1 %vm527_vm0, %v2133_v44 }
0x11df   :  { %v4007_v45 = vpop.f32.mrb[24].mxu1 }
0x11e0   :  { %1926 = vst.msk [vmem:[#allocation2 + $0x10] sm:$0xff] %vm527_vm0, %v4007_v45  ;;  %v1909_v46 = vpop.f32.mrb[25].mxu1 }
0x11e1   :  { %1924 = vst.msk [vmem:[#allocation2] sm:$0xff] %vm527_vm0, %v1909_v46  ;;  %v4008_v47 = vpop.f32.mrb[26].mxu1 }
0x11e2   :  { %1927 = vst.msk [vmem:[#allocation2 + $0x18] sm:$0xff] %vm527_vm0, %v4008_v47  ;;  %v1912_v48 = vpop.f32.mrb[27].mxu1 }
0x11e3   :  { %1925 = vst.msk [vmem:[#allocation2 + $0x8] sm:$0xff] %vm527_vm0, %v1912_v48 }
0x11ef   :  { %v4015_v49 = vpop.f32.mrb[28].mxu1 }
0x11f0   :  { %v1986_v50 = vpop.f32.mrb[29].mxu1  ;;  %v1995_v58 = vadd.f32 %v4015_v49, %v5382_v34 }
0x11f1   :  { %v1987_v51 = vadd.f32 %v1986_v50, %v5380_v18  ;;  %v4016_v52 = vpop.f32.mrb[30].mxu1 }
0x11f2   :  { %v1989_v55 = vpop.f32.mrb[31].mxu1  ;;  %v1998_v61 = vadd.f32 %v4016_v52, %v5387_v20  ;;  %v2007_v62 = vsel %vm527_vm0, %v1995_v58, -inf }
0x11f3   :  { %v1990_v59 = vadd.f32 %v1989_v55, %v5384_v41  ;;  %v2001_v60 = vsel %vm527_vm0, %v1987_v51, -inf }
0x11f4   :  { %2002 = vmax.xlane.f32.xlu0 %v2001_v60  ;;  %v2010_v1 = vsel %vm527_vm0, %v1998_v61, -inf }
0x11f5   :  { %v2004_v2 = vsel %vm527_vm0, %v1990_v59, -inf }
0x11f6   :  { %2005 = vmax.xlane.f32.xlu1 %v2004_v2 }
0x11f8   :  { %2008 = vmax.xlane.f32.xlu0 %v2007_v62 }
0x11fc   :  { %2011 = vmax.xlane.f32.xlu0 %v2010_v1 }
0x11ff   :  { %v4031_v63 = vpop.f32.mrb[32].mxu1 }
0x1200   :  { %v2184_v7 = vpop.f32.mrb[33].mxu1  ;;  %v2193_v4 = vadd.f32 %v4031_v63, %v5382_v34 }
0x1201   :  { %v5443_v6 = vadd.f32 %v2184_v7, %v5380_v18  ;;  %v4032_v8 = vpop.f32.mrb[34].mxu1 }
0x1202   :  { %v2187_v9 = vpop.f32.mrb[35].mxu1  ;;  %v2196_v12 = vadd.f32 %v4032_v8, %v5387_v20  ;;  %v2205_v14 = vsel %vm527_vm0, %v2193_v4, -inf }
0x1203   :  { %v2188_v10 = vadd.f32 %v2187_v9, %v5384_v41  ;;  %v2199_v11 = vsel %vm527_vm0, %v5443_v6, -inf }
0x1204   :  { %2200 = vmax.xlane.f32.xlu0 %v2199_v11  ;;  %v2208_v15 = vsel %vm527_vm0, %v2196_v12, -inf }
0x1205   :  { %v2202_v13 = vsel %vm527_vm0, %v2188_v10, -inf }
0x1206   :  { %2203 = vmax.xlane.f32.xlu1 %v2202_v13 }
0x1208   :  { %2206 = vmax.xlane.f32.xlu0 %v2205_v14 }
0x120a   :  { %2209 = vmax.xlane.f32.xlu1 %v2208_v15 }
0x121b   :  { %2051 = vrot.lane.b32.xlu1 %v5364_v5, %s4831_s12 }
0x121f   :  { %2245 = vrot.lane.b32.xlu1 %v5354_v57, %s4812_s3 }
0x1281   :  { %v2003_v16 = vpop.xlane.xlu0 %2002 }
0x1282   :  { %v2013_v40 = vsub.f32 %v1987_v51, %v2003_v16 }
0x1283   :  { %v2006_v31 = vpop.xlane.xlu1 %2005 }
0x1284   :  { %v2017_v53 = vmul.f32 1.442695, %v2013_v40  ;;  %v2014_v19 = vsub.f32 %v1990_v59, %v2006_v31 }
0x1285   :  { %v2009_v32 = vpop.xlane.xlu0 %2008 }
0x1286   :  { %v2015_v35 = vsub.f32 %v1995_v58, %v2009_v32  ;;  %v2019_v29 = vmul.f32 1.442695, %v2014_v19 }
0x1288   :  { %v2021_v54 = vmul.f32 1.442695, %v2015_v35 }
0x1289   :  { %v2012_v21 = vpop.xlane.xlu0 %2011 }
0x128a   :  { %4375 = vpow2.f32 %v2021_v54  ;;  %v2016_v28 = vsub.f32 %v1998_v61, %v2012_v21 }
0x128b   :  { %4377 = vpow2.f32 %v2017_v53 }
0x128c   :  { %v2023_v30 = vmul.f32 1.442695, %v2016_v28 }
0x128e   :  { %4379 = vpow2.f32 %v2023_v30 }
0x128f   :  { %4381 = vpow2.f32 %v2019_v29 }
0x1291   :  { %v2201_v61 = vpop.xlane.xlu0 %2200 }
0x1292   :  { %v2211_v63 = vsub.f32 %v5443_v6, %v2201_v61 }
0x1293   :  { %v2204_v36 = vpop.xlane.xlu1 %2203 }
0x1294   :  { %v5457_v37 = vpop.eup %4375  ;;  %v2212_v44 = vsub.f32 %v2188_v10, %v2204_v36  ;;  %v2215_v8 = vmul.f32 1.442695, %v2211_v63 }
0x1295   :  { %v2031_v42 = vsel %vm527_vm0, %v5457_v37, 0.0  ;;  %v5461_v43 = vpop.eup %4377  ;;  %v2207_v62 = vpop.xlane.xlu0 %2206 }
0x1296   :  { %2032 = vadd.xlane.f32.xlu0 %v2031_v42  ;;  %v2025_v48 = vsel %vm527_vm0, %v5461_v43, 0.0  ;;  %v2217_v51 = vmul.f32 1.442695, %v2212_v44  ;;  %v2213_v1 = vsub.f32 %v2193_v4, %v2207_v62 }
0x1297   :  { %v2210_v45 = vpop.xlane.xlu1 %2209 }
0x1298   :  { %v4380_v46 = vpop.eup %4379  ;;  %v2214_v47 = vsub.f32 %v2196_v12, %v2210_v45  ;;  %v2219_v7 = vmul.f32 1.442695, %v2213_v1 }
0x1299   :  { %v2034_v49 = vsel %vm527_vm0, %v4380_v46, 0.0  ;;  %v4382_v50 = vpop.eup %4381 }
0x129a   :  { %v2221_v52 = vmul.f32 1.442695, %v2214_v47  ;;  %2026 = vadd.xlane.f32.xlu0 %v2025_v48  ;;  %2035 = vadd.xlane.f32.xlu1 %v2034_v49  ;;  %v2028_v55 = vsel %vm527_vm0, %v4382_v50, 0.0 }
0x129b   :  { %v2052_v4 = vpop.permute.xlu1 %2051 }
0x129c   :  { %4383 = vpow2.f32 %v2221_v52 }
0x129d   :  { %4385 = vpow2.f32 %v2217_v51 }
0x129e   :  { %2029 = vadd.xlane.f32.xlu1 %v2028_v55  ;;  %4387 = vpow2.f32 %v2219_v7 }
0x129f   :  { %4389 = vpow2.f32 %v2215_v8 }
0x12a6   :  { %v5467_v58 = vpop.eup %4383 }
0x12a7   :  { %v2232_v59 = vsel %vm527_vm0, %v5467_v58, 0.0  ;;  %v5471_v60 = vpop.eup %4385 }
0x12a8   :  { %2233 = vadd.xlane.f32.xlu1 %v2232_v59  ;;  %v2226_v2 = vsel %vm527_vm0, %v5471_v60, 0.0  ;;  %v4388_v9 = vpop.eup %4387 }
0x12a9   :  { %v2229_v10 = vsel %vm527_vm0, %v4388_v9, 0.0  ;;  %v4390_v11 = vpop.eup %4389 }
0x12aa   :  { %v2223_v6 = vsel %vm527_vm0, %v4390_v11, 0.0 }
0x12ac   :  { %2227 = vadd.xlane.f32.xlu1 %v2226_v2 }
0x12b0   :  { %2049 = vrot.lane.b32.xlu0 %v5354_v57, %s4831_s12 }
0x12bd   :  { %2247 = vrot.lane.b32.xlu1 %v5364_v5, %s4812_s3 }
0x12c1   :  { %2332 = vrot.lane.b32.xlu1 %v5362_v3, %s4829_s28  ;;  %v2246_v3 = vpop.permute.xlu1 %2245 }
0x12c5   :  { %2328 = vrot.lane.b32.xlu1 %v5372_v33, %s4829_s28 }
0x12cf   :  { %2230 = vadd.xlane.f32.xlu0 %v2229_v10 }
0x12d3   :  { %2224 = vadd.xlane.f32.xlu0 %v2223_v6 }
0x12e9   :  { %2330 = vrot.lane.b32.xlu0 %v5352_v56, %s4829_s28 }
0x12ed   :  { %2326 = vrot.lane.b32.xlu0 %v5374_v26, %s4829_s28 }
0x1323   :  { %v2033_v12 = vpop.xlane.xlu0 %2032 }
0x1327   :  { %v2036_v13 = vpop.xlane.xlu1 %2035  ;;  %v2027_v14 = vpop.xlane.xlu0 %2026 }
0x1328   :  { %4391 = vrcp.f32 %v2036_v13 }
0x1329   :  { %4393 = vrcp.f32 %v2027_v14 }
0x132a   :  { %4395 = vrcp.f32 %v2033_v12 }
0x132b   :  { %v2030_v33 = vpop.xlane.xlu1 %2029  ;;  %v2050_v15 = vpop.permute.xlu0 %2049 }
0x132c   :  { %4397 = vrcp.f32 %v2030_v33  ;;  %4017 = vmatprep.subr.bf16.mxu0 %v2050_v15 }
0x132d   :  { %4018 = vmatpush3.bf16.msra.mxu0 %v2050_v15 }
0x132e   :  { %4019 = vmatprep.subr.bf16.mxu0 %v2052_v4 }
0x1331   :  { %4020 = vmatpush3.bf16.msra.mxu0 %v2052_v4 }
0x1332   :  { %4033 = vmatprep.subr.bf16.mxu0 %v2246_v3  ;;  %v4392_v56 = vpop.eup %4391 }
0x1333   :  { %v4394_v16 = vpop.eup %4393  ;;  %v2044_v32 = vmul.f32 %v4392_v56, %v4380_v46 }
0x1334   :  { %v4396_v40 = vpop.eup %4395  ;;  %v2041_v35 = vmul.f32 %v4394_v16, %v5461_v43 }
0x1335   :  { %v2234_v26 = vpop.xlane.xlu1 %2233  ;;  %v2043_v19 = vmul.f32 %v4396_v40, %v5457_v37 }
0x1336   :  { %v4398_v31 = vpop.eup %4397 }
0x1337   :  { %v2042_v53 = vmul.f32 %v4398_v31, %v4382_v50  ;;  %v2046_v28 = vpack.c.bf16 %v2044_v32, %v2043_v19 }
0x1339   :  { %v2228_v54 = vpop.xlane.xlu1 %2227  ;;  %v2045_v21 = vpack.c.bf16 %v2042_v53, %v2041_v35 }
0x133b   :  { %4021 = vmatprep.mubr.msk.bf16.mxu0 %vm527_vm0, %v2045_v21 }
0x133c   :  { %4022 = vmatmul.mubr.msk.bf16.vlgmr.msra.gmra.mrb[40].mxu0 %vm527_vm0, %v2046_v28 }
0x133d   :  { %4034 = vmatpush3.bf16.msra.mxu0 %v2246_v3  ;;  %v2248_v29 = vpop.permute.xlu1 %2247 }
0x133e   :  { %4035 = vmatprep.subr.bf16.mxu0 %v2248_v29 }
0x1341   :  { %4036 = vmatpush3.bf16.msra.mxu0 %v2248_v29  ;;  %v2333_v59 = vpop.permute.xlu1 %2332 }
0x1342   :  { %v2344_v2 = vsel %vm527_vm0, %v2333_v59, 0 }
0x135c   :  { %v2231_v30 = vpop.xlane.xlu0 %2230 }
0x135d   :  { %4399 = vrcp.f32 %v2231_v30 }
0x135e   :  { %4401 = vrcp.f32 %v2228_v54 }
0x135f   :  { %4403 = vrcp.f32 %v2234_v26 }
0x1360   :  { %v2225_v36 = vpop.xlane.xlu0 %2224 }
0x1361   :  { %4405 = vrcp.f32 %v2225_v36 }
0x1364   :  { %v2331_v42 = vpop.permute.xlu0 %2330 }
0x1365   :  { %4091 = vmatprep.subr.msk.bf16.mxu0 %vm527_vm0, %v2331_v42  ;;  %v2341_v52 = vsel %vm527_vm0, %v2331_v42, 0 }
0x1367   :  { %v4400_v37 = vpop.eup %4399 }
0x1368   :  { %v4402_v43 = vpop.eup %4401  ;;  %v2241_v46 = vmul.f32 %v4400_v37, %v4388_v9  ;;  %v2327_v55 = vpop.permute.xlu0 %2326 }
0x1369   :  { %v4404_v44 = vpop.eup %4403  ;;  %v2240_v48 = vmul.f32 %v4402_v43, %v5471_v60  ;;  %v2329_v60 = vpop.permute.xlu1 %2328 }
0x136a   :  { %v2242_v49 = vmul.f32 %v4404_v44, %v5467_v58 }
0x136b   :  { %v4406_v45 = vpop.eup %4405 }
0x136c   :  { %v2239_v47 = vmul.f32 %v4406_v45, %v4390_v11  ;;  %v2244_v51 = vpack.c.bf16 %v2242_v49, %v2241_v46 }
0x136e   :  { %v2243_v50 = vpack.c.bf16 %v2240_v48, %v2239_v47 }
0x1370   :  { %4037 = vmatprep.mubr.msk.bf16.mxu0 %vm527_vm0, %v2243_v50 }
0x1371   :  { %4038 = vmatmul.mubr.msk.bf16.vlgmr.msra.gmra.mrb[44].mxu0 %vm527_vm0, %v2244_v51 }
0x1372   :  { %4042 = vmatpush3.bf16.xpose.msra.mxu0 %v2341_v52  ;;  %4045 = vmatprep.mubr.msk.bf16.mxu0 %vm527_vm0, %v2327_v55 }
0x1373   :  { %4092 = vmatprep.subr.msk.bf16.mxu0 %vm527_vm0, %v2333_v59 }
0x137a   :  { %4044 = vmatpush3.bf16.xpose.msra.mxu0 %v2344_v2 }
0x1381   :  { %4046 = vmatmul.mubr.msk.bf16.vlgmr.msra.gmra.mrb[48].mxu0 %vm527_vm0, %v2329_v60 }
0x1382   :  { %2843 = vmatprep.mubr.bf16.mxu0 %v4830_v0 }
0x140f   :  { %v4023_v58 = vpop.f32.mrb[40].mxu0 }
0x1410   :  { %v2095_v61 = vpop.f32.mrb[41].mxu0 }
0x1411   :  { %v4024_v62 = vpop.f32.mrb[42].mxu0 }
0x1412   :  { %v2098_v1 = vpop.f32.mrb[43].mxu0 }
0x1444   :  { %v4039_v63 = vpop.f32.mrb[44].mxu0 }
0x1445   :  { %v2291_v7 = vpop.f32.mrb[45].mxu0 }
0x1446   :  { %v4040_v8 = vpop.f32.mrb[46].mxu0 }
0x1447   :  { %v2294_v9 = vpop.f32.mrb[47].mxu0 }
0x1454   :  { %v4047_v10 = vpop.f32.mrb[48].mxu0 }
0x1455   :  { %v2380_v11 = vpop.f32.mrb[49].mxu0  ;;  %v2389_v12 = vadd.f32 %v4047_v10, %v5382_v34 }
0x1456   :  { %v2381_v6 = vadd.f32 %v2380_v11, %v5380_v18  ;;  %v4048_v4 = vpop.f32.mrb[50].mxu0  ;;  %v4191_v11 = vld [vmem:[#allocation17] sm:$0xff]  }
0x1457   :  { %v2383_v3 = vpop.f32.mrb[51].mxu0  ;;  %v2392_v15 = vadd.f32 %v4048_v4, %v5387_v20  ;;  %v2401_v56 = vsel %vm527_vm0, %v2389_v12, -inf  ;;  %v4193_v4 = vld [vmem:[#allocation17 + $0x10] sm:$0xff]  }
0x1458   :  { %v2384_v13 = vadd.f32 %v2383_v3, %v5384_v41  ;;  %v2395_v14 = vsel %vm527_vm0, %v2381_v6, -inf  ;;  %v4194_v3 = vld [vmem:[#allocation17 + $0x18] sm:$0xff]  }
0x1459   :  { %2396 = vmax.xlane.f32.xlu0 %v2395_v14  ;;  %v2404_v16 = vsel %vm527_vm0, %v2392_v15, -inf  ;;  %v4197_v14 = vld [vmem:[#allocation17 + $0x30] sm:$0xff]  }
0x145a   :  { %v2398_v33 = vsel %vm527_vm0, %v2384_v13, -inf }
0x145b   :  { %2399 = vmax.xlane.f32.xlu1 %v2398_v33  ;;  %v4198_v33 = vld [vmem:[#allocation17 + $0x38] sm:$0xff]  }
0x145d   :  { %2402 = vmax.xlane.f32.xlu0 %v2401_v56 }
0x1461   :  { %2405 = vmax.xlane.f32.xlu0 %v2404_v16 }
0x14e6   :  { %v2397_v18 = vpop.xlane.xlu0 %2396 }
0x14e7   :  { %v2407_v40 = vsub.f32 %v2381_v6, %v2397_v18  ;;  %v4192_v6 = vld [vmem:[#allocation17 + $0x8] sm:$0xff]  }
0x14e8   :  { %v2400_v26 = vpop.xlane.xlu1 %2399 }
0x14e9   :  { %v2411_v41 = vmul.f32 1.442695, %v2407_v40  ;;  %v2408_v32 = vsub.f32 %v2384_v13, %v2400_v26  ;;  %v4196_v13 = vld [vmem:[#allocation17 + $0x28] sm:$0xff]  }
0x14ea   :  { %v2403_v34 = vpop.xlane.xlu0 %2402 }
0x14eb   :  { %v2409_v31 = vsub.f32 %v2389_v12, %v2403_v34  ;;  %v2413_v54 = vmul.f32 1.442695, %v2408_v32  ;;  %v4195_v12 = vld [vmem:[#allocation17 + $0x20] sm:$0xff]  }
0x14ed   :  { %v2415_v35 = vmul.f32 1.442695, %v2409_v31 }
0x14ee   :  { %v2406_v53 = vpop.xlane.xlu0 %2405 }
0x14ef   :  { %4407 = vpow2.f32 %v2415_v35  ;;  %v2410_v19 = vsub.f32 %v2392_v15, %v2406_v53 }
0x14f0   :  { %4409 = vpow2.f32 %v2411_v41 }
0x14f1   :  { %v2417_v20 = vmul.f32 1.442695, %v2410_v19 }
0x14f3   :  { %4411 = vpow2.f32 %v2417_v20  ;;  %v2544_v20 = vld [vmem:[#allocation23 + $0x6] ss:$0 sm:$0xff] }
0x14f4   :  { %4413 = vpow2.f32 %v2413_v54 }
0x14f9   :  { %v4408_v21 = vpop.eup %4407 }
0x14fa   :  { %v2425_v28 = vsel %vm527_vm0, %v4408_v21, 0.0  ;;  %v4410_v29 = vpop.eup %4409 }
0x14fb   :  { %2426 = vadd.xlane.f32.xlu0 %v2425_v28  ;;  %v2419_v36 = vsel %vm527_vm0, %v4410_v29, 0.0 }
0x14fd   :  { %v4412_v30 = vpop.eup %4411 }
0x14fe   :  { %v2428_v42 = vsel %vm527_vm0, %v4412_v30, 0.0  ;;  %v4414_v37 = vpop.eup %4413 }
0x14ff   :  { %2420 = vadd.xlane.f32.xlu0 %v2419_v36  ;;  %2429 = vadd.xlane.f32.xlu1 %v2428_v42  ;;  %v2422_v43 = vsel %vm527_vm0, %v4414_v37, 0.0 }
0x1503   :  { %2423 = vadd.xlane.f32.xlu1 %v2422_v43 }
0x1514   :  { %2443 = vrot.lane.b32.xlu1 %v5364_v5, %s4829_s28 }
0x1515   :  { %2441 = vrot.lane.b32.xlu0 %v5354_v57, %s4829_s28 }
0x1518   :  { %2114 = vrot.lane.b32.xlu1 %v2095_v61, %s4829_s28 }
0x1519   :  { %2118 = vrot.lane.b32.xlu0 %v4023_v58, %s4829_s28 }
0x151c   :  { %2116 = vrot.lane.b32.xlu1 %v2098_v1, %s4829_s28 }
0x151d   :  { %2310 = vrot.lane.b32.xlu0 %v2291_v7, %s4812_s3 }
0x1520   :  { %2120 = vrot.lane.b32.xlu1 %v4024_v62, %s4829_s28 }
0x1521   :  { %2314 = vrot.lane.b32.xlu0 %v4039_v63, %s4812_s3 }
0x1524   :  { %2312 = vrot.lane.b32.xlu1 %v2294_v9, %s4812_s3 }
0x1528   :  { %2316 = vrot.lane.b32.xlu1 %v4040_v8, %s4812_s3  ;;  %s4832_s3 = smov [#allocation24]  }
0x1529   :  { %s3559_s6 = sshll.u32 %s4832_s3, 4  ;;  %s3560_s6 = int_to_ptr.vmem [resolvable:$true] %s3559_s6 }
0x152a   :  { %s4769_s21 = scalar_lea.vmem %s3560_s6, 2048  ;;  %p4774_p7 = scmp.lt.s32.totalorder %s3560_s6, %s3560_s6 }
0x152b   :  { %p4770_p6 = scmp.ne.s32.totalorder %s3560_s6, %s4769_s21  ;;  %p4775_p8 = scmp.lt.s32.totalorder %s4769_s21, %s4769_s21 }
0x152d   :  { %p4776_p9 = por %p4775_p8, %p4774_p7 }
0x152f   :  { %p4777_p10 = pnand %p4776_p9, %p4770_p6 }
0x1588   :  { %v2427_v5 = vpop.xlane.xlu0 %2426 }
0x158c   :  { %v2430_v44 = vpop.xlane.xlu1 %2429  ;;  %v2421_v45 = vpop.xlane.xlu0 %2420 }
0x158d   :  { %4415 = vrcp.f32 %v2430_v44 }
0x158e   :  { %4417 = vrcp.f32 %v2421_v45 }
0x158f   :  { %4419 = vrcp.f32 %v2427_v5 }
0x1590   :  { %v2424_v57 = vpop.xlane.xlu1 %2423  ;;  %v2442_v46 = vpop.permute.xlu0 %2441 }
0x1591   :  { %4421 = vrcp.f32 %v2424_v57  ;;  %4049 = vmatprep.subr.bf16.mxu1 %v2442_v46 }
0x1592   :  { %4050 = vmatpush3.bf16.msra.mxu1 %v2442_v46  ;;  %v4199_v46 = vld [vmem:[#allocation18] ss:$8 sps:$4 sm:$0xff]  }
0x1594   :  { %v2444_v47 = vpop.permute.xlu1 %2443  ;;  %v2119_v48 = vpop.permute.xlu0 %2118 }
0x1595   :  { %2128 = vst.msk [vmem:[#allocation2 + $0x10] sm:$0xff] %vm892_vm1, %v2119_v48  ;;  %4051 = vmatprep.subr.bf16.mxu1 %v2444_v47  ;;  %v4204_v48 = vld [vmem:[#allocation18 + $0x14] ss:$8 sps:$4 sm:$0xff]  }
0x1596   :  { %4052 = vmatpush3.bf16.msra.mxu1 %v2444_v47  ;;  %v4201_v47 = vld [vmem:[#allocation18 + $0x4] ss:$8 sps:$4 sm:$0xff]  }
0x1597   :  { %v4416_v49 = vpop.eup %4415  ;;  %4057 = vmatprep.subr.bf16.mxu1 %v4191_v11  ;;  %2811 = vmatprep.subr.bf16.mxu0 %v4201_v47 }
0x1598   :  { %v2115_v50 = vpop.permute.xlu1 %2114  ;;  %v2311_v51 = vpop.permute.xlu0 %2310  ;;  %v2438_v2 = vmul.f32 %v4416_v49, %v4412_v30  ;;  %2812 = vmatpush1.bf16.msra.mxu0 %v4199_v46  ;;  %v4202_v49 = vld [vmem:[#allocation18 + $0x10] ss:$8 sps:$4 sm:$0xff]  }
0x1599   :  { %v4418_v52 = vpop.eup %4417  ;;  %2126 = vst.msk [vmem:[#allocation2] sm:$0xff] %vm892_vm1, %v2115_v50  ;;  %2813 = vmatprep.subr.bf16.mxu0 %v4204_v48 }
0x159a   :  { %v4420_v55 = vpop.eup %4419  ;;  %2322 = vst.msk [vmem:[#allocation2] sm:$0xff] %vm1089_vm2, %v2311_v51  ;;  %v2435_v61 = vmul.f32 %v4418_v52, %v4410_v29 }
0x159b   :  { %v4422_v59 = vpop.eup %4421  ;;  %v2437_v1 = vmul.f32 %v4420_v55, %v4408_v21 }
0x159c   :  { %v2117_v60 = vpop.permute.xlu1 %2116  ;;  %v2315_v58 = vpop.permute.xlu0 %2314  ;;  %v2436_v62 = vmul.f32 %v4422_v59, %v4414_v37  ;;  %2814 = vmatpush1.bf16.msra.mxu0 %v4202_v49  ;;  %v2647_v49 = vld [vmem:[#allocation23 + $0x20] ss:$0 sm:$0xff] }
0x159d   :  { %2127 = vst.msk [vmem:[#allocation2 + $0x8] sm:$0xff] %vm892_vm1, %v2117_v60  ;;  %v2440_v7 = vpack.c.bf16 %v2438_v2, %v2437_v1 }
0x159e   :  { %2324 = vst.msk [vmem:[#allocation2 + $0x10] sm:$0xff] %vm1089_vm2, %v2315_v58  ;;  %v2439_v63 = vpack.c.bf16 %v2436_v62, %v2435_v61 }
0x15a0   :  { %v2121_v8 = vpop.permute.xlu1 %2120  ;;  %4053 = vmatprep.mubr.msk.bf16.mxu1 %vm527_vm0, %v2439_v63 }
0x15a1   :  { %2129 = vst.msk [vmem:[#allocation2 + $0x18] sm:$0xff] %vm892_vm1, %v2121_v8  ;;  %4054 = vmatmul.mubr.msk.bf16.vlgmr.msra.gmra.mrb[36].mxu1 %vm527_vm0, %v2440_v7  ;;  %v4207_v7 = vld [vmem:[#allocation18 + $0x24] ss:$8 sps:$4 sm:$0xff]   ;;  %v4205_v8 = vld [vmem:[#allocation18 + $0x20] ss:$8 sps:$4 sm:$0xff]  }
0x15a2   :  { %4058 = vmatpush3.bf16.msra.mxu1 %v4191_v11  ;;  %2815 = vmatprep.subr.bf16.mxu0 %v4207_v7  ;;  %v4213_v11 = vld [vmem:[#allocation18 + $0x44] ss:$8 sps:$4 sm:$0xff]   ;;  %v4238_v7 = vld [vmem:[#allocation20 + $0x38] sm:$0xff]  }
0x15a3   :  { %4059 = vmatprep.subr.bf16.mxu1 %v4192_v6  ;;  %2816 = vmatpush1.bf16.msra.mxu0 %v4205_v8  ;;  %v2719_v8 = vld [vmem:[#allocation23 + $0x21] ss:$8 sm:$0x3] }
0x15a4   :  { %v2313_v9 = vpop.permute.xlu1 %2312 }
0x15a5   :  { %2323 = vst.msk [vmem:[#allocation2 + $0x8] sm:$0xff] %vm1089_vm2, %v2313_v9  ;;  %v4210_v9 = vld [vmem:[#allocation18 + $0x34] ss:$8 sps:$4 sm:$0xff]  }
0x15a6   :  { %4060 = vmatpush3.bf16.msra.mxu1 %v4192_v6  ;;  %2817 = vmatprep.subr.bf16.mxu0 %v4210_v9  ;;  %v4211_v6 = vld [vmem:[#allocation18 + $0x40] ss:$8 sps:$4 sm:$0xff]   ;;  %v2724_v9 = vrot.slane %v2719_v8, %v5114_v25 }
0x15a7   :  { %4061 = vmatprep.subr.bf16.mxu1 %v4193_v4 }
0x15a8   :  { %v2317_v10 = vpop.permute.xlu1 %2316 }
0x15a9   :  { %2325 = vst.msk [vmem:[#allocation2 + $0x18] sm:$0xff] %vm1089_vm2, %v2317_v10  ;;  %v4208_v10 = vld [vmem:[#allocation18 + $0x30] ss:$8 sps:$4 sm:$0xff]  }
0x15aa   :  { %4062 = vmatpush3.bf16.msra.mxu1 %v4193_v4  ;;  %2818 = vmatpush1.bf16.msra.mxu0 %v4208_v10  ;;  %v4216_v4 = vld [vmem:[#allocation18 + $0x54] ss:$8 sps:$4 sm:$0xff]   ;;  %v2728_v10 = vrot.slane %v2719_v8, %v5119_v27 }
0x15ab   :  { %4063 = vmatprep.subr.bf16.mxu1 %v4194_v3  ;;  %2819 = vmatprep.subr.bf16.mxu0 %v4213_v11 }
0x15ae   :  { %4064 = vmatpush3.bf16.msra.mxu1 %v4194_v3  ;;  %2820 = vmatpush1.bf16.msra.mxu0 %v4211_v6  ;;  %v4214_v3 = vld [vmem:[#allocation18 + $0x50] ss:$8 sps:$4 sm:$0xff]  }
0x15af   :  { %4065 = vmatprep.subr.bf16.mxu1 %v4195_v12  ;;  %2821 = vmatprep.subr.bf16.mxu0 %v4216_v4 }
0x15b2   :  { %4066 = vmatpush3.bf16.msra.mxu1 %v4195_v12  ;;  %2822 = vmatpush1.bf16.msra.mxu0 %v4214_v3  ;;  %v4219_v12 = vld [vmem:[#allocation18 + $0x64] ss:$8 sps:$4 sm:$0xff]  }
0x15b3   :  { %4067 = vmatprep.subr.bf16.mxu1 %v4196_v13  ;;  %2823 = vmatprep.subr.bf16.mxu0 %v4219_v12 }
0x15b6   :  { %4068 = vmatpush3.bf16.msra.mxu1 %v4196_v13  ;;  %v4217_v13 = vld [vmem:[#allocation18 + $0x60] ss:$8 sps:$4 sm:$0xff]  }
0x15b7   :  { %4069 = vmatprep.subr.bf16.mxu1 %v4197_v14  ;;  %2824 = vmatpush1.bf16.msra.mxu0 %v4217_v13 }
0x15ba   :  { %4070 = vmatpush3.bf16.msra.mxu1 %v4197_v14  ;;  %v4222_v14 = vld [vmem:[#allocation18 + $0x74] ss:$8 sps:$4 sm:$0xff]  }
0x15bb   :  { %4071 = vmatprep.subr.bf16.mxu1 %v4198_v33  ;;  %2825 = vmatprep.subr.bf16.mxu0 %v4222_v14 }
0x15be   :  { %4072 = vmatpush3.bf16.msra.mxu1 %v4198_v33  ;;  %v4220_v33 = vld [vmem:[#allocation18 + $0x70] ss:$8 sps:$4 sm:$0xff]  }
0x15bf   :  { %2826 = vmatpush1.bf16.msra.mxu0 %v4220_v33 }
0x1674   :  { %v4055_v15 = vpop.f32.mrb[36].mxu1 }
0x1675   :  { %v2487_v56 = vpop.f32.mrb[37].mxu1 }
0x1676   :  { %2506 = vrot.lane.b32.xlu0 %v2487_v56, %s4831_s12  ;;  %v4056_v16 = vpop.f32.mrb[38].mxu1  ;;  %v4224_v56 = vld [vmem:[#allocation20] sm:$0xff]  }
0x1677   :  { %v2490_v18 = vpop.f32.mrb[39].mxu1 }
0x1678   :  { %2508 = vrot.lane.b32.xlu1 %v2490_v18, %s4831_s12  ;;  %v4226_v18 = vld [vmem:[#allocation20 + $0x8] sm:$0xff]  }
0x167a   :  { %2510 = vrot.lane.b32.xlu0 %v4055_v15, %s4831_s12  ;;  %v4223_v15 = vld [vmem:[#allocation20 + $0x40] sm:$0xff]  }
0x167b   :  { %3841 = vmatprep.subr.bf16.mxu1 %v4223_v15 }
0x167c   :  { %2512 = vrot.lane.b32.xlu1 %v4056_v16, %s4831_s12  ;;  %v4225_v16 = vld [vmem:[#allocation20 + $0x48] sm:$0xff]  }
0x16e8   :  { %v2507_v40 = vpop.permute.xlu0 %2506 }
0x16e9   :  { %2518 = vst.msk [vmem:[#allocation2] sm:$0xff] %vm1286_vm3, %v2507_v40  ;;  %v4227_v40 = vld [vmem:[#allocation20 + $0x50] sm:$0xff]  }
0x16ea   :  { %v2509_v26 = vpop.permute.xlu1 %2508 }
0x16eb   :  { %2519 = vst.msk [vmem:[#allocation2 + $0x8] sm:$0xff] %vm1286_vm3, %v2509_v26  ;;  %v4228_v26 = vld [vmem:[#allocation20 + $0x10] sm:$0xff]  }
0x16ec   :  { %v2511_v34 = vpop.permute.xlu0 %2510 }
0x16ed   :  { %2520 = vst.msk [vmem:[#allocation2 + $0x10] sm:$0xff] %vm1286_vm3, %v2511_v34  ;;  %v4229_v34 = vld [vmem:[#allocation20 + $0x58] sm:$0xff]  }
0x16ee   :  { %v2513_v31 = vpop.permute.xlu1 %2512 }
0x16ef   :  { %2521 = vst.msk [vmem:[#allocation2 + $0x18] sm:$0xff] %vm1286_vm3, %v2513_v31  ;;  %v4230_v31 = vld [vmem:[#allocation20 + $0x18] sm:$0xff]  }
0x16f0   :  { %v2522_v41 = vld [vmem:[#allocation2] sm:$0xff] }
0x16f2   :  { %v2523_v32 = vld [vmem:[#allocation2 + $0x8] sm:$0xff] }
0x16f3   :  { %v2526_v35 = vpack.c.bf16 %v2523_v32, %v2522_v41  ;;  %v4231_v41 = vld [vmem:[#allocation20 + $0x60] sm:$0xff]  }
0x16f4   :  { %v2524_v53 = vld [vmem:[#allocation2 + $0x10] sm:$0xff]  ;;  %v4232_v32 = vld [vmem:[#allocation20 + $0x20] sm:$0xff]  }
0x16f5   :  { %4073 = vmatprep.mubr.bf16.mxu1 %v2526_v35  ;;  %v4233_v35 = vld [vmem:[#allocation20 + $0x68] sm:$0xff]  }
0x16f6   :  { %v2525_v19 = vld [vmem:[#allocation2 + $0x18] sm:$0xff] }
0x16f7   :  { %v2527_v54 = vpack.c.bf16 %v2525_v19, %v2524_v53 }
0x16f9   :  { %4074 = vmatmul.mubr.bf16.vlgmr.msra.gmra.mrb[40].mxu1 %v2527_v54 }
0x16fa   :  { %3842 = vmatpush3.bf16.msra.mxu1 %v4224_v56 }
0x16fb   :  { %3843 = vmatprep.subr.bf16.mxu1 %v4225_v16 }
0x16fe   :  { %3844 = vmatpush3.bf16.msra.mxu1 %v4226_v18 }
0x16ff   :  { %3845 = vmatprep.subr.bf16.mxu1 %v4227_v40 }
0x1702   :  { %3846 = vmatpush3.bf16.msra.mxu1 %v4228_v26 }
0x1703   :  { %3847 = vmatprep.subr.bf16.mxu1 %v4229_v34 }
0x1706   :  { %3848 = vmatpush3.bf16.msra.mxu1 %v4230_v31 }
0x1707   :  { %3849 = vmatprep.subr.bf16.mxu1 %v4231_v41 }
0x170a   :  { %3850 = vmatpush3.bf16.msra.mxu1 %v4232_v32 }
0x170b   :  { %3851 = vmatprep.subr.bf16.mxu1 %v4233_v35 }
0x17cc   :  { %v4075_v21 = vpop.f32.mrb[40].mxu1 }
0x17cd   :  { %v2627_v28 = vpop.f32.mrb[41].mxu1  ;;  %v2636_v42 = vadd.f32 %v4075_v21, %v2544_v20 }
0x17ce   :  { %v2628_v29 = vadd.f32 %v2627_v28, %v2544_v20  ;;  %v4076_v30 = vpop.f32.mrb[42].mxu1 }
0x17cf   :  { %v2630_v36 = vpop.f32.mrb[43].mxu1  ;;  %v2644_v44 = vadd.f32 %v2636_v42, %v5344_v38  ;;  %v2639_v45 = vadd.f32 %v4076_v30, %v2544_v20 }
0x17d0   :  { %v2642_v37 = vadd.f32 %v2628_v29, %v5337_v22  ;;  %v2631_v43 = vadd.f32 %v2630_v36, %v2544_v20 }
0x17d1   :  { %v2645_v57 = vadd.f32 %v2639_v45, %v5346_v39 }
0x17d2   :  { %v2643_v5 = vadd.f32 %v2631_v43, %v5339_v23  ;;  %2648 = vadd.xlane.f32.xlu0 %v2642_v37 }
0x17d4   :  { %2650 = vadd.xlane.f32.xlu1 %v2643_v5 }
0x17d6   :  { %2652 = vadd.xlane.f32.xlu0 %v2644_v44 }
0x17da   :  { %2654 = vadd.xlane.f32.xlu0 %v2645_v57 }
0x185f   :  { %v2649_v22 = vpop.xlane.xlu0 %2648 }
0x1860   :  { %v2656_v50 = vmul.f32 0.0078125, %v2649_v22 }
0x1861   :  { %v2651_v23 = vpop.xlane.xlu1 %2650 }
0x1862   :  { %v5551_v51 = vsub.f32 %v2642_v37, %v2656_v50  ;;  %v2657_v38 = vmul.f32 0.0078125, %v2651_v23 }
0x1863   :  { %v2653_v52 = vpop.xlane.xlu0 %2652 }
0x1864   :  { %v5553_v55 = vsub.f32 %v2643_v5, %v2657_v38  ;;  %v2658_v59 = vmul.f32 0.0078125, %v2653_v52  ;;  %v2664_v39 = vmul.f32 %v5551_v51, %v5551_v51 }
0x1866   :  { %v5557_v2 = vsub.f32 %v2644_v44, %v2658_v59  ;;  %2668 = vadd.xlane.f32.xlu0 %v2664_v39  ;;  %v2665_v60 = vmul.f32 %v5553_v55, %v5553_v55  ;;  %v2646_v44 = vld [vmem:[#allocation23 + $0x7] ss:$0 sm:$0xff] }
0x1867   :  { %v2655_v58 = vpop.xlane.xlu0 %2654 }
0x1868   :  { %v2659_v61 = vmul.f32 0.0078125, %v2655_v58  ;;  %2670 = vadd.xlane.f32.xlu1 %v2665_v60  ;;  %v2666_v62 = vmul.f32 %v5557_v2, %v5557_v2 }
0x186a   :  { %v5563_v1 = vsub.f32 %v2645_v57, %v2659_v61  ;;  %2672 = vadd.xlane.f32.xlu0 %v2666_v62  ;;  %v4235_v62 = vld [vmem:[#allocation20 + $0x70] sm:$0xff]  }
0x186c   :  { %v2667_v63 = vmul.f32 %v5563_v1, %v5563_v1 }
0x186e   :  { %2674 = vadd.xlane.f32.xlu1 %v2667_v63  ;;  %v4236_v63 = vld [vmem:[#allocation20 + $0x30] sm:$0xff]  }
0x18f3   :  { %v2669_v53 = vpop.xlane.xlu0 %2668 }
0x18f4   :  { %v2676_v19 = vmul.f32 0.0078125, %v2669_v53 }
0x18f5   :  { %v2671_v54 = vpop.xlane.xlu1 %2670 }
0x18f6   :  { %v2680_v20 = vadd.f32 1e-05, %v2676_v19  ;;  %v2677_v21 = vmul.f32 0.0078125, %v2671_v54 }
0x18f7   :  { %v2673_v28 = vpop.xlane.xlu0 %2672 }
0x18f8   :  { %4423 = vrsqrt.f32 %v2680_v20  ;;  %v2681_v29 = vadd.f32 1e-05, %v2677_v21  ;;  %v2678_v30 = vmul.f32 0.0078125, %v2673_v28 }
0x18fa   :  { %4425 = vrsqrt.f32 %v2681_v29  ;;  %v2682_v36 = vadd.f32 1e-05, %v2678_v30 }
0x18fb   :  { %v2675_v42 = vpop.xlane.xlu1 %2674 }
0x18fc   :  { %4427 = vrsqrt.f32 %v2682_v36  ;;  %v2679_v37 = vmul.f32 0.0078125, %v2675_v42 }
0x18fe   :  { %v2683_v43 = vadd.f32 1e-05, %v2679_v37 }
0x1900   :  { %4429 = vrsqrt.f32 %v2683_v43 }
0x1902   :  { %v4424_v5 = vpop.eup %4423 }
0x1903   :  { %v2688_v45 = vmul.f32 %v4424_v5, %v5551_v51 }
0x1904   :  { %v4426_v57 = vpop.eup %4425 }
0x1905   :  { %v2689_v46 = vmul.f32 %v4426_v57, %v5553_v55  ;;  %v2692_v47 = vmul.f32 %v2688_v45, %v2646_v44 }
0x1906   :  { %v4428_v48 = vpop.eup %4427 }
0x1907   :  { %v2693_v22 = vmul.f32 %v2689_v46, %v2646_v44  ;;  %v5569_v50 = vadd.f32 %v2692_v47, %v2647_v49  ;;  %v2690_v38 = vmul.f32 %v4428_v48, %v5557_v2  ;;  %v4234_v2 = vld [vmem:[#allocation20 + $0x28] sm:$0xff]  }
0x1908   :  { %3852 = vmatpush3.bf16.msra.mxu1 %v4234_v2  ;;  %v4247_v2 = vld [vmem:[#allocation21 + $0x24] ss:$16 sps:$4 sm:$0xff]  }
0x1909   :  { %v5571_v23 = vadd.f32 %v2693_v22, %v2647_v49  ;;  %v2694_v51 = vmul.f32 %v2690_v38, %v2646_v44  ;;  %3853 = vmatprep.subr.bf16.mxu1 %v4235_v62  ;;  %v4245_v62 = vld [vmem:[#allocation21 + $0x20] ss:$16 sps:$4 sm:$0xff]  }
0x190a   :  { %v4430_v52 = vpop.eup %4429 }
0x190b   :  { %v2700_v59 = vpack.c.bf16 %v5571_v23, %v5569_v50  ;;  %v2691_v39 = vmul.f32 %v4430_v52, %v5563_v1  ;;  %v5580_v58 = vadd.f32 %v2694_v51, %v2647_v49  ;;  %v4237_v1 = vld [vmem:[#allocation20 + $0x78] sm:$0xff]   ;;  %v4239_v51 = vld [vmem:[#allocation21] ss:$16 sps:$4 sm:$0xff]  }
0x190c   :  { %3854 = vmatpush3.bf16.msra.mxu1 %v4236_v63  ;;  %v4248_v63 = vld [vmem:[#allocation21 + $0x28] ss:$16 sps:$4 sm:$0xff]  }
0x190d   :  { %2844 = vmatmul.mubr.bf16.vlgmr.msra.gmra.mrb[52].mxu0 %v2700_v59  ;;  %v2695_v60 = vmul.f32 %v2691_v39, %v2646_v44  ;;  %3855 = vmatprep.subr.bf16.mxu1 %v4237_v1 }
0x190e   :  { %2853 = vmatprep.mubr.bf16.mxu0 %v4830_v0 }
0x190f   :  { %v5578_v55 = vadd.f32 %v2695_v60, %v2647_v49  ;;  %v4241_v60 = vld [vmem:[#allocation21 + $0x4] ss:$16 sps:$4 sm:$0xff]  }
0x1910   :  { %3856 = vmatpush3.bf16.msra.mxu1 %v4238_v7  ;;  %3324 = vmatprep.subr.bf16.mxu0 %v4241_v60 }
0x1911   :  { %v2701_v61 = vpack.c.bf16 %v5578_v55, %v5580_v58  ;;  %3325 = vmatpush1.bf16.msra.mxu0 %v4239_v51 }
0x1912   :  { %3326 = vmatprep.subr.bf16.mxu0 %v4247_v2 }
0x1915   :  { %2854 = vmatmul.mubr.bf16.gmra.mrb[56].mxu0 %v2701_v61  ;;  %v4244_v61 = vld [vmem:[#allocation21 + $0xc] ss:$16 sps:$4 sm:$0xff]  }
0x1916   :  { %3356 = vmatprep.mubr.bf16.mxu0 %v4830_v0  ;;  %3377 = vmatprep.subr.bf16.mxu1 %v4244_v61 }
0x1917   :  { %3327 = vmatpush1.bf16.msra.mxu0 %v4245_v62 }
0x19e0   :  { %v2845_v11 = vpop.f32.mrb[52].mxu0 }
0x19e1   :  { %v2846_v6 = vadd.f32 %v2845_v11, %v2724_v9  ;;  %v2847_v4 = vpop.f32.mrb[53].mxu0 }
0x19e2   :  { %v2848_v3 = vadd.f32 %v2847_v4, %v2728_v10  ;;  %v2849_v12 = vpop.f32.mrb[54].mxu0 }
0x19e3   :  { %v2850_v13 = vadd.f32 %v2849_v12, %v2724_v9  ;;  %v2851_v14 = vpop.f32.mrb[55].mxu0  ;;  %v2864_v15 = vmax.f32 %v2846_v6, 0.0 }
0x19e4   :  { %v2852_v33 = vadd.f32 %v2851_v14, %v2728_v10  ;;  %v2865_v16 = vmax.f32 %v2848_v3, 0.0 }
0x19e5   :  { %v2866_v56 = vmax.f32 %v2850_v13, 0.0 }
0x19e6   :  { %v2867_v18 = vmax.f32 %v2852_v33, 0.0 }
0x19e7   :  { %v2872_v40 = vpack.c.bf16 %v2866_v56, %v2864_v15  ;;  %v4253_v56 = vld [vmem:[#allocation21 + $0x44] ss:$16 sps:$4 sm:$0xff]  }
0x19e8   :  { %v2873_v26 = vpack.c.bf16 %v2867_v18, %v2865_v16  ;;  %v2855_v34 = vpop.f32.mrb[56].mxu0  ;;  %v4256_v16 = vld [vmem:[#allocation21 + $0x4c] ss:$16 sps:$4 sm:$0xff]   ;;  %v4251_v18 = vld [vmem:[#allocation21 + $0x40] ss:$16 sps:$4 sm:$0xff]   ;;  %3328 = vmatprep.subr.bf16.mxu0 %v4253_v56 }
0x19e9   :  { %v2856_v31 = vadd.f32 %v2855_v34, %v2724_v9  ;;  %v2857_v41 = vpop.f32.mrb[57].mxu0  ;;  %3329 = vmatpush1.bf16.msra.mxu0 %v4251_v18  ;;  %v4262_v34 = vld [vmem:[#allocation21 + $0x6c] ss:$16 sps:$4 sm:$0xff]  }
0x19ea   :  { %v2858_v32 = vadd.f32 %v2857_v41, %v2728_v10  ;;  %v2859_v35 = vpop.f32.mrb[58].mxu0  ;;  %3036 = vmatprep.mubr.bf16.mxu1 %v2873_v26  ;;  %v4259_v26 = vld [vmem:[#allocation21 + $0x64] ss:$16 sps:$4 sm:$0xff]   ;;  %v4260_v41 = vld [vmem:[#allocation21 + $0x68] ss:$16 sps:$4 sm:$0xff]  }
0x19eb   :  { %v2860_v53 = vadd.f32 %v2859_v35, %v2724_v9  ;;  %v2861_v19 = vpop.f32.mrb[59].mxu0  ;;  %3037 = vmatmul.mubr.bf16.vlgmr.msra.gmra.mrb[44].mxu1 %v2872_v40  ;;  %v2868_v20 = vmax.f32 %v2856_v31, 0.0  ;;  %v4254_v40 = vld [vmem:[#allocation21 + $0x48] ss:$16 sps:$4 sm:$0xff]   ;;  %v4257_v31 = vld [vmem:[#allocation21 + $0x60] ss:$16 sps:$4 sm:$0xff]   ;;  %3330 = vmatprep.subr.bf16.mxu0 %v4259_v26 }
0x19ec   :  { %v2862_v54 = vadd.f32 %v2861_v19, %v2728_v10  ;;  %v2869_v28 = vmax.f32 %v2858_v32, 0.0  ;;  %v4265_v32 = vld [vmem:[#allocation21 + $0x84] ss:$16 sps:$4 sm:$0xff]   ;;  %v4268_v35 = vld [vmem:[#allocation21 + $0x8c] ss:$16 sps:$4 sm:$0xff]  }
0x19ed   :  { %v2870_v21 = vmax.f32 %v2860_v53, 0.0  ;;  %3331 = vmatpush1.bf16.msra.mxu0 %v4257_v31  ;;  %v4263_v53 = vld [vmem:[#allocation21 + $0x80] ss:$16 sps:$4 sm:$0xff]   ;;  %v4266_v19 = vld [vmem:[#allocation21 + $0x88] ss:$16 sps:$4 sm:$0xff]  }
0x19ee   :  { %v2871_v29 = vmax.f32 %v2862_v54, 0.0  ;;  %3332 = vmatprep.subr.bf16.mxu0 %v4265_v32  ;;  %v4271_v54 = vld [vmem:[#allocation21 + $0xa4] ss:$16 sps:$4 sm:$0xff]  }
0x19ef   :  { %v2874_v30 = vpack.c.bf16 %v2870_v21, %v2868_v20  ;;  %v4274_v20 = vld [vmem:[#allocation21 + $0xac] ss:$16 sps:$4 sm:$0xff]   ;;  %v4269_v21 = vld [vmem:[#allocation21 + $0xa0] ss:$16 sps:$4 sm:$0xff]  }
0x19f0   :  { %v2875_v36 = vpack.c.bf16 %v2871_v29, %v2869_v28  ;;  %v4272_v28 = vld [vmem:[#allocation21 + $0xa8] ss:$16 sps:$4 sm:$0xff]   ;;  %v4277_v29 = vld [vmem:[#allocation21 + $0xc4] ss:$16 sps:$4 sm:$0xff]  }
0x19f1   :  { %3333 = vmatpush1.bf16.msra.mxu0 %v4263_v53 }
0x19f2   :  { %3044 = vmatprep.mubr.bf16.mxu1 %v2875_v36  ;;  %3334 = vmatprep.subr.bf16.mxu0 %v4271_v54  ;;  %v4275_v36 = vld [vmem:[#allocation21 + $0xc0] ss:$16 sps:$4 sm:$0xff]  }
0x19f3   :  { %3045 = vmatmul.mubr.bf16.gmra.mrb[48].mxu1 %v2874_v30  ;;  %v4280_v30 = vld [vmem:[#allocation21 + $0xcc] ss:$16 sps:$4 sm:$0xff]  }
0x19f4   :  { %3409 = vmatprep.mubr.bf16.mxu1 %v4830_v0 }
0x19f5   :  { %3335 = vmatpush1.bf16.msra.mxu0 %v4269_v21 }
0x19f6   :  { %3336 = vmatprep.subr.bf16.mxu0 %v4277_v29 }
0x19f9   :  { %3337 = vmatpush1.bf16.msra.mxu0 %v4275_v36 }
0x1abe   :  { %v3857_v42 = vpop.f32.mrb[44].mxu1 }
0x1abf   :  { %v3858_v37 = vpop.f32.mrb[45].mxu1 }
0x1ac0   :  { %v3859_v43 = vadd.f32 %v3858_v37, %v3857_v42  ;;  %v3860_v5 = vpop.f32.mrb[46].mxu1  ;;  %v4278_v42 = vld [vmem:[#allocation21 + $0xc8] ss:$16 sps:$4 sm:$0xff]   ;;  %v4281_v37 = vld [vmem:[#allocation21 + $0xe0] ss:$16 sps:$4 sm:$0xff]  }
0x1ac1   :  { %v3861_v44 = vpop.f32.mrb[47].mxu1 }
0x1ac2   :  { %v3039_v45 = vadd.f32 %v3859_v43, %v5569_v50  ;;  %v3862_v57 = vadd.f32 %v3861_v44, %v3860_v5  ;;  %v4242_v50 = vld [vmem:[#allocation21 + $0x8] ss:$16 sps:$4 sm:$0xff]   ;;  %v4283_v43 = vld [vmem:[#allocation21 + $0xe4] ss:$16 sps:$4 sm:$0xff]   ;;  %v4286_v44 = vld [vmem:[#allocation21 + $0xec] ss:$16 sps:$4 sm:$0xff]  }
0x1ac3   :  { %3378 = vmatpush1.bf16.msra.mxu1 %v4242_v50  ;;  %v4284_v5 = vld [vmem:[#allocation21 + $0xe8] ss:$16 sps:$4 sm:$0xff]   ;;  %3338 = vmatprep.subr.bf16.mxu0 %v4283_v43  ;;  %v3053_v50 = vld [vmem:[#allocation23 + $0x22] ss:$0 sm:$0xff] }
0x1ac4   :  { %v3042_v46 = vadd.f32 %v3862_v57, %v5571_v23  ;;  %3055 = vadd.xlane.f32.xlu0 %v3039_v45  ;;  %v4250_v23 = vld [vmem:[#allocation21 + $0x2c] ss:$16 sps:$4 sm:$0xff]   ;;  %3339 = vmatpush1.bf16.msra.mxu0 %v4281_v37 }
0x1ac5   :  { %3379 = vmatprep.subr.bf16.mxu1 %v4250_v23 }
0x1ac6   :  { %3057 = vadd.xlane.f32.xlu1 %v3042_v46  ;;  %v3863_v47 = vpop.f32.mrb[48].mxu1 }
0x1ac7   :  { %v3864_v48 = vpop.f32.mrb[49].mxu1  ;;  %3380 = vmatpush1.bf16.msra.mxu1 %v4248_v63  ;;  %v3054_v63 = vld [vmem:[#allocation23 + $0x23] ss:$0 sm:$0xff] }
0x1ac8   :  { %v3865_v49 = vadd.f32 %v3864_v48, %v3863_v47  ;;  %v3866_v22 = vpop.f32.mrb[50].mxu1  ;;  %3381 = vmatprep.subr.bf16.mxu1 %v4256_v16  ;;  %v3158_v16 = vsub.s32 3, %v5111_v24 }
0x1ac9   :  { %v3867_v38 = vpop.f32.mrb[51].mxu1 }
0x1aca   :  { %v3047_v52 = vadd.f32 %v3865_v49, %v5580_v58  ;;  %v3868_v59 = vadd.f32 %v3867_v38, %v3866_v22 }
0x1acb   :  { %3382 = vmatpush1.bf16.msra.mxu1 %v4254_v40 }
0x1acc   :  { %v3050_v39 = vadd.f32 %v3868_v59, %v5578_v55  ;;  %3059 = vadd.xlane.f32.xlu0 %v3047_v52  ;;  %3383 = vmatprep.subr.bf16.mxu1 %v4262_v34 }
0x1ace   :  { %3061 = vadd.xlane.f32.xlu1 %v3050_v39 }
0x1acf   :  { %3384 = vmatpush1.bf16.msra.mxu1 %v4260_v41 }
0x1ad0   :  { %3385 = vmatprep.subr.bf16.mxu1 %v4268_v35 }
0x1ad3   :  { %3386 = vmatpush1.bf16.msra.mxu1 %v4266_v19 }
0x1ad4   :  { %3387 = vmatprep.subr.bf16.mxu1 %v4274_v20 }
0x1ad7   :  { %3388 = vmatpush1.bf16.msra.mxu1 %v4272_v28 }
0x1ad8   :  { %3389 = vmatprep.subr.bf16.mxu1 %v4280_v30 }
0x1adb   :  { %3390 = vmatpush1.bf16.msra.mxu1 %v4278_v42 }
0x1adc   :  { %3391 = vmatprep.subr.bf16.mxu1 %v4286_v44 }
0x1adf   :  { %3392 = vmatpush1.bf16.msra.mxu1 %v4284_v5 }
0x1b51   :  { %v3056_v58 = vpop.xlane.xlu0 %3055 }
0x1b52   :  { %v3063_v55 = vmul.f32 0.0078125, %v3056_v58 }
0x1b53   :  { %v3058_v1 = vpop.xlane.xlu1 %3057 }
0x1b54   :  { %v5592_v7 = vsub.f32 %v3039_v45, %v3063_v55  ;;  %v3064_v8 = vmul.f32 0.0078125, %v3058_v1 }
0x1b56   :  { %v5594_v9 = vsub.f32 %v3042_v46, %v3064_v8  ;;  %v3071_v10 = vmul.f32 %v5592_v7, %v5592_v7 }
0x1b58   :  { %3075 = vadd.xlane.f32.xlu0 %v3071_v10  ;;  %v3072_v11 = vmul.f32 %v5594_v9, %v5594_v9 }
0x1b59   :  { %v3060_v6 = vpop.xlane.xlu0 %3059 }
0x1b5a   :  { %v3065_v4 = vmul.f32 0.0078125, %v3060_v6  ;;  %3077 = vadd.xlane.f32.xlu1 %v3072_v11 }
0x1b5b   :  { %v3062_v3 = vpop.xlane.xlu1 %3061 }
0x1b5c   :  { %v5600_v12 = vsub.f32 %v3047_v52, %v3065_v4  ;;  %v3066_v13 = vmul.f32 0.0078125, %v3062_v3 }
0x1b5e   :  { %v5602_v14 = vsub.f32 %v3050_v39, %v3066_v13  ;;  %v3073_v33 = vmul.f32 %v5600_v12, %v5600_v12 }
0x1b60   :  { %3079 = vadd.xlane.f32.xlu0 %v3073_v33  ;;  %v3074_v15 = vmul.f32 %v5602_v14, %v5602_v14 }
0x1b62   :  { %3081 = vadd.xlane.f32.xlu1 %v3074_v15  ;;  %v3142_v15 = vld [vmem:[#allocation23 + $0x24] ss:$8 sm:$0xf] }
0x1b63   :  { %v3147_v56 = vrot.slane %v3142_v15, %v5114_v25  ;;  %v3159_v41 = vrot.slane %v3142_v15, %v3158_v16 }
0x1be5   :  { %v3076_v45 = vpop.xlane.xlu0 %3075 }
0x1be6   :  { %v3083_v57 = vmul.f32 0.0078125, %v3076_v45 }
0x1be7   :  { %v3078_v46 = vpop.xlane.xlu1 %3077 }
0x1be8   :  { %v3087_v47 = vadd.f32 1e-05, %v3083_v57  ;;  %v3084_v48 = vmul.f32 0.0078125, %v3078_v46 }
0x1bea   :  { %4431 = vrsqrt.f32 %v3087_v47  ;;  %v3088_v49 = vadd.f32 1e-05, %v3084_v48 }
0x1bec   :  { %4433 = vrsqrt.f32 %v3088_v49 }
0x1bed   :  { %v3080_v22 = vpop.xlane.xlu0 %3079 }
0x1bee   :  { %v3085_v38 = vmul.f32 0.0078125, %v3080_v22 }
0x1bef   :  { %v3082_v52 = vpop.xlane.xlu1 %3081 }
0x1bf0   :  { %v3089_v59 = vadd.f32 1e-05, %v3085_v38  ;;  %v3086_v39 = vmul.f32 0.0078125, %v3082_v52 }
0x1bf2   :  { %4435 = vrsqrt.f32 %v3089_v59  ;;  %v3090_v51 = vadd.f32 1e-05, %v3086_v39 }
0x1bf4   :  { %v4432_v60 = vpop.eup %4431  ;;  %4437 = vrsqrt.f32 %v3090_v51 }
0x1bf5   :  { %v3095_v61 = vmul.f32 %v4432_v60, %v5592_v7 }
0x1bf6   :  { %v4434_v2 = vpop.eup %4433 }
0x1bf7   :  { %v3099_v23 = vmul.f32 %v3095_v61, %v3053_v50  ;;  %v3096_v62 = vmul.f32 %v4434_v2, %v5594_v9 }
0x1bf9   :  { %v3100_v58 = vmul.f32 %v3096_v62, %v3053_v50  ;;  %v3103_v55 = vadd.f32 %v3099_v23, %v3054_v63 }
0x1bfb   :  { %v3104_v1 = vadd.f32 %v3100_v58, %v3054_v63 }
0x1bfc   :  { %v4436_v8 = vpop.eup %4435 }
0x1bfd   :  { %v3107_v10 = vpack.c.bf16 %v3104_v1, %v3103_v55  ;;  %v3097_v11 = vmul.f32 %v4436_v8, %v5600_v12  ;;  %v3151_v12 = vrot.slane %v3142_v15, %v5119_v27 }
0x1bfe   :  { %v4438_v6 = vpop.eup %4437 }
0x1bff   :  { %3357 = vmatmul.mubr.bf16.vlgmr.msra.gmra.mrb[60].mxu0 %v3107_v10  ;;  %3410 = vmatmul.mubr.bf16.vlgmr.msra.gmra.mrb[52].mxu1 %v3107_v10  ;;  %v3098_v4 = vmul.f32 %v4438_v6, %v5602_v14  ;;  %v3101_v3 = vmul.f32 %v3097_v11, %v3053_v50  ;;  %v3155_v14 = vrot.slane %v3142_v15, %v278_v17 }
0x1c00   :  { %3366 = vmatprep.mubr.bf16.mxu0 %v4830_v0  ;;  %3419 = vmatprep.mubr.bf16.mxu1 %v4830_v0 }
0x1c01   :  { %v3102_v7 = vmul.f32 %v3098_v4, %v3053_v50  ;;  %v3105_v9 = vadd.f32 %v3101_v3, %v3054_v63 }
0x1c03   :  { %v3106_v13 = vadd.f32 %v3102_v7, %v3054_v63 }
0x1c05   :  { %v3108_v33 = vpack.c.bf16 %v3106_v13, %v3105_v9 }
0x1c07   :  { %3367 = vmatmul.mubr.bf16.gmra.mrb[64].mxu0 %v3108_v33  ;;  %3420 = vmatmul.mubr.bf16.gmra.mrb[56].mxu1 %v3108_v33 }
0x1cd2   :  { %v3358_v18 = vpop.f32.mrb[60].mxu0  ;;  %v3411_v40 = vpop.f32.mrb[52].mxu1 }
0x1cd3   :  { %v3359_v26 = vadd.f32 %v3358_v18, %v3147_v56  ;;  %v3360_v0 = vpop.f32.mrb[61].mxu0  ;;  %v3413_v34 = vpop.f32.mrb[53].mxu1  ;;  %v3412_v25 = vadd.f32 %v3411_v40, %v3155_v14 }
0x1cd4   :  { %v3361_v31 = vadd.f32 %v3360_v0, %v3151_v12  ;;  %v3362_v32 = vpop.f32.mrb[62].mxu0  ;;  %v3415_v35 = vpop.f32.mrb[54].mxu1  ;;  %v3414_v21 = vadd.f32 %v3413_v34, %v3159_v41 }
0x1cd5   :  { %v3363_v53 = vadd.f32 %v3362_v32, %v3147_v56  ;;  %v3364_v19 = vpop.f32.mrb[63].mxu0  ;;  %v3417_v54 = vpop.f32.mrb[55].mxu1  ;;  %v3416_v29 = vadd.f32 %v3415_v35, %v3155_v14 }
0x1cd6   :  { %v3430_v20 = vmax.f32 %v3359_v26, %v3361_v31  ;;  %v3365_v27 = vadd.f32 %v3364_v19, %v3151_v12  ;;  %v3418_v17 = vadd.f32 %v3417_v54, %v3159_v41 }
0x1cd8   :  { %v3431_v28 = vmax.f32 %v3430_v20, %v3412_v25  ;;  %v3435_v30 = vmax.f32 %v3363_v53, %v3365_v27 }
0x1cda   :  { %v3432_v24 = vmax.f32 %v3431_v28, %v3414_v21  ;;  %v3436_v36 = vmax.f32 %v3435_v30, %v3416_v29  ;;  %v3368_v42 = vpop.f32.mrb[64].mxu0  ;;  %v3421_v37 = vpop.f32.mrb[56].mxu1 }
0x1cdb   :  { %v3369_v43 = vadd.f32 %v3368_v42, %v3147_v56  ;;  %v3370_v5 = vpop.f32.mrb[65].mxu0  ;;  %v3423_v44 = vpop.f32.mrb[57].mxu1  ;;  %v3422_v38 = vadd.f32 %v3421_v37, %v3155_v14 }
0x1cdc   :  { %v3437_v45 = vmax.f32 %v3436_v36, %v3418_v17  ;;  %v3371_v57 = vadd.f32 %v3370_v5, %v3151_v12  ;;  %3433 = vmax.xlane.f32.xlu0 %v3432_v24  ;;  %v3372_v46 = vpop.f32.mrb[66].mxu0  ;;  %v3425_v47 = vpop.f32.mrb[58].mxu1  ;;  %v3424_v39 = vadd.f32 %v3423_v44, %v3159_v41 }
0x1cdd   :  { %v3373_v48 = vadd.f32 %v3372_v46, %v3147_v56  ;;  %v3374_v49 = vpop.f32.mrb[67].mxu0  ;;  %v3427_v22 = vpop.f32.mrb[59].mxu1  ;;  %v3426_v60 = vadd.f32 %v3425_v47, %v3155_v14 }
0x1cde   :  { %v3440_v52 = vmax.f32 %v3369_v43, %v3371_v57  ;;  %v3375_v59 = vadd.f32 %v3374_v49, %v3151_v12  ;;  %3438 = vmax.xlane.f32.xlu1 %v3437_v45  ;;  %v3428_v2 = vadd.f32 %v3427_v22, %v3159_v41 }
0x1ce0   :  { %v3441_v51 = vmax.f32 %v3440_v52, %v3422_v38  ;;  %v3445_v50 = vmax.f32 %v3373_v48, %v3375_v59 }
0x1ce2   :  { %v3442_v61 = vmax.f32 %v3441_v51, %v3424_v39  ;;  %v3446_v23 = vmax.f32 %v3445_v50, %v3426_v60 }
0x1ce4   :  { %v3447_v62 = vmax.f32 %v3446_v23, %v3428_v2  ;;  %3443 = vmax.xlane.f32.xlu0 %v3442_v61 }
0x1ce6   :  { %3448 = vmax.xlane.f32.xlu1 %v3447_v62 }
0x1d69   :  { %v3434_v63 = vpop.xlane.xlu0 %3433 }
0x1d6a   :  { %v3450_v58 = vsub.f32 %v3359_v26, %v3434_v63  ;;  %v3451_v55 = vsub.f32 %v3361_v31, %v3434_v63  ;;  %v3452_v1 = vsub.f32 %v3412_v25, %v3434_v63  ;;  %v3453_v8 = vsub.f32 %v3414_v21, %v3434_v63 }
0x1d6b   :  { %v3439_v10 = vpop.xlane.xlu1 %3438 }
0x1d6c   :  { %v3466_v11 = vmul.f32 1.442695, %v3450_v58  ;;  %v3468_v6 = vmul.f32 1.442695, %v3451_v55  ;;  %v3470_v4 = vmul.f32 1.442695, %v3452_v1  ;;  %v3454_v3 = vsub.f32 %v3363_v53, %v3439_v10 }
0x1d6d   :  { %v3472_v7 = vmul.f32 1.442695, %v3453_v8  ;;  %v3455_v9 = vsub.f32 %v3365_v27, %v3439_v10  ;;  %v3456_v13 = vsub.f32 %v3416_v29, %v3439_v10  ;;  %v3457_v33 = vsub.f32 %v3418_v17, %v3439_v10 }
0x1d6e   :  { %4439 = vpow2.f32 %v3466_v11  ;;  %v3474_v15 = vmul.f32 1.442695, %v3454_v3 }
0x1d6f   :  { %4441 = vpow2.f32 %v3468_v6  ;;  %v3476_v56 = vmul.f32 1.442695, %v3455_v9  ;;  %v3478_v12 = vmul.f32 1.442695, %v3456_v13  ;;  %v3480_v16 = vmul.f32 1.442695, %v3457_v33 }
0x1d70   :  { %4443 = vpow2.f32 %v3470_v4 }
0x1d71   :  { %4445 = vpow2.f32 %v3472_v7  ;;  %v3444_v18 = vpop.xlane.xlu0 %3443 }
0x1d72   :  { %4447 = vpow2.f32 %v3474_v15  ;;  %v3458_v14 = vsub.f32 %v3369_v43, %v3444_v18  ;;  %v3459_v40 = vsub.f32 %v3371_v57, %v3444_v18  ;;  %v3460_v26 = vsub.f32 %v3422_v38, %v3444_v18 }
0x1d73   :  { %4449 = vpow2.f32 %v3476_v56  ;;  %v3461_v0 = vsub.f32 %v3424_v39, %v3444_v18  ;;  %v3449_v34 = vpop.xlane.xlu1 %3448 }
0x1d74   :  { %4451 = vpow2.f32 %v3478_v12  ;;  %v3482_v31 = vmul.f32 1.442695, %v3458_v14  ;;  %v3484_v41 = vmul.f32 1.442695, %v3459_v40  ;;  %v3486_v32 = vmul.f32 1.442695, %v3460_v26 }
0x1d75   :  { %4453 = vpow2.f32 %v3480_v16  ;;  %v3488_v35 = vmul.f32 1.442695, %v3461_v0  ;;  %v3462_v53 = vsub.f32 %v3373_v48, %v3449_v34  ;;  %v3463_v19 = vsub.f32 %v3375_v59, %v3449_v34 }
0x1d76   :  { %4455 = vpow2.f32 %v3482_v31  ;;  %v3464_v54 = vsub.f32 %v3426_v60, %v3449_v34  ;;  %v3465_v25 = vsub.f32 %v3428_v2, %v3449_v34 }
0x1d77   :  { %4457 = vpow2.f32 %v3484_v41  ;;  %v3490_v20 = vmul.f32 1.442695, %v3462_v53  ;;  %v3492_v27 = vmul.f32 1.442695, %v3463_v19 }
0x1d78   :  { %v4440_v21 = vpop.eup %4439  ;;  %4459 = vpow2.f32 %v3486_v32  ;;  %v3494_v29 = vmul.f32 1.442695, %v3464_v54  ;;  %v3496_v36 = vmul.f32 1.442695, %v3465_v25 }
0x1d79   :  { %v4442_v28 = vpop.eup %4441  ;;  %4461 = vpow2.f32 %v3488_v35 }
0x1d7a   :  { %v4444_v30 = vpop.eup %4443  ;;  %4463 = vpow2.f32 %v3490_v20  ;;  %v3498_v24 = vadd.f32 %v4442_v28, %v4440_v21 }
0x1d7b   :  { %v4446_v17 = vpop.eup %4445  ;;  %4465 = vpow2.f32 %v3492_v27 }
0x1d7c   :  { %v4448_v42 = vpop.eup %4447  ;;  %v3499_v37 = vadd.f32 %v4444_v30, %v3498_v24  ;;  %4467 = vpow2.f32 %v3494_v29 }
0x1d7d   :  { %v4450_v43 = vpop.eup %4449  ;;  %4469 = vpow2.f32 %v3496_v36 }
0x1d7e   :  { %v4452_v5 = vpop.eup %4451  ;;  %v3500_v44 = vadd.f32 %v4446_v17, %v3499_v37  ;;  %v3503_v45 = vadd.f32 %v4450_v43, %v4448_v42 }
0x1d7f   :  { %v4454_v57 = vpop.eup %4453 }
0x1d80   :  { %v4456_v46 = vpop.eup %4455  ;;  %3501 = vadd.xlane.f32.xlu0 %v3500_v44  ;;  %v3504_v47 = vadd.f32 %v4452_v5, %v3503_v45 }
0x1d81   :  { %v4458_v48 = vpop.eup %4457 }
0x1d82   :  { %v4460_v49 = vpop.eup %4459  ;;  %v3505_v22 = vadd.f32 %v4454_v57, %v3504_v47  ;;  %v3508_v38 = vadd.f32 %v4458_v48, %v4456_v46 }
0x1d83   :  { %v4462_v52 = vpop.eup %4461 }
0x1d84   :  { %v4464_v59 = vpop.eup %4463  ;;  %3506 = vadd.xlane.f32.xlu1 %v3505_v22  ;;  %v3509_v39 = vadd.f32 %v4460_v49, %v3508_v38 }
0x1d85   :  { %v4466_v51 = vpop.eup %4465 }
0x1d86   :  { %v3510_v60 = vadd.f32 %v4462_v52, %v3509_v39  ;;  %v3513_v50 = vadd.f32 %v4466_v51, %v4464_v59  ;;  %v4468_v61 = vpop.eup %4467 }
0x1d87   :  { %v4470_v23 = vpop.eup %4469 }
0x1d88   :  { %3511 = vadd.xlane.f32.xlu0 %v3510_v60  ;;  %v3514_v2 = vadd.f32 %v4468_v61, %v3513_v50 }
0x1d8a   :  { %v3515_v62 = vadd.f32 %v4470_v23, %v3514_v2 }
0x1d8c   :  { %3516 = vadd.xlane.f32.xlu1 %v3515_v62 }
0x1e0d   :  { %v3502_v63 = vpop.xlane.xlu0 %3501 }
0x1e0e   :  { %4471 = vrcp.f32 %v3502_v63 }
0x1e11   :  { %v3507_v58 = vpop.xlane.xlu1 %3506 }
0x1e12   :  { %4473 = vrcp.f32 %v3507_v58 }
0x1e15   :  { %v3512_v55 = vpop.xlane.xlu0 %3511 }
0x1e16   :  { %4475 = vrcp.f32 %v3512_v55 }
0x1e18   :  { %v4472_v1 = vpop.eup %4471 }
0x1e19   :  { %v3519_v8 = vmul.f32 %v4472_v1, %v4440_v21  ;;  %v3520_v10 = vmul.f32 %v4472_v1, %v4442_v28  ;;  %v3521_v11 = vmul.f32 %v4472_v1, %v4444_v30  ;;  %v3522_v6 = vmul.f32 %v4472_v1, %v4446_v17  ;;  %v3517_v4 = vpop.xlane.xlu1 %3516 }
0x1e1a   :  { %4477 = vrcp.f32 %v3517_v4 }
0x1e1b   :  { %3538 = vst [vmem:[#allocation24] sm:$0xff] %v3519_v8  ;;  %3539 = vst [vmem:[#allocation24 + $0x8] sm:$0xff] %v3520_v10 }
0x1e1c   :  { %3540 = vst [vmem:[#allocation24 + $0x10] sm:$0xff] %v3521_v11  ;;  %3541 = vst [vmem:[#allocation24 + $0x18] sm:$0xff] %v3522_v6  ;;  %v4474_v3 = vpop.eup %4473 }
0x1e1d   :  { %v3524_v7 = vmul.f32 %v4474_v3, %v4448_v42  ;;  %v3525_v9 = vmul.f32 %v4474_v3, %v4450_v43  ;;  %v3526_v13 = vmul.f32 %v4474_v3, %v4452_v5  ;;  %v3527_v33 = vmul.f32 %v4474_v3, %v4454_v57 }
0x1e1f   :  { %3542 = vst [vmem:[#allocation24 + $0x20] sm:$0xff] %v3524_v7  ;;  %3543 = vst [vmem:[#allocation24 + $0x28] sm:$0xff] %v3525_v9 }
0x1e20   :  { %3544 = vst [vmem:[#allocation24 + $0x30] sm:$0xff] %v3526_v13  ;;  %3545 = vst [vmem:[#allocation24 + $0x38] sm:$0xff] %v3527_v33  ;;  %v4476_v15 = vpop.eup %4475 }
0x1e21   :  { %v3529_v56 = vmul.f32 %v4476_v15, %v4456_v46  ;;  %v3530_v12 = vmul.f32 %v4476_v15, %v4458_v48  ;;  %v3531_v16 = vmul.f32 %v4476_v15, %v4460_v49  ;;  %v3532_v18 = vmul.f32 %v4476_v15, %v4462_v52 }
0x1e23   :  { %3546 = vst [vmem:[#allocation24 + $0x40] sm:$0xff] %v3529_v56  ;;  %3547 = vst [vmem:[#allocation24 + $0x48] sm:$0xff] %v3530_v12 }
0x1e24   :  { %3548 = vst [vmem:[#allocation24 + $0x50] sm:$0xff] %v3531_v16  ;;  %3549 = vst [vmem:[#allocation24 + $0x58] sm:$0xff] %v3532_v18  ;;  %v4478_v14 = vpop.eup %4477 }
0x1e25   :  { %v3534_v40 = vmul.f32 %v4478_v14, %v4464_v59  ;;  %v3535_v26 = vmul.f32 %v4478_v14, %v4466_v51  ;;  %v3536_v0 = vmul.f32 %v4478_v14, %v4468_v61  ;;  %v3537_v34 = vmul.f32 %v4478_v14, %v4470_v23 }
0x1e27   :  { %3550 = vst [vmem:[#allocation24 + $0x60] sm:$0xff] %v3534_v40  ;;  %3551 = vst [vmem:[#allocation24 + $0x68] sm:$0xff] %v3535_v26 }
0x1e28   :  { %3552 = vst [vmem:[#allocation24 + $0x70] sm:$0xff] %v3536_v0  ;;  %3553 = vst [vmem:[#allocation24 + $0x78] sm:$0xff] %v3537_v34 }
0x1e29   :  { %4780 = shalt.err (!%p4777_p10)
}
0x1e2a   :  { %s4781_s17 = scalar_lea.hbm %s5647_s13, 2048 }
0x1e2b   :  { %p4782_p11 = scmp.ne.s32.totalorder %s5647_s13, %s4781_s17  ;;  %p4785_p12 = scmp.lt.u32.totalorder %s4781_s17, %s5647_s13 }
0x1e2d   :  { %p4787_p13 = pnand %p4785_p12, %p4782_p11 }
0x1e2f   :  { %4790 = shalt.err (!%p4787_p13)
}
0x1e30   :  { %3565 = dma.vmem_to_hbm [thread:$0]  %s3560_s6, 2048, %s5647_s13, [#allocation5], %s4828_s10, %s4828_s10, %s4829_s28  }
0x1e31   :  { %4805 = dma.done.wait [#allocation5], 2048  }
0x1e32   :  { %4806 = vsyncadd [#allocation5], 4294965248 }
0x1e33   :  { %3569 = vsyncpa [#allocation4], 1 }
0x1e34   :  { %3570 = vsyncpa [#allocation7], 1 }
0x1e35   :  { %3571 = vsyncpa [#allocation10], 1 }
0x1e36   :  { %3572 = vsyncpa [#allocation13], 1 }
0x1e37   :  { %3573 = vsyncpa [#allocation16], 1 }
0x1e38   :  { %3574 = vsyncpa [#allocation19], 1 }
0x1e39   :  { %3575 = vsyncpa [#allocation22], 1 }
0x1e3a   :  { %3576 = vsyncpa [#allocation5], 1 }

</bundles_post_ra>
